<compile_context>
chip_gen: v5e
topology: v5e:2x2
jax: 0.10.0
libtpu: 0.0.40
codegen_flags: <defaults>
</compile_context>

<pallas_src>
import functools

import jax
import jax.numpy as jnp
from jax.experimental import pallas as pl
from jax.experimental.pallas import tpu as pltpu


# ----------------------------------------------------------------------------
# small in-kernel helpers
# ----------------------------------------------------------------------------
def _layer_norm(x, g, b, eps=1e-5):
    mu = jnp.mean(x, axis=-1, keepdims=True)
    var = jnp.mean((x - mu) ** 2, axis=-1, keepdims=True)
    return (x - mu) * jax.lax.rsqrt(var + eps) * g + b


def _group_norm(x, G, GT, gamma, beta, inv_group_size, eps=1e-5):
    # x: (rows, H); G: (H, n_groups) one-hot membership; GT = G.T
    # One MXU push for [sum, sum_sq], one push to broadcast (mean, rstd) back.
    R = x.shape[0]
    xx = jnp.concatenate([x, x * x], axis=0)                               # (2R, H)
    sg = jnp.dot(xx, G, preferred_element_type=jnp.float32) * inv_group_size
    mean_g = sg[:R]
    var_g = sg[R:] - mean_g * mean_g                                       # biased (torch)
    stats = jnp.concatenate([mean_g, jax.lax.rsqrt(var_g + eps)], axis=0)  # (2R, ng)
    bc = jnp.dot(stats, GT, preferred_element_type=jnp.float32)            # (2R, H)
    return (x - bc[:R]) * bc[R:] * gamma + beta


def _silu(x):
    return x * jax.nn.sigmoid(x)


def _erf(x):
    # TODO(synk): exact erf (F.gelu default) approximated with Abramowitz-Stegun
    # 7.1.26 (|abs err| < 1.5e-7 ~ f32 eps); lax.erf may not lower in Mosaic.
    a1, a2, a3, a4, a5 = 0.254829592, -0.284496736, 1.421413741, -1.453152027, 1.061405429
    p = 0.3275911
    ax = jnp.abs(x)
    t = 1.0 / (1.0 + p * ax)
    poly = t * (a1 + t * (a2 + t * (a3 + t * (a4 + t * a5))))
    y = 1.0 - poly * jnp.exp(-ax * ax)
    return jnp.where(x >= 0, y, -y)


def _gelu_exact(x):
    return 0.5 * x * (1.0 + _erf(x * 0.7071067811865476))


# ----------------------------------------------------------------------------
# mLSTM: phase 1 — batched state-independent projections (row-tiled GEMMs)
# ----------------------------------------------------------------------------
def _mlstm_pre_kernel(x_ref, ln_g, ln_b, wul, bul, wur, bur, conv_c, conv_b,
                      wgc, bgc, wgl, bgl, gates_ref, post_ref, *, H):
    x = x_ref[...]                                                       # (R, D)
    x_norm = _layer_norm(x, ln_g[...], ln_b[...])
    x_up_left = jnp.dot(x_norm, wul[...], preferred_element_type=jnp.float32) + bul[...]
    x_up_right = jnp.dot(x_norm, wur[...], preferred_element_type=jnp.float32) + bur[...]
    # causal conv along the feature axis via the precomputed Toeplitz matrix
    x_conv = _silu(jnp.dot(x_up_left, conv_c[...],
                           preferred_element_type=jnp.float32) + conv_b[...])
    # fused gate GEMMs: [q | k/sqrt(hs) | i | f | skip] from x_conv, [v | o] from x_up_left
    g_conv = jnp.dot(x_conv, wgc[...], preferred_element_type=jnp.float32) + bgc[...]
    g_left = jnp.dot(x_up_left, wgl[...], preferred_element_type=jnp.float32) + bgl[...]
    # gate-index-major packing (free leading-axis views in the serial loop), no concat
    gates_ref[0] = g_conv[:, 0 * H:1 * H]                   # q
    gates_ref[1] = g_conv[:, 1 * H:2 * H]                   # k (1/sqrt(hs) folded in)
    gates_ref[2] = g_conv[:, 2 * H:3 * H]                   # i_tilde
    gates_ref[3] = g_conv[:, 3 * H:4 * H]                   # f_tilde
    gates_ref[4] = g_left[:, 0 * H:1 * H]                   # v
    gates_ref[5] = jax.nn.sigmoid(g_left[:, 1 * H:2 * H])   # o
    # post-pass operands (state-independent given h_t)
    post_ref[0] = g_conv[:, 4 * H:5 * H]                    # skip connection
    post_ref[1] = _silu(x_up_right)                         # silu(up_proj_right)


# ----------------------------------------------------------------------------
# mLSTM: phase 2 — serial exponential-gating recurrence (emits only h_t + state)
# ----------------------------------------------------------------------------
def _mlstm_rec_kernel(gates_ref, h_seq_ref, c_ref, n_ref, m_ref, *, K):
    @pl.when(pl.program_id(0) == 0)
    def _():
        c_ref[...] = jnp.zeros_like(c_ref)
        n_ref[...] = jnp.zeros_like(n_ref)
        m_ref[...] = jnp.zeros_like(m_ref)

    def step(kk, carry):
        c_prev, n_prev, m_prev = carry
        q = gates_ref[0, kk]
        k = gates_ref[1, kk]
        i_tilde = gates_ref[2, kk]
        f_tilde = gates_ref[3, kk]
        v = gates_ref[4, kk]
        o = gates_ref[5, kk]
        m_t = jnp.maximum(f_tilde + m_prev, i_tilde)
        i_g = jnp.exp(i_tilde - m_t)
        f_g = jnp.exp(f_tilde + m_prev - m_t)
        c_t = f_g * c_prev + i_g * (v * k)
        n_t = f_g * n_prev + i_g * k
        # torch: denom[h] = max_j |(n_t.T @ q)[h, j]|  (mixes batch rows, like the ref)
        # TODO(synk): for B < 8 a VPU outer-product formulation avoids this MXU round-trip.
        qtn = jax.lax.dot_general(q, n_t, dimension_numbers=(((0,), (0,)), ((), ())),
                                  preferred_element_type=jnp.float32)     # (H, H)
        denom = jnp.max(jnp.abs(qtn), axis=0, keepdims=True)              # (1, H)
        h_t = o * (c_t * q) / denom                      # exact division (matches torch)
        h_seq_ref[kk] = h_t
        return c_t, n_t, m_t

    carry0 = (c_ref[...], n_ref[...], m_ref[...])
    c_f, n_f, m_f = jax.lax.fori_loop(0, K, step, carry0, unroll=True)
    c_ref[...] = c_f
    n_ref[...] = n_f
    m_ref[...] = m_f


# ----------------------------------------------------------------------------
# mLSTM: phase 3 — batched post-pass (GroupNorm, skip, gating, down-proj, residual)
# ----------------------------------------------------------------------------
def _mlstm_post_kernel(h_ref, post_ref, x_ref, gn_g, gn_b, G, GT, wd, bd,
                       out_ref, *, inv_gs):
    out_norm = _group_norm(h_ref[...], G[...], GT[...], gn_g[...], gn_b[...], inv_gs)
    y = (out_norm + post_ref[0]) * post_ref[1]
    y = jnp.dot(y, wd[...], preferred_element_type=jnp.float32) + bd[...]
    out_ref[...] = y + x_ref[...]


# ----------------------------------------------------------------------------
# sLSTM: phase 1 — batched input-side gate halves
# ----------------------------------------------------------------------------
def _slstm_pre_kernel(x_ref, ln_g, ln_b, conv_c, conv_b,
                      w_norm, b_norm, w_conv, b_conv, gates_ref, *, H):
    x = x_ref[...]                                                       # (R, D)
    x_norm = _layer_norm(x, ln_g[...], ln_b[...])
    x_conv = _silu(jnp.dot(x_norm, conv_c[...],
                           preferred_element_type=jnp.float32) + conv_b[...])
    g_norm = jnp.dot(x_norm, w_norm[...], preferred_element_type=jnp.float32) + b_norm[...]
    g_conv = jnp.dot(x_conv, w_conv[...], preferred_element_type=jnp.float32) + b_conv[...]
    # [z_in | o_in | i_in | f_in] written as two sub-range stores (no concat copy)
    gates_ref[:, 0:2 * H] = g_norm
    gates_ref[:, 2 * H:4 * H] = g_conv


# ----------------------------------------------------------------------------
# sLSTM: phase 2 — recurrence (only h_prev @ R stays in the serial loop)
# ----------------------------------------------------------------------------
def _slstm_rec_kernel(gates_ref, rw_ref, rb_ref,
                      h_seq_ref, h_ref, c_ref, n_ref, m_ref, *, K, H):
    @pl.when(pl.program_id(0) == 0)
    def _():
        h_ref[...] = jnp.zeros_like(h_ref)
        c_ref[...] = jnp.zeros_like(c_ref)
        n_ref[...] = jnp.zeros_like(n_ref)
        m_ref[...] = jnp.zeros_like(m_ref)

    rw = rw_ref[...]                                   # (H, 4H), VMEM-resident
    rb = rb_ref[...]
    # TODO(synk): hold rw in MXU staging registers across steps for production H
    # (pltpu.matmul_push_rhs / matmul_acc_lhs / matmul_pop).

    def step(kk, carry):
        h_prev, c_prev, n_prev, m_prev = carry
        s = gates_ref[kk] + jnp.dot(h_prev, rw, preferred_element_type=jnp.float32) + rb
        z = jnp.tanh(s[:, 0 * H:1 * H])
        o = jax.nn.sigmoid(s[:, 1 * H:2 * H])
        i_tilde = s[:, 2 * H:3 * H]
        f_tilde = s[:, 3 * H:4 * H]
        m_t = jnp.maximum(f_tilde + m_prev, i_tilde)
        i_g = jnp.exp(i_tilde - m_t)
        f_g = jnp.exp(f_tilde + m_prev - m_t)
        c_t = f_g * c_prev + i_g * z
        n_t = f_g * n_prev + i_g
        h_t = o * c_t / n_t                            # exact division (matches torch)
        h_seq_ref[kk] = h_t
        return h_t, c_t, n_t, m_t

    carry0 = (h_ref[...], c_ref[...], n_ref[...], m_ref[...])
    h_f, c_f, n_f, m_f = jax.lax.fori_loop(0, K, step, carry0, unroll=True)
    h_ref[...] = h_f
    c_ref[...] = c_f
    n_ref[...] = n_f
    m_ref[...] = m_f


# ----------------------------------------------------------------------------
# sLSTM: phase 3 — batched post-pass (GroupNorm, up/GELU/down, residual)
# ----------------------------------------------------------------------------
def _slstm_post_kernel(h_ref, x_ref, gn_g, gn_b, G, GT, wl, bl, wr, br, wd, bd,
                       out_ref, *, inv_gs):
    out_norm = _group_norm(h_ref[...], G[...], GT[...], gn_g[...], gn_b[...], inv_gs)
    left = jnp.dot(out_norm, wl[...], preferred_element_type=jnp.float32) + bl[...]
    right = jnp.dot(out_norm, wr[...], preferred_element_type=jnp.float32) + br[...]
    y = left * _gelu_exact(right)
    y = jnp.dot(y, wd[...], preferred_element_type=jnp.float32) + bd[...]
    out_ref[...] = y + x_ref[...]


# ----------------------------------------------------------------------------
# pallas_call wrappers
# ----------------------------------------------------------------------------
_PARALLEL = pltpu.CompilerParams(dimension_semantics=("parallel",))
_SERIAL = pltpu.CompilerParams(dimension_semantics=("arbitrary",))


def _wspec(arr):
    # whole-weight block, constant index map -> fetched once, VMEM-resident
    nd = arr.ndim
    return pl.BlockSpec(arr.shape, lambda *_: (0,) * nd)


def _row_block(rows):
    # one row tile per grid step for the batched GEMM passes
    if rows <= 1024:
        return rows
    for cand in (1024, 512, 256, 128, 64, 32, 16, 8):
        if rows % cand == 0:
            return cand
    return rows


def _time_block(t):
    # timesteps folded into one grid step (amortizes ~0.35us/step grid overhead)
    for cand in (32, 16, 8, 4, 2, 1):
        if t % cand == 0:
            return cand
    return 1


def _mlstm_layer(x_seq, p, head_size):
    T, B, D = x_seq.shape
    H = p['gn_g'].shape[1]
    rows = T * B
    R = _row_block(rows)
    x_rows = x_seq.reshape(rows, D)

    # phase 1: row-tiled, pipelined precompute GEMMs
    wpre = [p['ln_g'], p['ln_b'], p['wul'], p['bul'], p['wur'], p['bur'],
            p['conv_c'], p['conv_b'], p['wg_conv'], p['bg_conv'],
            p['wg_left'], p['bg_left']]
    gates, post = pl.pallas_call(
        functools.partial(_mlstm_pre_kernel, H=H),
        grid=(rows // R,),
        in_specs=[pl.BlockSpec((R, D), lambda r: (r, 0))] + [_wspec(a) for a in wpre],
        out_specs=[pl.BlockSpec((6, R, H), lambda r: (0, r, 0)),
                   pl.BlockSpec((2, R, H), lambda r: (0, r, 0))],
        out_shape=[jax.ShapeDtypeStruct((6, rows, H), jnp.float32),
                   jax.ShapeDtypeStruct((2, rows, H), jnp.float32)],
        compiler_params=_PARALLEL,
    )(x_rows, *wpre)

    # phase 2: serial recurrence, K timesteps per grid step
    gates = gates.reshape(6, T, B, H)
    K = _time_block(T)
    h_seq, c_f, n_f, m_f = pl.pallas_call(
        functools.partial(_mlstm_rec_kernel, K=K),
        grid=(T // K,),
        in_specs=[pl.BlockSpec((6, K, B, H), lambda tb: (0, tb, 0, 0))],
        out_specs=[pl.BlockSpec((K, B, H), lambda tb: (tb, 0, 0)),
                   pl.BlockSpec((B, H), lambda tb: (0, 0)),
                   pl.BlockSpec((B, H), lambda tb: (0, 0)),
                   pl.BlockSpec((B, H), lambda tb: (0, 0))],
        out_shape=[jax.ShapeDtypeStruct((T, B, H), jnp.float32)]
                  + [jax.ShapeDtypeStruct((B, H), jnp.float32)] * 3,
        compiler_params=_SERIAL,
    )(gates)

    # phase 3: batched post-pass
    wpost = [p['gn_g'], p['gn_b'], p['G'], p['GT'], p['wd'], p['bd']]
    out = pl.pallas_call(
        functools.partial(_mlstm_post_kernel, inv_gs=1.0 / head_size),
        grid=(rows // R,),
        in_specs=[pl.BlockSpec((R, H), lambda r: (r, 0)),
                  pl.BlockSpec((2, R, H), lambda r: (0, r, 0)),
                  pl.BlockSpec((R, D), lambda r: (r, 0))] + [_wspec(a) for a in wpost],
        out_specs=pl.BlockSpec((R, D), lambda r: (r, 0)),
        out_shape=jax.ShapeDtypeStruct((rows, D), jnp.float32),
        compiler_params=_PARALLEL,
    )(h_seq.reshape(rows, H), post, x_rows, *wpost)

    return out.reshape(T, B, D), (h_seq[T - 1], c_f, n_f, m_f)


def _slstm_layer(x_seq, p, head_size):
    T, B, D = x_seq.shape
    H = p['gn_g'].shape[1]
    rows = T * B
    R = _row_block(rows)
    x_rows = x_seq.reshape(rows, D)

    # phase 1
    wpre = [p['ln_g'], p['ln_b'], p['conv_c'], p['conv_b'],
            p['w_norm'], p['b_norm'], p['w_conv'], p['b_conv']]
    gates = pl.pallas_call(
        functools.partial(_slstm_pre_kernel, H=H),
        grid=(rows // R,),
        in_specs=[pl.BlockSpec((R, D), lambda r: (r, 0))] + [_wspec(a) for a in wpre],
        out_specs=pl.BlockSpec((R, 4 * H), lambda r: (r, 0)),
        out_shape=jax.ShapeDtypeStruct((rows, 4 * H), jnp.float32),
        compiler_params=_PARALLEL,
    )(x_rows, *wpre)

    # phase 2
    gates = gates.reshape(T, B, 4 * H)
    K = _time_block(T)
    wrec = [p['rw'], p['rb']]
    h_seq, h_f, c_f, n_f, m_f = pl.pallas_call(
        functools.partial(_slstm_rec_kernel, K=K, H=H),
        grid=(T // K,),
        in_specs=[pl.BlockSpec((K, B, 4 * H), lambda tb: (tb, 0, 0))]
                 + [_wspec(a) for a in wrec],
        out_specs=[pl.BlockSpec((K, B, H), lambda tb: (tb, 0, 0))]
                  + [pl.BlockSpec((B, H), lambda tb: (0, 0))] * 4,
        out_shape=[jax.ShapeDtypeStruct((T, B, H), jnp.float32)]
                  + [jax.ShapeDtypeStruct((B, H), jnp.float32)] * 4,
        compiler_params=_SERIAL,
    )(gates, *wrec)

    # phase 3
    wpost = [p['gn_g'], p['gn_b'], p['G'], p['GT'],
             p['wl'], p['bl'], p['wr'], p['br'], p['wd'], p['bd']]
    out = pl.pallas_call(
        functools.partial(_slstm_post_kernel, inv_gs=1.0 / head_size),
        grid=(rows // R,),
        in_specs=[pl.BlockSpec((R, H), lambda r: (r, 0)),
                  pl.BlockSpec((R, D), lambda r: (r, 0))] + [_wspec(a) for a in wpost],
        out_specs=pl.BlockSpec((R, D), lambda r: (r, 0)),
        out_shape=jax.ShapeDtypeStruct((rows, D), jnp.float32),
        compiler_params=_PARALLEL,
    )(h_seq.reshape(rows, H), x_rows, *wpost)

    return out.reshape(T, B, D), (h_f, c_f, n_f, m_f)


# ----------------------------------------------------------------------------
# deterministic parameter construction (mirrors nn.Module __init__ shapes),
# fused at init time into the layouts the kernels consume
# ----------------------------------------------------------------------------
def _linear_init(key, fan_in, fan_out):
    kw, kb = jax.random.split(key)
    bound = 1.0 / (fan_in ** 0.5)
    w = jax.random.uniform(kw, (fan_in, fan_out), jnp.float32, -bound, bound)
    b = jax.random.uniform(kb, (1, fan_out), jnp.float32, -bound, bound)
    return w, b


def _conv_init(key, ks=4):
    kw, kb = jax.random.split(key)
    bound = 1.0 / (ks ** 0.5)            # in_channels = 1
    w = jax.random.uniform(kw, (ks,), jnp.float32, -bound, bound)
    b = jax.random.uniform(kb, (), jnp.float32, -bound, bound)
    return w, b


def _conv_toeplitz(w, L):
    # CausalConv1D(1,1,4, padding=3)[..., :-3] along the feature axis as x @ C:
    #   out[:, t] = sum_d w[d] * x[:, t - 3 + d]  (zero left padding)
    j = jnp.arange(L)[:, None]
    t = jnp.arange(L)[None, :]
    d = j - t + 3
    C = jnp.zeros((L, L), jnp.float32)
    for dd in range(4):
        C = jnp.where(d == dd, w[dd], C)
    return C


def _group_indicator(H, num_heads):
    hs = H // num_heads
    idx = jnp.arange(H)
    G = jnp.zeros((H, num_heads), jnp.float32).at[idx, idx // hs].set(1.0)
    return G, G.T


def init_mlstm_params(key, D, head_size, num_heads, proj_factor=2):
    H = head_size * num_heads
    Dp = int(D * proj_factor)
    ks = jax.random.split(key, 12)
    wul, bul = _linear_init(ks[0], D, Dp)
    wur, bur = _linear_init(ks[1], D, H)
    cw, cb = _conv_init(ks[2])
    wsk, bsk = _linear_init(ks[3], Dp, H)
    wq, bq = _linear_init(ks[4], Dp, H)      # BlockDiagonal == stacked full Linear
    wk, bk = _linear_init(ks[5], Dp, H)
    wv, bv = _linear_init(ks[6], Dp, H)
    wi, bi = _linear_init(ks[7], Dp, H)
    wf, bf = _linear_init(ks[8], Dp, H)
    wo, bo = _linear_init(ks[9], Dp, H)
    wd, bd = _linear_init(ks[10], H, D)
    scale = 1.0 / (head_size ** 0.5)         # fold k / sqrt(head_size) into W,b
    G, GT = _group_indicator(H, num_heads)
    return {
        'ln_g': jnp.ones((1, D), jnp.float32), 'ln_b': jnp.zeros((1, D), jnp.float32),
        'wul': wul, 'bul': bul, 'wur': wur, 'bur': bur,
        'conv_c': _conv_toeplitz(cw, Dp), 'conv_b': jnp.full((1, Dp), cb, jnp.float32),
        'wg_conv': jnp.concatenate([wq, wk * scale, wi, wf, wsk], axis=1),   # (Dp, 5H)
        'bg_conv': jnp.concatenate([bq, bk * scale, bi, bf, bsk], axis=1),
        'wg_left': jnp.concatenate([wv, wo], axis=1),                        # (Dp, 2H)
        'bg_left': jnp.concatenate([bv, bo], axis=1),
        'gn_g': jnp.ones((1, H), jnp.float32), 'gn_b': jnp.zeros((1, H), jnp.float32),
        'G': G, 'GT': GT, 'wd': wd, 'bd': bd,
    }


def init_slstm_params(key, D, head_size, num_heads, proj_factor=4 / 3):
    H = head_size * num_heads
    P = int(H * proj_factor)
    ks = jax.random.split(key, 13)
    cw, cb = _conv_init(ks[0])
    wz, bz = _linear_init(ks[1], D, H)
    wi, bi = _linear_init(ks[2], D, H)
    wf, bf = _linear_init(ks[3], D, H)
    wo, bo = _linear_init(ks[4], D, H)
    rz, brz = _linear_init(ks[5], H, H)
    ri, bri = _linear_init(ks[6], H, H)
    rf, brf = _linear_init(ks[7], H, H)
    ro, bro = _linear_init(ks[8], H, H)
    wl, bl = _linear_init(ks[9], H, P)
    wr, br = _linear_init(ks[10], H, P)
    wd, bd = _linear_init(ks[11], P, D)
    G, GT = _group_indicator(H, num_heads)
    return {
        'ln_g': jnp.ones((1, D), jnp.float32), 'ln_b': jnp.zeros((1, D), jnp.float32),
        'conv_c': _conv_toeplitz(cw, D), 'conv_b': jnp.full((1, D), cb, jnp.float32),
        'w_norm': jnp.concatenate([wz, wo], axis=1),   # (D, 2H): z_in, o_in from x_norm
        'b_norm': jnp.concatenate([bz, bo], axis=1),
        'w_conv': jnp.concatenate([wi, wf], axis=1),   # (D, 2H): i_in, f_in from x_conv
        'b_conv': jnp.concatenate([bi, bf], axis=1),
        'rw': jnp.concatenate([rz, ro, ri, rf], axis=1),  # (H, 4H)
        'rb': jnp.concatenate([brz, bro, bri, brf], axis=1),
        'gn_g': jnp.ones((1, H), jnp.float32), 'gn_b': jnp.zeros((1, H), jnp.float32),
        'G': G, 'GT': GT,
        'wl': wl, 'bl': bl, 'wr': wr, 'br': br, 'wd': wd, 'bd': bd,
    }


# ----------------------------------------------------------------------------
# xLSTM forward (matches torch xLSTM.forward, state=None, batch_first=False).
# Layer-by-layer over the full sequence == the per-timestep layer loop in the
# reference, since each layer's recurrent state is self-contained.
# ----------------------------------------------------------------------------
@functools.partial(jax.jit, static_argnames=('layer_types', 'head_size'))
def xlstm_forward(x, params_list, layer_types, head_size):
    seq = x
    finals = []
    for p, lt in zip(params_list, layer_types):
        if lt == 'm':
            seq, st = _mlstm_layer(seq, p, head_size)
        else:
            seq, st = _slstm_layer(seq, p, head_size)
        finals.append(st)
    # final state as tuple (h, c, n, m), each (num_layers, B, H), like torch
    final_state = tuple(
        jnp.stack([finals[l][k] for l in range(len(layer_types))]) for k in range(4))
    return seq, final_state


if __name__ == "__main__":
    key = jax.random.PRNGKey(0)
    input_size, head_size, num_heads = 32, 8, 4     # hidden_size = 32
    seq_len, batch = 8, 2
    layer_types = ('m', 's')

    k_x, k_m, k_s = jax.random.split(key, 3)
    x = jax.random.normal(k_x, (seq_len, batch, input_size), jnp.float32)
    params_list = [
        init_mlstm_params(k_m, input_size, head_size, num_heads, proj_factor=2),
        init_slstm_params(k_s, input_size, head_size, num_heads, proj_factor=4 / 3),
    ]

    out, state = xlstm_forward(x, params_list, layer_types, head_size)
    jax.block_until_ready(out)
    jax.block_until_ready(state)
    assert out.shape == (seq_len, batch, input_size)
    assert state[0].shape == (len(layer_types), batch, head_size * num_heads)
    print("KERNEL_OK")
</pallas_src>

<mosaic_0001>
module attributes {stable_mosaic.version = 11 : i64} {
  func.func @_mlstm_pre_kernel(%arg0: i32, %arg1: memref<16x32xf32, #tpu.memory_space<vmem>>, %arg2: memref<1x32xf32, #tpu.memory_space<vmem>>, %arg3: memref<1x32xf32, #tpu.memory_space<vmem>>, %arg4: memref<32x64xf32, #tpu.memory_space<vmem>>, %arg5: memref<1x64xf32, #tpu.memory_space<vmem>>, %arg6: memref<32x32xf32, #tpu.memory_space<vmem>>, %arg7: memref<1x32xf32, #tpu.memory_space<vmem>>, %arg8: memref<64x64xf32, #tpu.memory_space<vmem>>, %arg9: memref<1x64xf32, #tpu.memory_space<vmem>>, %arg10: memref<64x160xf32, #tpu.memory_space<vmem>>, %arg11: memref<1x160xf32, #tpu.memory_space<vmem>>, %arg12: memref<64x64xf32, #tpu.memory_space<vmem>>, %arg13: memref<1x64xf32, #tpu.memory_space<vmem>>, %arg14: memref<6x16x32xf32, #tpu.memory_space<vmem>>, %arg15: memref<2x16x32xf32, #tpu.memory_space<vmem>>) attributes {dimension_semantics = [#tpu.dimension_semantics<parallel>], iteration_bounds = array<i64: 1>, scalar_prefetch = 0 : i64, scratch_operands = 0 : i64, tpu.core_type = #tpu.core_type<tc>, window_params = [{transform_indices = @transform_0, window_bounds = array<i64: 16, 32>}, {pipeline_mode = #tpu.pipeline_mode<synchronous>, transform_indices = @transform_1, window_bounds = array<i64: 1, 32>}, {pipeline_mode = #tpu.pipeline_mode<synchronous>, transform_indices = @transform_2, window_bounds = array<i64: 1, 32>}, {pipeline_mode = #tpu.pipeline_mode<synchronous>, transform_indices = @transform_3, window_bounds = array<i64: 32, 64>}, {pipeline_mode = #tpu.pipeline_mode<synchronous>, transform_indices = @transform_4, window_bounds = array<i64: 1, 64>}, {pipeline_mode = #tpu.pipeline_mode<synchronous>, transform_indices = @transform_5, window_bounds = array<i64: 32, 32>}, {pipeline_mode = #tpu.pipeline_mode<synchronous>, transform_indices = @transform_6, window_bounds = array<i64: 1, 32>}, {pipeline_mode = #tpu.pipeline_mode<synchronous>, transform_indices = @transform_7, window_bounds = array<i64: 64, 64>}, {pipeline_mode = #tpu.pipeline_mode<synchronous>, transform_indices = @transform_8, window_bounds = array<i64: 1, 64>}, {pipeline_mode = #tpu.pipeline_mode<synchronous>, transform_indices = @transform_9, window_bounds = array<i64: 64, 160>}, {pipeline_mode = #tpu.pipeline_mode<synchronous>, transform_indices = @transform_10, window_bounds = array<i64: 1, 160>}, {pipeline_mode = #tpu.pipeline_mode<synchronous>, transform_indices = @transform_11, window_bounds = array<i64: 64, 64>}, {pipeline_mode = #tpu.pipeline_mode<synchronous>, transform_indices = @transform_12, window_bounds = array<i64: 1, 64>}, {transform_indices = @transform_13, window_bounds = array<i64: 6, 16, 32>}, {transform_indices = @transform_14, window_bounds = array<i64: 2, 16, 32>}]} {
    %c0 = arith.constant 0 : index
    %c0_0 = arith.constant 0 : index
    %0 = vector.load %arg1[%c0, %c0_0] : memref<16x32xf32, #tpu.memory_space<vmem>>, vector<16x32xf32>
    %c0_1 = arith.constant 0 : index
    %c0_2 = arith.constant 0 : index
    %1 = vector.load %arg2[%c0_1, %c0_2] : memref<1x32xf32, #tpu.memory_space<vmem>>, vector<1x32xf32>
    %c0_3 = arith.constant 0 : index
    %c0_4 = arith.constant 0 : index
    %2 = vector.load %arg3[%c0_3, %c0_4] : memref<1x32xf32, #tpu.memory_space<vmem>>, vector<1x32xf32>
    %cst = arith.constant dense<0.000000e+00> : vector<16xf32>
    %3 = vector.multi_reduction <add>, %0, %cst [1] : vector<16x32xf32> to vector<16xf32>
    %4 = vector.shape_cast %3 : vector<16xf32> to vector<16x1xf32>
    %cst_5 = arith.constant 3.200000e+01 : f32
    %5 = vector.broadcast %cst_5 : f32 to vector<16x1xf32>
    %6 = arith.divf %4, %5 : vector<16x1xf32>
    %7 = vector.broadcast %6 : vector<16x1xf32> to vector<16x32xf32>
    %8 = arith.subf %0, %7 : vector<16x32xf32>
    %9 = arith.mulf %8, %8 : vector<16x32xf32>
    %cst_6 = arith.constant dense<0.000000e+00> : vector<16xf32>
    %10 = vector.multi_reduction <add>, %9, %cst_6 [1] : vector<16x32xf32> to vector<16xf32>
    %11 = vector.shape_cast %10 : vector<16xf32> to vector<16x1xf32>
    %cst_7 = arith.constant 3.200000e+01 : f32
    %12 = vector.broadcast %cst_7 : f32 to vector<16x1xf32>
    %13 = arith.divf %11, %12 : vector<16x1xf32>
    %14 = vector.broadcast %6 : vector<16x1xf32> to vector<16x32xf32>
    %15 = arith.subf %0, %14 : vector<16x32xf32>
    %cst_8 = arith.constant 9.99999974E-6 : f32
    %16 = vector.broadcast %cst_8 : f32 to vector<16x1xf32>
    %17 = arith.addf %13, %16 : vector<16x1xf32>
    %18 = math.rsqrt %17 : vector<16x1xf32>
    %19 = vector.broadcast %18 : vector<16x1xf32> to vector<16x32xf32>
    %20 = arith.mulf %15, %19 : vector<16x32xf32>
    %21 = vector.broadcast %1 : vector<1x32xf32> to vector<16x32xf32>
    %22 = arith.mulf %20, %21 : vector<16x32xf32>
    %23 = vector.broadcast %2 : vector<1x32xf32> to vector<16x32xf32>
    %24 = arith.addf %22, %23 : vector<16x32xf32>
    %c0_9 = arith.constant 0 : index
    %c0_10 = arith.constant 0 : index
    %25 = vector.load %arg4[%c0_9, %c0_10] : memref<32x64xf32, #tpu.memory_space<vmem>>, vector<32x64xf32>
    %cst_11 = arith.constant dense<0.000000e+00> : vector<16x64xf32>
    %26 = tpu.matmul %24, %25, %cst_11 {dimension_numbers = #tpu.dot_dimension_numbers<[1], [0], [0], [1], [0, 0, 1, 1], [], []>} : vector<16x32xf32>, vector<32x64xf32>, vector<16x64xf32> -> vector<16x64xf32>
    %c0_12 = arith.constant 0 : index
    %c0_13 = arith.constant 0 : index
    %27 = vector.load %arg5[%c0_12, %c0_13] : memref<1x64xf32, #tpu.memory_space<vmem>>, vector<1x64xf32>
    %28 = vector.broadcast %27 : vector<1x64xf32> to vector<16x64xf32>
    %29 = arith.addf %26, %28 : vector<16x64xf32>
    %c0_14 = arith.constant 0 : index
    %c0_15 = arith.constant 0 : index
    %30 = vector.load %arg6[%c0_14, %c0_15] : memref<32x32xf32, #tpu.memory_space<vmem>>, vector<32x32xf32>
    %cst_16 = arith.constant dense<0.000000e+00> : vector<16x32xf32>
    %31 = tpu.matmul %24, %30, %cst_16 {dimension_numbers = #tpu.dot_dimension_numbers<[1], [0], [0], [1], [0, 0, 1, 1], [], []>} : vector<16x32xf32>, vector<32x32xf32>, vector<16x32xf32> -> vector<16x32xf32>
    %c0_17 = arith.constant 0 : index
    %c0_18 = arith.constant 0 : index
    %32 = vector.load %arg7[%c0_17, %c0_18] : memref<1x32xf32, #tpu.memory_space<vmem>>, vector<1x32xf32>
    %33 = vector.broadcast %32 : vector<1x32xf32> to vector<16x32xf32>
    %34 = arith.addf %31, %33 : vector<16x32xf32>
    %c0_19 = arith.constant 0 : index
    %c0_20 = arith.constant 0 : index
    %35 = vector.load %arg8[%c0_19, %c0_20] : memref<64x64xf32, #tpu.memory_space<vmem>>, vector<64x64xf32>
    %cst_21 = arith.constant dense<0.000000e+00> : vector<16x64xf32>
    %36 = tpu.matmul %29, %35, %cst_21 {dimension_numbers = #tpu.dot_dimension_numbers<[1], [0], [0], [1], [0, 0, 1, 1], [], []>} : vector<16x64xf32>, vector<64x64xf32>, vector<16x64xf32> -> vector<16x64xf32>
    %c0_22 = arith.constant 0 : index
    %c0_23 = arith.constant 0 : index
    %37 = vector.load %arg9[%c0_22, %c0_23] : memref<1x64xf32, #tpu.memory_space<vmem>>, vector<1x64xf32>
    %38 = vector.broadcast %37 : vector<1x64xf32> to vector<16x64xf32>
    %39 = arith.addf %36, %38 : vector<16x64xf32>
    %40 = arith.negf %39 : vector<16x64xf32>
    %41 = math.exp %40 : vector<16x64xf32>
    %cst_24 = arith.constant 1.000000e+00 : f32
    %42 = vector.broadcast %cst_24 : f32 to vector<16x64xf32>
    %43 = arith.addf %42, %41 : vector<16x64xf32>
    %44 = arith.divf %42, %43 : vector<16x64xf32>
    %45 = arith.mulf %39, %44 : vector<16x64xf32>
    %c0_25 = arith.constant 0 : index
    %c0_26 = arith.constant 0 : index
    %46 = vector.load %arg10[%c0_25, %c0_26] : memref<64x160xf32, #tpu.memory_space<vmem>>, vector<64x160xf32>
    %cst_27 = arith.constant dense<0.000000e+00> : vector<16x160xf32>
    %47 = tpu.matmul %45, %46, %cst_27 {dimension_numbers = #tpu.dot_dimension_numbers<[1], [0], [0], [1], [0, 0, 1, 1], [], []>} : vector<16x64xf32>, vector<64x160xf32>, vector<16x160xf32> -> vector<16x160xf32>
    %c0_28 = arith.constant 0 : index
    %c0_29 = arith.constant 0 : index
    %48 = vector.load %arg11[%c0_28, %c0_29] : memref<1x160xf32, #tpu.memory_space<vmem>>, vector<1x160xf32>
    %49 = vector.broadcast %48 : vector<1x160xf32> to vector<16x160xf32>
    %50 = arith.addf %47, %49 : vector<16x160xf32>
    %c0_30 = arith.constant 0 : index
    %c0_31 = arith.constant 0 : index
    %51 = vector.load %arg12[%c0_30, %c0_31] : memref<64x64xf32, #tpu.memory_space<vmem>>, vector<64x64xf32>
    %cst_32 = arith.constant dense<0.000000e+00> : vector<16x64xf32>
    %52 = tpu.matmul %29, %51, %cst_32 {dimension_numbers = #tpu.dot_dimension_numbers<[1], [0], [0], [1], [0, 0, 1, 1], [], []>} : vector<16x64xf32>, vector<64x64xf32>, vector<16x64xf32> -> vector<16x64xf32>
    %c0_33 = arith.constant 0 : index
    %c0_34 = arith.constant 0 : index
    %53 = vector.load %arg13[%c0_33, %c0_34] : memref<1x64xf32, #tpu.memory_space<vmem>>, vector<1x64xf32>
    %54 = vector.broadcast %53 : vector<1x64xf32> to vector<16x64xf32>
    %55 = arith.addf %52, %54 : vector<16x64xf32>
    %56 = vector.extract_strided_slice %50 {offsets = [0, 0], sizes = [16, 32], strides = [1, 1]} : vector<16x160xf32> to vector<16x32xf32>
    %c0_35 = arith.constant 0 : index
    %c0_36 = arith.constant 0 : index
    %c0_37 = arith.constant 0 : index
    %57 = vector.load %arg14[%c0_35, %c0_36, %c0_37] : memref<6x16x32xf32, #tpu.memory_space<vmem>>, vector<1x16x32xf32>
    %58 = vector.shape_cast %57 : vector<1x16x32xf32> to vector<16x32xf32>
    %59 = vector.shape_cast %56 : vector<16x32xf32> to vector<1x16x32xf32>
    tpu.vector_store %arg14[%c0_35, %c0_36, %c0_37], %59 {strides = array<i32>} : memref<6x16x32xf32, #tpu.memory_space<vmem>>, vector<1x16x32xf32>,
    %60 = vector.extract_strided_slice %50 {offsets = [0, 32], sizes = [16, 32], strides = [1, 1]} : vector<16x160xf32> to vector<16x32xf32>
    %c1 = arith.constant 1 : index
    %c0_38 = arith.constant 0 : index
    %c0_39 = arith.constant 0 : index
    %61 = vector.load %arg14[%c1, %c0_38, %c0_39] : memref<6x16x32xf32, #tpu.memory_space<vmem>>, vector<1x16x32xf32>
    %62 = vector.shape_cast %61 : vector<1x16x32xf32> to vector<16x32xf32>
    %63 = vector.shape_cast %60 : vector<16x32xf32> to vector<1x16x32xf32>
    tpu.vector_store %arg14[%c1, %c0_38, %c0_39], %63 {strides = array<i32>} : memref<6x16x32xf32, #tpu.memory_space<vmem>>, vector<1x16x32xf32>,
    %64 = vector.extract_strided_slice %50 {offsets = [0, 64], sizes = [16, 32], strides = [1, 1]} : vector<16x160xf32> to vector<16x32xf32>
    %c2 = arith.constant 2 : index
    %c0_40 = arith.constant 0 : index
    %c0_41 = arith.constant 0 : index
    %65 = vector.load %arg14[%c2, %c0_40, %c0_41] : memref<6x16x32xf32, #tpu.memory_space<vmem>>, vector<1x16x32xf32>
    %66 = vector.shape_cast %65 : vector<1x16x32xf32> to vector<16x32xf32>
    %67 = vector.shape_cast %64 : vector<16x32xf32> to vector<1x16x32xf32>
    tpu.vector_store %arg14[%c2, %c0_40, %c0_41], %67 {strides = array<i32>} : memref<6x16x32xf32, #tpu.memory_space<vmem>>, vector<1x16x32xf32>,
    %68 = vector.extract_strided_slice %50 {offsets = [0, 96], sizes = [16, 32], strides = [1, 1]} : vector<16x160xf32> to vector<16x32xf32>
    %c3 = arith.constant 3 : index
    %c0_42 = arith.constant 0 : index
    %c0_43 = arith.constant 0 : index
    %69 = vector.load %arg14[%c3, %c0_42, %c0_43] : memref<6x16x32xf32, #tpu.memory_space<vmem>>, vector<1x16x32xf32>
    %70 = vector.shape_cast %69 : vector<1x16x32xf32> to vector<16x32xf32>
    %71 = vector.shape_cast %68 : vector<16x32xf32> to vector<1x16x32xf32>
    tpu.vector_store %arg14[%c3, %c0_42, %c0_43], %71 {strides = array<i32>} : memref<6x16x32xf32, #tpu.memory_space<vmem>>, vector<1x16x32xf32>,
    %72 = vector.extract_strided_slice %55 {offsets = [0, 0], sizes = [16, 32], strides = [1, 1]} : vector<16x64xf32> to vector<16x32xf32>
    %c4 = arith.constant 4 : index
    %c0_44 = arith.constant 0 : index
    %c0_45 = arith.constant 0 : index
    %73 = vector.load %arg14[%c4, %c0_44, %c0_45] : memref<6x16x32xf32, #tpu.memory_space<vmem>>, vector<1x16x32xf32>
    %74 = vector.shape_cast %73 : vector<1x16x32xf32> to vector<16x32xf32>
    %75 = vector.shape_cast %72 : vector<16x32xf32> to vector<1x16x32xf32>
    tpu.vector_store %arg14[%c4, %c0_44, %c0_45], %75 {strides = array<i32>} : memref<6x16x32xf32, #tpu.memory_space<vmem>>, vector<1x16x32xf32>,
    %76 = vector.extract_strided_slice %55 {offsets = [0, 32], sizes = [16, 32], strides = [1, 1]} : vector<16x64xf32> to vector<16x32xf32>
    %77 = arith.negf %76 : vector<16x32xf32>
    %78 = math.exp %77 : vector<16x32xf32>
    %cst_46 = arith.constant 1.000000e+00 : f32
    %79 = vector.broadcast %cst_46 : f32 to vector<16x32xf32>
    %80 = arith.addf %79, %78 : vector<16x32xf32>
    %81 = arith.divf %79, %80 : vector<16x32xf32>
    %c5 = arith.constant 5 : index
    %c0_47 = arith.constant 0 : index
    %c0_48 = arith.constant 0 : index
    %82 = vector.load %arg14[%c5, %c0_47, %c0_48] : memref<6x16x32xf32, #tpu.memory_space<vmem>>, vector<1x16x32xf32>
    %83 = vector.shape_cast %82 : vector<1x16x32xf32> to vector<16x32xf32>
    %84 = vector.shape_cast %81 : vector<16x32xf32> to vector<1x16x32xf32>
    tpu.vector_store %arg14[%c5, %c0_47, %c0_48], %84 {strides = array<i32>} : memref<6x16x32xf32, #tpu.memory_space<vmem>>, vector<1x16x32xf32>,
    %85 = vector.extract_strided_slice %50 {offsets = [0, 128], sizes = [16, 32], strides = [1, 1]} : vector<16x160xf32> to vector<16x32xf32>
    %c0_49 = arith.constant 0 : index
    %c0_50 = arith.constant 0 : index
    %c0_51 = arith.constant 0 : index
    %86 = vector.load %arg15[%c0_49, %c0_50, %c0_51] : memref<2x16x32xf32, #tpu.memory_space<vmem>>, vector<1x16x32xf32>
    %87 = vector.shape_cast %86 : vector<1x16x32xf32> to vector<16x32xf32>
    %88 = vector.shape_cast %85 : vector<16x32xf32> to vector<1x16x32xf32>
    tpu.vector_store %arg15[%c0_49, %c0_50, %c0_51], %88 {strides = array<i32>} : memref<2x16x32xf32, #tpu.memory_space<vmem>>, vector<1x16x32xf32>,
    %89 = arith.negf %34 : vector<16x32xf32>
    %90 = math.exp %89 : vector<16x32xf32>
    %cst_52 = arith.constant 1.000000e+00 : f32
    %91 = vector.broadcast %cst_52 : f32 to vector<16x32xf32>
    %92 = arith.addf %91, %90 : vector<16x32xf32>
    %93 = arith.divf %91, %92 : vector<16x32xf32>
    %94 = arith.mulf %34, %93 : vector<16x32xf32>
    %c1_53 = arith.constant 1 : index
    %c0_54 = arith.constant 0 : index
    %c0_55 = arith.constant 0 : index
    %95 = vector.load %arg15[%c1_53, %c0_54, %c0_55] : memref<2x16x32xf32, #tpu.memory_space<vmem>>, vector<1x16x32xf32>
    %96 = vector.shape_cast %95 : vector<1x16x32xf32> to vector<16x32xf32>
    %97 = vector.shape_cast %94 : vector<16x32xf32> to vector<1x16x32xf32>
    tpu.vector_store %arg15[%c1_53, %c0_54, %c0_55], %97 {strides = array<i32>} : memref<2x16x32xf32, #tpu.memory_space<vmem>>, vector<1x16x32xf32>,
    return
  }
  func.func @transform_0(%arg0: i32) -> (i32, i32) {
    %c0_i32 = arith.constant 0 : i32
    %c0_i32_0 = arith.constant 0 : i32
    return %arg0, %c0_i32 : i32, i32
  }
  func.func @transform_1(%arg0: i32) -> (i32, i32) {
    %c0_i32 = arith.constant 0 : i32
    %c0_i32_0 = arith.constant 0 : i32
    %c0_i32_1 = arith.constant 0 : i32
    return %c0_i32, %c0_i32_0 : i32, i32
  }
  func.func @transform_2(%arg0: i32) -> (i32, i32) {
    %c0_i32 = arith.constant 0 : i32
    %c0_i32_0 = arith.constant 0 : i32
    %c0_i32_1 = arith.constant 0 : i32
    return %c0_i32, %c0_i32_0 : i32, i32
  }
  func.func @transform_3(%arg0: i32) -> (i32, i32) {
    %c0_i32 = arith.constant 0 : i32
    %c0_i32_0 = arith.constant 0 : i32
    %c0_i32_1 = arith.constant 0 : i32
    return %c0_i32, %c0_i32_0 : i32, i32
  }
  func.func @transform_4(%arg0: i32) -> (i32, i32) {
    %c0_i32 = arith.constant 0 : i32
    %c0_i32_0 = arith.constant 0 : i32
    %c0_i32_1 = arith.constant 0 : i32
    return %c0_i32, %c0_i32_0 : i32, i32
  }
  func.func @transform_5(%arg0: i32) -> (i32, i32) {
    %c0_i32 = arith.constant 0 : i32
    %c0_i32_0 = arith.constant 0 : i32
    %c0_i32_1 = arith.constant 0 : i32
    return %c0_i32, %c0_i32_0 : i32, i32
  }
  func.func @transform_6(%arg0: i32) -> (i32, i32) {
    %c0_i32 = arith.constant 0 : i32
    %c0_i32_0 = arith.constant 0 : i32
    %c0_i32_1 = arith.constant 0 : i32
    return %c0_i32, %c0_i32_0 : i32, i32
  }
  func.func @transform_7(%arg0: i32) -> (i32, i32) {
    %c0_i32 = arith.constant 0 : i32
    %c0_i32_0 = arith.constant 0 : i32
    %c0_i32_1 = arith.constant 0 : i32
    return %c0_i32, %c0_i32_0 : i32, i32
  }
  func.func @transform_8(%arg0: i32) -> (i32, i32) {
    %c0_i32 = arith.constant 0 : i32
    %c0_i32_0 = arith.constant 0 : i32
    %c0_i32_1 = arith.constant 0 : i32
    return %c0_i32, %c0_i32_0 : i32, i32
  }
  func.func @transform_9(%arg0: i32) -> (i32, i32) {
    %c0_i32 = arith.constant 0 : i32
    %c0_i32_0 = arith.constant 0 : i32
    %c0_i32_1 = arith.constant 0 : i32
    return %c0_i32, %c0_i32_0 : i32, i32
  }
  func.func @transform_10(%arg0: i32) -> (i32, i32) {
    %c0_i32 = arith.constant 0 : i32
    %c0_i32_0 = arith.constant 0 : i32
    %c0_i32_1 = arith.constant 0 : i32
    return %c0_i32, %c0_i32_0 : i32, i32
  }
  func.func @transform_11(%arg0: i32) -> (i32, i32) {
    %c0_i32 = arith.constant 0 : i32
    %c0_i32_0 = arith.constant 0 : i32
    %c0_i32_1 = arith.constant 0 : i32
    return %c0_i32, %c0_i32_0 : i32, i32
  }
  func.func @transform_12(%arg0: i32) -> (i32, i32) {
    %c0_i32 = arith.constant 0 : i32
    %c0_i32_0 = arith.constant 0 : i32
    %c0_i32_1 = arith.constant 0 : i32
    return %c0_i32, %c0_i32_0 : i32, i32
  }
  func.func @transform_13(%arg0: i32) -> (i32, i32, i32) {
    %c0_i32 = arith.constant 0 : i32
    %c0_i32_0 = arith.constant 0 : i32
    %c0_i32_1 = arith.constant 0 : i32
    return %c0_i32, %arg0, %c0_i32_0 : i32, i32, i32
  }
  func.func @transform_14(%arg0: i32) -> (i32, i32, i32) {
    %c0_i32 = arith.constant 0 : i32
    %c0_i32_0 = arith.constant 0 : i32
    %c0_i32_1 = arith.constant 0 : i32
    return %c0_i32, %arg0, %c0_i32_0 : i32, i32, i32
  }
}

module attributes {stable_mosaic.version = 11 : i64} {
  func.func @_mlstm_post_kernel(%arg0: i32, %arg1: memref<16x32xf32, #tpu.memory_space<vmem>>, %arg2: memref<2x16x32xf32, #tpu.memory_space<vmem>>, %arg3: memref<16x32xf32, #tpu.memory_space<vmem>>, %arg4: memref<1x32xf32, #tpu.memory_space<vmem>>, %arg5: memref<1x32xf32, #tpu.memory_space<vmem>>, %arg6: memref<32x4xf32, #tpu.memory_space<vmem>>, %arg7: memref<4x32xf32, #tpu.memory_space<vmem>>, %arg8: memref<32x32xf32, #tpu.memory_space<vmem>>, %arg9: memref<1x32xf32, #tpu.memory_space<vmem>>, %arg10: memref<16x32xf32, #tpu.memory_space<vmem>>) attributes {dimension_semantics = [#tpu.dimension_semantics<parallel>], iteration_bounds = array<i64: 1>, scalar_prefetch = 0 : i64, scratch_operands = 0 : i64, tpu.core_type = #tpu.core_type<tc>, window_params = [{transform_indices = @transform_0, window_bounds = array<i64: 16, 32>}, {transform_indices = @transform_1, window_bounds = array<i64: 2, 16, 32>}, {transform_indices = @transform_2, window_bounds = array<i64: 16, 32>}, {pipeline_mode = #tpu.pipeline_mode<synchronous>, transform_indices = @transform_3, window_bounds = array<i64: 1, 32>}, {pipeline_mode = #tpu.pipeline_mode<synchronous>, transform_indices = @transform_4, window_bounds = array<i64: 1, 32>}, {pipeline_mode = #tpu.pipeline_mode<synchronous>, transform_indices = @transform_5, window_bounds = array<i64: 32, 4>}, {pipeline_mode = #tpu.pipeline_mode<synchronous>, transform_indices = @transform_6, window_bounds = array<i64: 4, 32>}, {pipeline_mode = #tpu.pipeline_mode<synchronous>, transform_indices = @transform_7, window_bounds = array<i64: 32, 32>}, {pipeline_mode = #tpu.pipeline_mode<synchronous>, transform_indices = @transform_8, window_bounds = array<i64: 1, 32>}, {transform_indices = @transform_9, window_bounds = array<i64: 16, 32>}]} {
    %c0 = arith.constant 0 : index
    %c0_0 = arith.constant 0 : index
    %0 = vector.load %arg1[%c0, %c0_0] : memref<16x32xf32, #tpu.memory_space<vmem>>, vector<16x32xf32>
    %c0_1 = arith.constant 0 : index
    %c0_2 = arith.constant 0 : index
    %1 = vector.load %arg6[%c0_1, %c0_2] : memref<32x4xf32, #tpu.memory_space<vmem>>, vector<32x4xf32>
    %c0_3 = arith.constant 0 : index
    %c0_4 = arith.constant 0 : index
    %2 = vector.load %arg7[%c0_3, %c0_4] : memref<4x32xf32, #tpu.memory_space<vmem>>, vector<4x32xf32>
    %c0_5 = arith.constant 0 : index
    %c0_6 = arith.constant 0 : index
    %3 = vector.load %arg4[%c0_5, %c0_6] : memref<1x32xf32, #tpu.memory_space<vmem>>, vector<1x32xf32>
    %c0_7 = arith.constant 0 : index
    %c0_8 = arith.constant 0 : index
    %4 = vector.load %arg5[%c0_7, %c0_8] : memref<1x32xf32, #tpu.memory_space<vmem>>, vector<1x32xf32>
    %5 = arith.mulf %0, %0 : vector<16x32xf32>
    %6 = tpu.concatenate %0, %5 in 0 : vector<16x32xf32>, vector<16x32xf32> -> vector<32x32xf32>
    %cst = arith.constant dense<0.000000e+00> : vector<32x4xf32>
    %7 = tpu.matmul %6, %1, %cst {dimension_numbers = #tpu.dot_dimension_numbers<[1], [0], [0], [1], [0, 0, 1, 1], [], []>} : vector<32x32xf32>, vector<32x4xf32>, vector<32x4xf32> -> vector<32x4xf32>
    %cst_9 = arith.constant 1.250000e-01 : f32
    %8 = vector.broadcast %cst_9 : f32 to vector<32x4xf32>
    %9 = arith.mulf %7, %8 : vector<32x4xf32>
    %10 = vector.extract_strided_slice %9 {offsets = [0, 0], sizes = [16, 4], strides = [1, 1]} : vector<32x4xf32> to vector<16x4xf32>
    %11 = vector.extract_strided_slice %9 {offsets = [16, 0], sizes = [16, 4], strides = [1, 1]} : vector<32x4xf32> to vector<16x4xf32>
    %12 = arith.mulf %10, %10 : vector<16x4xf32>
    %13 = arith.subf %11, %12 : vector<16x4xf32>
    %cst_10 = arith.constant 9.99999974E-6 : f32
    %14 = vector.broadcast %cst_10 : f32 to vector<16x4xf32>
    %15 = arith.addf %13, %14 : vector<16x4xf32>
    %16 = math.rsqrt %15 : vector<16x4xf32>
    %17 = tpu.concatenate %10, %16 in 0 : vector<16x4xf32>, vector<16x4xf32> -> vector<32x4xf32>
    %cst_11 = arith.constant dense<0.000000e+00> : vector<32x32xf32>
    %18 = tpu.matmul %17, %2, %cst_11 {dimension_numbers = #tpu.dot_dimension_numbers<[1], [0], [0], [1], [0, 0, 1, 1], [], []>} : vector<32x4xf32>, vector<4x32xf32>, vector<32x32xf32> -> vector<32x32xf32>
    %19 = vector.extract_strided_slice %18 {offsets = [0, 0], sizes = [16, 32], strides = [1, 1]} : vector<32x32xf32> to vector<16x32xf32>
    %20 = arith.subf %0, %19 : vector<16x32xf32>
    %21 = vector.extract_strided_slice %18 {offsets = [16, 0], sizes = [16, 32], strides = [1, 1]} : vector<32x32xf32> to vector<16x32xf32>
    %22 = arith.mulf %20, %21 : vector<16x32xf32>
    %23 = vector.broadcast %3 : vector<1x32xf32> to vector<16x32xf32>
    %24 = arith.mulf %22, %23 : vector<16x32xf32>
    %25 = vector.broadcast %4 : vector<1x32xf32> to vector<16x32xf32>
    %26 = arith.addf %24, %25 : vector<16x32xf32>
    %c0_12 = arith.constant 0 : index
    %c0_13 = arith.constant 0 : index
    %c0_14 = arith.constant 0 : index
    %27 = vector.load %arg2[%c0_12, %c0_13, %c0_14] : memref<2x16x32xf32, #tpu.memory_space<vmem>>, vector<1x16x32xf32>
    %28 = vector.shape_cast %27 : vector<1x16x32xf32> to vector<16x32xf32>
    %29 = arith.addf %26, %28 : vector<16x32xf32>
    %c1 = arith.constant 1 : index
    %c0_15 = arith.constant 0 : index
    %c0_16 = arith.constant 0 : index
    %30 = vector.load %arg2[%c1, %c0_15, %c0_16] : memref<2x16x32xf32, #tpu.memory_space<vmem>>, vector<1x16x32xf32>
    %31 = vector.shape_cast %30 : vector<1x16x32xf32> to vector<16x32xf32>
    %32 = arith.mulf %29, %31 : vector<16x32xf32>
    %c0_17 = arith.constant 0 : index
    %c0_18 = arith.constant 0 : index
    %33 = vector.load %arg8[%c0_17, %c0_18] : memref<32x32xf32, #tpu.memory_space<vmem>>, vector<32x32xf32>
    %cst_19 = arith.constant dense<0.000000e+00> : vector<16x32xf32>
    %34 = tpu.matmul %32, %33, %cst_19 {dimension_numbers = #tpu.dot_dimension_numbers<[1], [0], [0], [1], [0, 0, 1, 1], [], []>} : vector<16x32xf32>, vector<32x32xf32>, vector<16x32xf32> -> vector<16x32xf32>
    %c0_20 = arith.constant 0 : index
    %c0_21 = arith.constant 0 : index
    %35 = vector.load %arg9[%c0_20, %c0_21] : memref<1x32xf32, #tpu.memory_space<vmem>>, vector<1x32xf32>
    %36 = vector.broadcast %35 : vector<1x32xf32> to vector<16x32xf32>
    %37 = arith.addf %34, %36 : vector<16x32xf32>
    %c0_22 = arith.constant 0 : index
    %c0_23 = arith.constant 0 : index
    %38 = vector.load %arg3[%c0_22, %c0_23] : memref<16x32xf32, #tpu.memory_space<vmem>>, vector<16x32xf32>
    %39 = arith.addf %37, %38 : vector<16x32xf32>
    %c0_24 = arith.constant 0 : index
    %c0_25 = arith.constant 0 : index
    %40 = vector.load %arg10[%c0_24, %c0_25] : memref<16x32xf32, #tpu.memory_space<vmem>>, vector<16x32xf32>
    tpu.vector_store %arg10[%c0_24, %c0_25], %39 {strides = array<i32>} : memref<16x32xf32, #tpu.memory_space<vmem>>, vector<16x32xf32>,
    return
  }
  func.func @transform_0(%arg0: i32) -> (i32, i32) {
    %c0_i32 = arith.constant 0 : i32
    %c0_i32_0 = arith.constant 0 : i32
    return %arg0, %c0_i32 : i32, i32
  }
  func.func @transform_1(%arg0: i32) -> (i32, i32, i32) {
    %c0_i32 = arith.constant 0 : i32
    %c0_i32_0 = arith.constant 0 : i32
    %c0_i32_1 = arith.constant 0 : i32
    return %c0_i32, %arg0, %c0_i32_0 : i32, i32, i32
  }
  func.func @transform_2(%arg0: i32) -> (i32, i32) {
    %c0_i32 = arith.constant 0 : i32
    %c0_i32_0 = arith.constant 0 : i32
    return %arg0, %c0_i32 : i32, i32
  }
  func.func @transform_3(%arg0: i32) -> (i32, i32) {
    %c0_i32 = arith.constant 0 : i32
    %c0_i32_0 = arith.constant 0 : i32
    %c0_i32_1 = arith.constant 0 : i32
    return %c0_i32, %c0_i32_0 : i32, i32
  }
  func.func @transform_4(%arg0: i32) -> (i32, i32) {
    %c0_i32 = arith.constant 0 : i32
    %c0_i32_0 = arith.constant 0 : i32
    %c0_i32_1 = arith.constant 0 : i32
    return %c0_i32, %c0_i32_0 : i32, i32
  }
  func.func @transform_5(%arg0: i32) -> (i32, i32) {
    %c0_i32 = arith.constant 0 : i32
    %c0_i32_0 = arith.constant 0 : i32
    %c0_i32_1 = arith.constant 0 : i32
    return %c0_i32, %c0_i32_0 : i32, i32
  }
  func.func @transform_6(%arg0: i32) -> (i32, i32) {
    %c0_i32 = arith.constant 0 : i32
    %c0_i32_0 = arith.constant 0 : i32
    %c0_i32_1 = arith.constant 0 : i32
    return %c0_i32, %c0_i32_0 : i32, i32
  }
  func.func @transform_7(%arg0: i32) -> (i32, i32) {
    %c0_i32 = arith.constant 0 : i32
    %c0_i32_0 = arith.constant 0 : i32
    %c0_i32_1 = arith.constant 0 : i32
    return %c0_i32, %c0_i32_0 : i32, i32
  }
  func.func @transform_8(%arg0: i32) -> (i32, i32) {
    %c0_i32 = arith.constant 0 : i32
    %c0_i32_0 = arith.constant 0 : i32
    %c0_i32_1 = arith.constant 0 : i32
    return %c0_i32, %c0_i32_0 : i32, i32
  }
  func.func @transform_9(%arg0: i32) -> (i32, i32) {
    %c0_i32 = arith.constant 0 : i32
    %c0_i32_0 = arith.constant 0 : i32
    return %arg0, %c0_i32 : i32, i32
  }
}

module attributes {stable_mosaic.version = 11 : i64} {
  func.func @_mlstm_rec_kernel(%arg0: i32, %arg1: memref<6x8x2x32xf32, #tpu.memory_space<vmem>>, %arg2: memref<8x2x32xf32, #tpu.memory_space<vmem>>, %arg3: memref<2x32xf32, #tpu.memory_space<vmem>>, %arg4: memref<2x32xf32, #tpu.memory_space<vmem>>, %arg5: memref<2x32xf32, #tpu.memory_space<vmem>>) attributes {dimension_semantics = [#tpu.dimension_semantics<arbitrary>], iteration_bounds = array<i64: 1>, scalar_prefetch = 0 : i64, scratch_operands = 0 : i64, tpu.core_type = #tpu.core_type<tc>, window_params = [{transform_indices = @transform_0, window_bounds = array<i64: 6, 8, 2, 32>}, {transform_indices = @transform_1, window_bounds = array<i64: 8, 2, 32>}, {pipeline_mode = #tpu.pipeline_mode<synchronous>, transform_indices = @transform_2, window_bounds = array<i64: 2, 32>}, {pipeline_mode = #tpu.pipeline_mode<synchronous>, transform_indices = @transform_3, window_bounds = array<i64: 2, 32>}, {pipeline_mode = #tpu.pipeline_mode<synchronous>, transform_indices = @transform_4, window_bounds = array<i64: 2, 32>}]} {
    %c0_i32 = arith.constant 0 : i32
    %0 = arith.cmpi eq, %arg0, %c0_i32 : i32
    %1 = arith.extui %0 : i1 to i32
    %c0_i32_0 = arith.constant 0 : i32
    %2 = arith.cmpi ne, %1, %c0_i32_0 : i32
    scf.if %2 {
      %cst_183 = arith.constant 0.000000e+00 : f32
      %361 = vector.broadcast %cst_183 : f32 to vector<2x32xf32>
      %c0_184 = arith.constant 0 : index
      %c0_185 = arith.constant 0 : index
      %362 = vector.load %arg3[%c0_184, %c0_185] : memref<2x32xf32, #tpu.memory_space<vmem>>, vector<2x32xf32>
      tpu.vector_store %arg3[%c0_184, %c0_185], %361 {strides = array<i32>} : memref<2x32xf32, #tpu.memory_space<vmem>>, vector<2x32xf32>,
      %cst_186 = arith.constant 0.000000e+00 : f32
      %363 = vector.broadcast %cst_186 : f32 to vector<2x32xf32>
      %c0_187 = arith.constant 0 : index
      %c0_188 = arith.constant 0 : index
      %364 = vector.load %arg4[%c0_187, %c0_188] : memref<2x32xf32, #tpu.memory_space<vmem>>, vector<2x32xf32>
      tpu.vector_store %arg4[%c0_187, %c0_188], %363 {strides = array<i32>} : memref<2x32xf32, #tpu.memory_space<vmem>>, vector<2x32xf32>,
      %cst_189 = arith.constant 0.000000e+00 : f32
      %365 = vector.broadcast %cst_189 : f32 to vector<2x32xf32>
      %c0_190 = arith.constant 0 : index
      %c0_191 = arith.constant 0 : index
      %366 = vector.load %arg5[%c0_190, %c0_191] : memref<2x32xf32, #tpu.memory_space<vmem>>, vector<2x32xf32>
      tpu.vector_store %arg5[%c0_190, %c0_191], %365 {strides = array<i32>} : memref<2x32xf32, #tpu.memory_space<vmem>>, vector<2x32xf32>,
    } else {
    }
    %c0 = arith.constant 0 : index
    %c0_1 = arith.constant 0 : index
    %3 = vector.load %arg3[%c0, %c0_1] : memref<2x32xf32, #tpu.memory_space<vmem>>, vector<2x32xf32>
    %c0_2 = arith.constant 0 : index
    %c0_3 = arith.constant 0 : index
    %4 = vector.load %arg4[%c0_2, %c0_3] : memref<2x32xf32, #tpu.memory_space<vmem>>, vector<2x32xf32>
    %c0_4 = arith.constant 0 : index
    %c0_5 = arith.constant 0 : index
    %5 = vector.load %arg5[%c0_4, %c0_5] : memref<2x32xf32, #tpu.memory_space<vmem>>, vector<2x32xf32>
    %c0_i32_6 = arith.constant 0 : i32
    %c0_7 = arith.constant 0 : index
    %6 = arith.index_cast %c0_i32_6 : i32 to index
    %c0_8 = arith.constant 0 : index
    %c0_9 = arith.constant 0 : index
    %7 = vector.load %arg1[%c0_7, %6, %c0_8, %c0_9] : memref<6x8x2x32xf32, #tpu.memory_space<vmem>>, vector<1x1x2x32xf32>
    %8 = vector.shape_cast %7 : vector<1x1x2x32xf32> to vector<2x32xf32>
    %c1 = arith.constant 1 : index
    %9 = arith.index_cast %c0_i32_6 : i32 to index
    %c0_10 = arith.constant 0 : index
    %c0_11 = arith.constant 0 : index
    %10 = vector.load %arg1[%c1, %9, %c0_10, %c0_11] : memref<6x8x2x32xf32, #tpu.memory_space<vmem>>, vector<1x1x2x32xf32>
    %11 = vector.shape_cast %10 : vector<1x1x2x32xf32> to vector<2x32xf32>
    %c2 = arith.constant 2 : index
    %12 = arith.index_cast %c0_i32_6 : i32 to index
    %c0_12 = arith.constant 0 : index
    %c0_13 = arith.constant 0 : index
    %13 = vector.load %arg1[%c2, %12, %c0_12, %c0_13] : memref<6x8x2x32xf32, #tpu.memory_space<vmem>>, vector<1x1x2x32xf32>
    %14 = vector.shape_cast %13 : vector<1x1x2x32xf32> to vector<2x32xf32>
    %c3 = arith.constant 3 : index
    %15 = arith.index_cast %c0_i32_6 : i32 to index
    %c0_14 = arith.constant 0 : index
    %c0_15 = arith.constant 0 : index
    %16 = vector.load %arg1[%c3, %15, %c0_14, %c0_15] : memref<6x8x2x32xf32, #tpu.memory_space<vmem>>, vector<1x1x2x32xf32>
    %17 = vector.shape_cast %16 : vector<1x1x2x32xf32> to vector<2x32xf32>
    %c4 = arith.constant 4 : index
    %18 = arith.index_cast %c0_i32_6 : i32 to index
    %c0_16 = arith.constant 0 : index
    %c0_17 = arith.constant 0 : index
    %19 = vector.load %arg1[%c4, %18, %c0_16, %c0_17] : memref<6x8x2x32xf32, #tpu.memory_space<vmem>>, vector<1x1x2x32xf32>
    %20 = vector.shape_cast %19 : vector<1x1x2x32xf32> to vector<2x32xf32>
    %c5 = arith.constant 5 : index
    %21 = arith.index_cast %c0_i32_6 : i32 to index
    %c0_18 = arith.constant 0 : index
    %c0_19 = arith.constant 0 : index
    %22 = vector.load %arg1[%c5, %21, %c0_18, %c0_19] : memref<6x8x2x32xf32, #tpu.memory_space<vmem>>, vector<1x1x2x32xf32>
    %23 = vector.shape_cast %22 : vector<1x1x2x32xf32> to vector<2x32xf32>
    %24 = arith.addf %17, %5 : vector<2x32xf32>
    %25 = arith.maximumf %24, %14 : vector<2x32xf32>
    %26 = arith.subf %14, %25 : vector<2x32xf32>
    %27 = math.exp %26 : vector<2x32xf32>
    %28 = arith.addf %17, %5 : vector<2x32xf32>
    %29 = arith.subf %28, %25 : vector<2x32xf32>
    %30 = math.exp %29 : vector<2x32xf32>
    %31 = arith.mulf %30, %3 : vector<2x32xf32>
    %32 = arith.mulf %20, %11 : vector<2x32xf32>
    %33 = arith.mulf %27, %32 : vector<2x32xf32>
    %34 = arith.addf %31, %33 : vector<2x32xf32>
    %35 = arith.mulf %30, %4 : vector<2x32xf32>
    %36 = arith.mulf %27, %11 : vector<2x32xf32>
    %37 = arith.addf %35, %36 : vector<2x32xf32>
    %cst = arith.constant dense<0.000000e+00> : vector<32x32xf32>
    %38 = tpu.matmul %8, %37, %cst {dimension_numbers = #tpu.dot_dimension_numbers<[0], [0], [1], [1], [0, 1, 1, 1], [], []>} : vector<2x32xf32>, vector<2x32xf32>, vector<32x32xf32> -> vector<32x32xf32>
    %39 = math.absf %38 : vector<32x32xf32>
    %cst_20 = arith.constant dense<0xFF800000> : vector<32xf32>
    %40 = vector.multi_reduction <maximumf>, %39, %cst_20 [0] : vector<32x32xf32> to vector<32xf32>
    %41 = vector.shape_cast %40 : vector<32xf32> to vector<1x32xf32>
    %42 = arith.mulf %34, %8 : vector<2x32xf32>
    %43 = arith.mulf %23, %42 : vector<2x32xf32>
    %44 = vector.broadcast %41 : vector<1x32xf32> to vector<2x32xf32>
    %45 = arith.divf %43, %44 : vector<2x32xf32>
    %46 = arith.index_cast %c0_i32_6 : i32 to index
    %c0_21 = arith.constant 0 : index
    %c0_22 = arith.constant 0 : index
    %47 = vector.load %arg2[%46, %c0_21, %c0_22] : memref<8x2x32xf32, #tpu.memory_space<vmem>>, vector<1x2x32xf32>
    %48 = vector.shape_cast %47 : vector<1x2x32xf32> to vector<2x32xf32>
    %49 = vector.shape_cast %45 : vector<2x32xf32> to vector<1x2x32xf32>
    tpu.vector_store %arg2[%46, %c0_21, %c0_22], %49 {strides = array<i32>} : memref<8x2x32xf32, #tpu.memory_space<vmem>>, vector<1x2x32xf32>,
    %c1_i32 = arith.constant 1 : i32
    %c0_23 = arith.constant 0 : index
    %50 = arith.index_cast %c1_i32 : i32 to index
    %c0_24 = arith.constant 0 : index
    %c0_25 = arith.constant 0 : index
    %51 = vector.load %arg1[%c0_23, %50, %c0_24, %c0_25] : memref<6x8x2x32xf32, #tpu.memory_space<vmem>>, vector<1x1x2x32xf32>
    %52 = vector.shape_cast %51 : vector<1x1x2x32xf32> to vector<2x32xf32>
    %c1_26 = arith.constant 1 : index
    %53 = arith.index_cast %c1_i32 : i32 to index
    %c0_27 = arith.constant 0 : index
    %c0_28 = arith.constant 0 : index
    %54 = vector.load %arg1[%c1_26, %53, %c0_27, %c0_28] : memref<6x8x2x32xf32, #tpu.memory_space<vmem>>, vector<1x1x2x32xf32>
    %55 = vector.shape_cast %54 : vector<1x1x2x32xf32> to vector<2x32xf32>
    %c2_29 = arith.constant 2 : index
    %56 = arith.index_cast %c1_i32 : i32 to index
    %c0_30 = arith.constant 0 : index
    %c0_31 = arith.constant 0 : index
    %57 = vector.load %arg1[%c2_29, %56, %c0_30, %c0_31] : memref<6x8x2x32xf32, #tpu.memory_space<vmem>>, vector<1x1x2x32xf32>
    %58 = vector.shape_cast %57 : vector<1x1x2x32xf32> to vector<2x32xf32>
    %c3_32 = arith.constant 3 : index
    %59 = arith.index_cast %c1_i32 : i32 to index
    %c0_33 = arith.constant 0 : index
    %c0_34 = arith.constant 0 : index
    %60 = vector.load %arg1[%c3_32, %59, %c0_33, %c0_34] : memref<6x8x2x32xf32, #tpu.memory_space<vmem>>, vector<1x1x2x32xf32>
    %61 = vector.shape_cast %60 : vector<1x1x2x32xf32> to vector<2x32xf32>
    %c4_35 = arith.constant 4 : index
    %62 = arith.index_cast %c1_i32 : i32 to index
    %c0_36 = arith.constant 0 : index
    %c0_37 = arith.constant 0 : index
    %63 = vector.load %arg1[%c4_35, %62, %c0_36, %c0_37] : memref<6x8x2x32xf32, #tpu.memory_space<vmem>>, vector<1x1x2x32xf32>
    %64 = vector.shape_cast %63 : vector<1x1x2x32xf32> to vector<2x32xf32>
    %c5_38 = arith.constant 5 : index
    %65 = arith.index_cast %c1_i32 : i32 to index
    %c0_39 = arith.constant 0 : index
    %c0_40 = arith.constant 0 : index
    %66 = vector.load %arg1[%c5_38, %65, %c0_39, %c0_40] : memref<6x8x2x32xf32, #tpu.memory_space<vmem>>, vector<1x1x2x32xf32>
    %67 = vector.shape_cast %66 : vector<1x1x2x32xf32> to vector<2x32xf32>
    %68 = arith.addf %61, %25 : vector<2x32xf32>
    %69 = arith.maximumf %68, %58 : vector<2x32xf32>
    %70 = arith.subf %58, %69 : vector<2x32xf32>
    %71 = math.exp %70 : vector<2x32xf32>
    %72 = arith.addf %61, %25 : vector<2x32xf32>
    %73 = arith.subf %72, %69 : vector<2x32xf32>
    %74 = math.exp %73 : vector<2x32xf32>
    %75 = arith.mulf %74, %34 : vector<2x32xf32>
    %76 = arith.mulf %64, %55 : vector<2x32xf32>
    %77 = arith.mulf %71, %76 : vector<2x32xf32>
    %78 = arith.addf %75, %77 : vector<2x32xf32>
    %79 = arith.mulf %74, %37 : vector<2x32xf32>
    %80 = arith.mulf %71, %55 : vector<2x32xf32>
    %81 = arith.addf %79, %80 : vector<2x32xf32>
    %cst_41 = arith.constant dense<0.000000e+00> : vector<32x32xf32>
    %82 = tpu.matmul %52, %81, %cst_41 {dimension_numbers = #tpu.dot_dimension_numbers<[0], [0], [1], [1], [0, 1, 1, 1], [], []>} : vector<2x32xf32>, vector<2x32xf32>, vector<32x32xf32> -> vector<32x32xf32>
    %83 = math.absf %82 : vector<32x32xf32>
    %cst_42 = arith.constant dense<0xFF800000> : vector<32xf32>
    %84 = vector.multi_reduction <maximumf>, %83, %cst_42 [0] : vector<32x32xf32> to vector<32xf32>
    %85 = vector.shape_cast %84 : vector<32xf32> to vector<1x32xf32>
    %86 = arith.mulf %78, %52 : vector<2x32xf32>
    %87 = arith.mulf %67, %86 : vector<2x32xf32>
    %88 = vector.broadcast %85 : vector<1x32xf32> to vector<2x32xf32>
    %89 = arith.divf %87, %88 : vector<2x32xf32>
    %90 = arith.index_cast %c1_i32 : i32 to index
    %c0_43 = arith.constant 0 : index
    %c0_44 = arith.constant 0 : index
    %91 = vector.load %arg2[%90, %c0_43, %c0_44] : memref<8x2x32xf32, #tpu.memory_space<vmem>>, vector<1x2x32xf32>
    %92 = vector.shape_cast %91 : vector<1x2x32xf32> to vector<2x32xf32>
    %93 = vector.shape_cast %89 : vector<2x32xf32> to vector<1x2x32xf32>
    tpu.vector_store %arg2[%90, %c0_43, %c0_44], %93 {strides = array<i32>} : memref<8x2x32xf32, #tpu.memory_space<vmem>>, vector<1x2x32xf32>,
    %c2_i32 = arith.constant 2 : i32
    %c0_45 = arith.constant 0 : index
    %94 = arith.index_cast %c2_i32 : i32 to index
    %c0_46 = arith.constant 0 : index
    %c0_47 = arith.constant 0 : index
    %95 = vector.load %arg1[%c0_45, %94, %c0_46, %c0_47] : memref<6x8x2x32xf32, #tpu.memory_space<vmem>>, vector<1x1x2x32xf32>
    %96 = vector.shape_cast %95 : vector<1x1x2x32xf32> to vector<2x32xf32>
    %c1_48 = arith.constant 1 : index
    %97 = arith.index_cast %c2_i32 : i32 to index
    %c0_49 = arith.constant 0 : index
    %c0_50 = arith.constant 0 : index
    %98 = vector.load %arg1[%c1_48, %97, %c0_49, %c0_50] : memref<6x8x2x32xf32, #tpu.memory_space<vmem>>, vector<1x1x2x32xf32>
    %99 = vector.shape_cast %98 : vector<1x1x2x32xf32> to vector<2x32xf32>
    %c2_51 = arith.constant 2 : index
    %100 = arith.index_cast %c2_i32 : i32 to index
    %c0_52 = arith.constant 0 : index
    %c0_53 = arith.constant 0 : index
    %101 = vector.load %arg1[%c2_51, %100, %c0_52, %c0_53] : memref<6x8x2x32xf32, #tpu.memory_space<vmem>>, vector<1x1x2x32xf32>
    %102 = vector.shape_cast %101 : vector<1x1x2x32xf32> to vector<2x32xf32>
    %c3_54 = arith.constant 3 : index
    %103 = arith.index_cast %c2_i32 : i32 to index
    %c0_55 = arith.constant 0 : index
    %c0_56 = arith.constant 0 : index
    %104 = vector.load %arg1[%c3_54, %103, %c0_55, %c0_56] : memref<6x8x2x32xf32, #tpu.memory_space<vmem>>, vector<1x1x2x32xf32>
    %105 = vector.shape_cast %104 : vector<1x1x2x32xf32> to vector<2x32xf32>
    %c4_57 = arith.constant 4 : index
    %106 = arith.index_cast %c2_i32 : i32 to index
    %c0_58 = arith.constant 0 : index
    %c0_59 = arith.constant 0 : index
    %107 = vector.load %arg1[%c4_57, %106, %c0_58, %c0_59] : memref<6x8x2x32xf32, #tpu.memory_space<vmem>>, vector<1x1x2x32xf32>
    %108 = vector.shape_cast %107 : vector<1x1x2x32xf32> to vector<2x32xf32>
    %c5_60 = arith.constant 5 : index
    %109 = arith.index_cast %c2_i32 : i32 to index
    %c0_61 = arith.constant 0 : index
    %c0_62 = arith.constant 0 : index
    %110 = vector.load %arg1[%c5_60, %109, %c0_61, %c0_62] : memref<6x8x2x32xf32, #tpu.memory_space<vmem>>, vector<1x1x2x32xf32>
    %111 = vector.shape_cast %110 : vector<1x1x2x32xf32> to vector<2x32xf32>
    %112 = arith.addf %105, %69 : vector<2x32xf32>
    %113 = arith.maximumf %112, %102 : vector<2x32xf32>
    %114 = arith.subf %102, %113 : vector<2x32xf32>
    %115 = math.exp %114 : vector<2x32xf32>
    %116 = arith.addf %105, %69 : vector<2x32xf32>
    %117 = arith.subf %116, %113 : vector<2x32xf32>
    %118 = math.exp %117 : vector<2x32xf32>
    %119 = arith.mulf %118, %78 : vector<2x32xf32>
    %120 = arith.mulf %108, %99 : vector<2x32xf32>
    %121 = arith.mulf %115, %120 : vector<2x32xf32>
    %122 = arith.addf %119, %121 : vector<2x32xf32>
    %123 = arith.mulf %118, %81 : vector<2x32xf32>
    %124 = arith.mulf %115, %99 : vector<2x32xf32>
    %125 = arith.addf %123, %124 : vector<2x32xf32>
    %cst_63 = arith.constant dense<0.000000e+00> : vector<32x32xf32>
    %126 = tpu.matmul %96, %125, %cst_63 {dimension_numbers = #tpu.dot_dimension_numbers<[0], [0], [1], [1], [0, 1, 1, 1], [], []>} : vector<2x32xf32>, vector<2x32xf32>, vector<32x32xf32> -> vector<32x32xf32>
    %127 = math.absf %126 : vector<32x32xf32>
    %cst_64 = arith.constant dense<0xFF800000> : vector<32xf32>
    %128 = vector.multi_reduction <maximumf>, %127, %cst_64 [0] : vector<32x32xf32> to vector<32xf32>
    %129 = vector.shape_cast %128 : vector<32xf32> to vector<1x32xf32>
    %130 = arith.mulf %122, %96 : vector<2x32xf32>
    %131 = arith.mulf %111, %130 : vector<2x32xf32>
    %132 = vector.broadcast %129 : vector<1x32xf32> to vector<2x32xf32>
    %133 = arith.divf %131, %132 : vector<2x32xf32>
    %134 = arith.index_cast %c2_i32 : i32 to index
    %c0_65 = arith.constant 0 : index
    %c0_66 = arith.constant 0 : index
    %135 = vector.load %arg2[%134, %c0_65, %c0_66] : memref<8x2x32xf32, #tpu.memory_space<vmem>>, vector<1x2x32xf32>
    %136 = vector.shape_cast %135 : vector<1x2x32xf32> to vector<2x32xf32>
    %137 = vector.shape_cast %133 : vector<2x32xf32> to vector<1x2x32xf32>
    tpu.vector_store %arg2[%134, %c0_65, %c0_66], %137 {strides = array<i32>} : memref<8x2x32xf32, #tpu.memory_space<vmem>>, vector<1x2x32xf32>,
    %c3_i32 = arith.constant 3 : i32
    %c0_67 = arith.constant 0 : index
    %138 = arith.index_cast %c3_i32 : i32 to index
    %c0_68 = arith.constant 0 : index
    %c0_69 = arith.constant 0 : index
    %139 = vector.load %arg1[%c0_67, %138, %c0_68, %c0_69] : memref<6x8x2x32xf32, #tpu.memory_space<vmem>>, vector<1x1x2x32xf32>
    %140 = vector.shape_cast %139 : vector<1x1x2x32xf32> to vector<2x32xf32>
    %c1_70 = arith.constant 1 : index
    %141 = arith.index_cast %c3_i32 : i32 to index
    %c0_71 = arith.constant 0 : index
    %c0_72 = arith.constant 0 : index
    %142 = vector.load %arg1[%c1_70, %141, %c0_71, %c0_72] : memref<6x8x2x32xf32, #tpu.memory_space<vmem>>, vector<1x1x2x32xf32>
    %143 = vector.shape_cast %142 : vector<1x1x2x32xf32> to vector<2x32xf32>
    %c2_73 = arith.constant 2 : index
    %144 = arith.index_cast %c3_i32 : i32 to index
    %c0_74 = arith.constant 0 : index
    %c0_75 = arith.constant 0 : index
    %145 = vector.load %arg1[%c2_73, %144, %c0_74, %c0_75] : memref<6x8x2x32xf32, #tpu.memory_space<vmem>>, vector<1x1x2x32xf32>
    %146 = vector.shape_cast %145 : vector<1x1x2x32xf32> to vector<2x32xf32>
    %c3_76 = arith.constant 3 : index
    %147 = arith.index_cast %c3_i32 : i32 to index
    %c0_77 = arith.constant 0 : index
    %c0_78 = arith.constant 0 : index
    %148 = vector.load %arg1[%c3_76, %147, %c0_77, %c0_78] : memref<6x8x2x32xf32, #tpu.memory_space<vmem>>, vector<1x1x2x32xf32>
    %149 = vector.shape_cast %148 : vector<1x1x2x32xf32> to vector<2x32xf32>
    %c4_79 = arith.constant 4 : index
    %150 = arith.index_cast %c3_i32 : i32 to index
    %c0_80 = arith.constant 0 : index
    %c0_81 = arith.constant 0 : index
    %151 = vector.load %arg1[%c4_79, %150, %c0_80, %c0_81] : memref<6x8x2x32xf32, #tpu.memory_space<vmem>>, vector<1x1x2x32xf32>
    %152 = vector.shape_cast %151 : vector<1x1x2x32xf32> to vector<2x32xf32>
    %c5_82 = arith.constant 5 : index
    %153 = arith.index_cast %c3_i32 : i32 to index
    %c0_83 = arith.constant 0 : index
    %c0_84 = arith.constant 0 : index
    %154 = vector.load %arg1[%c5_82, %153, %c0_83, %c0_84] : memref<6x8x2x32xf32, #tpu.memory_space<vmem>>, vector<1x1x2x32xf32>
    %155 = vector.shape_cast %154 : vector<1x1x2x32xf32> to vector<2x32xf32>
    %156 = arith.addf %149, %113 : vector<2x32xf32>
    %157 = arith.maximumf %156, %146 : vector<2x32xf32>
    %158 = arith.subf %146, %157 : vector<2x32xf32>
    %159 = math.exp %158 : vector<2x32xf32>
    %160 = arith.addf %149, %113 : vector<2x32xf32>
    %161 = arith.subf %160, %157 : vector<2x32xf32>
    %162 = math.exp %161 : vector<2x32xf32>
    %163 = arith.mulf %162, %122 : vector<2x32xf32>
    %164 = arith.mulf %152, %143 : vector<2x32xf32>
    %165 = arith.mulf %159, %164 : vector<2x32xf32>
    %166 = arith.addf %163, %165 : vector<2x32xf32>
    %167 = arith.mulf %162, %125 : vector<2x32xf32>
    %168 = arith.mulf %159, %143 : vector<2x32xf32>
    %169 = arith.addf %167, %168 : vector<2x32xf32>
    %cst_85 = arith.constant dense<0.000000e+00> : vector<32x32xf32>
    %170 = tpu.matmul %140, %169, %cst_85 {dimension_numbers = #tpu.dot_dimension_numbers<[0], [0], [1], [1], [0, 1, 1, 1], [], []>} : vector<2x32xf32>, vector<2x32xf32>, vector<32x32xf32> -> vector<32x32xf32>
    %171 = math.absf %170 : vector<32x32xf32>
    %cst_86 = arith.constant dense<0xFF800000> : vector<32xf32>
    %172 = vector.multi_reduction <maximumf>, %171, %cst_86 [0] : vector<32x32xf32> to vector<32xf32>
    %173 = vector.shape_cast %172 : vector<32xf32> to vector<1x32xf32>
    %174 = arith.mulf %166, %140 : vector<2x32xf32>
    %175 = arith.mulf %155, %174 : vector<2x32xf32>
    %176 = vector.broadcast %173 : vector<1x32xf32> to vector<2x32xf32>
    %177 = arith.divf %175, %176 : vector<2x32xf32>
    %178 = arith.index_cast %c3_i32 : i32 to index
    %c0_87 = arith.constant 0 : index
    %c0_88 = arith.constant 0 : index
    %179 = vector.load %arg2[%178, %c0_87, %c0_88] : memref<8x2x32xf32, #tpu.memory_space<vmem>>, vector<1x2x32xf32>
    %180 = vector.shape_cast %179 : vector<1x2x32xf32> to vector<2x32xf32>
    %181 = vector.shape_cast %177 : vector<2x32xf32> to vector<1x2x32xf32>
    tpu.vector_store %arg2[%178, %c0_87, %c0_88], %181 {strides = array<i32>} : memref<8x2x32xf32, #tpu.memory_space<vmem>>, vector<1x2x32xf32>,
    %c4_i32 = arith.constant 4 : i32
    %c0_89 = arith.constant 0 : index
    %182 = arith.index_cast %c4_i32 : i32 to index
    %c0_90 = arith.constant 0 : index
    %c0_91 = arith.constant 0 : index
    %183 = vector.load %arg1[%c0_89, %182, %c0_90, %c0_91] : memref<6x8x2x32xf32, #tpu.memory_space<vmem>>, vector<1x1x2x32xf32>
    %184 = vector.shape_cast %183 : vector<1x1x2x32xf32> to vector<2x32xf32>
    %c1_92 = arith.constant 1 : index
    %185 = arith.index_cast %c4_i32 : i32 to index
    %c0_93 = arith.constant 0 : index
    %c0_94 = arith.constant 0 : index
    %186 = vector.load %arg1[%c1_92, %185, %c0_93, %c0_94] : memref<6x8x2x32xf32, #tpu.memory_space<vmem>>, vector<1x1x2x32xf32>
    %187 = vector.shape_cast %186 : vector<1x1x2x32xf32> to vector<2x32xf32>
    %c2_95 = arith.constant 2 : index
    %188 = arith.index_cast %c4_i32 : i32 to index
    %c0_96 = arith.constant 0 : index
    %c0_97 = arith.constant 0 : index
    %189 = vector.load %arg1[%c2_95, %188, %c0_96, %c0_97] : memref<6x8x2x32xf32, #tpu.memory_space<vmem>>, vector<1x1x2x32xf32>
    %190 = vector.shape_cast %189 : vector<1x1x2x32xf32> to vector<2x32xf32>
    %c3_98 = arith.constant 3 : index
    %191 = arith.index_cast %c4_i32 : i32 to index
    %c0_99 = arith.constant 0 : index
    %c0_100 = arith.constant 0 : index
    %192 = vector.load %arg1[%c3_98, %191, %c0_99, %c0_100] : memref<6x8x2x32xf32, #tpu.memory_space<vmem>>, vector<1x1x2x32xf32>
    %193 = vector.shape_cast %192 : vector<1x1x2x32xf32> to vector<2x32xf32>
    %c4_101 = arith.constant 4 : index
    %194 = arith.index_cast %c4_i32 : i32 to index
    %c0_102 = arith.constant 0 : index
    %c0_103 = arith.constant 0 : index
    %195 = vector.load %arg1[%c4_101, %194, %c0_102, %c0_103] : memref<6x8x2x32xf32, #tpu.memory_space<vmem>>, vector<1x1x2x32xf32>
    %196 = vector.shape_cast %195 : vector<1x1x2x32xf32> to vector<2x32xf32>
    %c5_104 = arith.constant 5 : index
    %197 = arith.index_cast %c4_i32 : i32 to index
    %c0_105 = arith.constant 0 : index
    %c0_106 = arith.constant 0 : index
    %198 = vector.load %arg1[%c5_104, %197, %c0_105, %c0_106] : memref<6x8x2x32xf32, #tpu.memory_space<vmem>>, vector<1x1x2x32xf32>
    %199 = vector.shape_cast %198 : vector<1x1x2x32xf32> to vector<2x32xf32>
    %200 = arith.addf %193, %157 : vector<2x32xf32>
    %201 = arith.maximumf %200, %190 : vector<2x32xf32>
    %202 = arith.subf %190, %201 : vector<2x32xf32>
    %203 = math.exp %202 : vector<2x32xf32>
    %204 = arith.addf %193, %157 : vector<2x32xf32>
    %205 = arith.subf %204, %201 : vector<2x32xf32>
    %206 = math.exp %205 : vector<2x32xf32>
    %207 = arith.mulf %206, %166 : vector<2x32xf32>
    %208 = arith.mulf %196, %187 : vector<2x32xf32>
    %209 = arith.mulf %203, %208 : vector<2x32xf32>
    %210 = arith.addf %207, %209 : vector<2x32xf32>
    %211 = arith.mulf %206, %169 : vector<2x32xf32>
    %212 = arith.mulf %203, %187 : vector<2x32xf32>
    %213 = arith.addf %211, %212 : vector<2x32xf32>
    %cst_107 = arith.constant dense<0.000000e+00> : vector<32x32xf32>
    %214 = tpu.matmul %184, %213, %cst_107 {dimension_numbers = #tpu.dot_dimension_numbers<[0], [0], [1], [1], [0, 1, 1, 1], [], []>} : vector<2x32xf32>, vector<2x32xf32>, vector<32x32xf32> -> vector<32x32xf32>
    %215 = math.absf %214 : vector<32x32xf32>
    %cst_108 = arith.constant dense<0xFF800000> : vector<32xf32>
    %216 = vector.multi_reduction <maximumf>, %215, %cst_108 [0] : vector<32x32xf32> to vector<32xf32>
    %217 = vector.shape_cast %216 : vector<32xf32> to vector<1x32xf32>
    %218 = arith.mulf %210, %184 : vector<2x32xf32>
    %219 = arith.mulf %199, %218 : vector<2x32xf32>
    %220 = vector.broadcast %217 : vector<1x32xf32> to vector<2x32xf32>
    %221 = arith.divf %219, %220 : vector<2x32xf32>
    %222 = arith.index_cast %c4_i32 : i32 to index
    %c0_109 = arith.constant 0 : index
    %c0_110 = arith.constant 0 : index
    %223 = vector.load %arg2[%222, %c0_109, %c0_110] : memref<8x2x32xf32, #tpu.memory_space<vmem>>, vector<1x2x32xf32>
    %224 = vector.shape_cast %223 : vector<1x2x32xf32> to vector<2x32xf32>
    %225 = vector.shape_cast %221 : vector<2x32xf32> to vector<1x2x32xf32>
    tpu.vector_store %arg2[%222, %c0_109, %c0_110], %225 {strides = array<i32>} : memref<8x2x32xf32, #tpu.memory_space<vmem>>, vector<1x2x32xf32>,
    %c5_i32 = arith.constant 5 : i32
    %c0_111 = arith.constant 0 : index
    %226 = arith.index_cast %c5_i32 : i32 to index
    %c0_112 = arith.constant 0 : index
    %c0_113 = arith.constant 0 : index
    %227 = vector.load %arg1[%c0_111, %226, %c0_112, %c0_113] : memref<6x8x2x32xf32, #tpu.memory_space<vmem>>, vector<1x1x2x32xf32>
    %228 = vector.shape_cast %227 : vector<1x1x2x32xf32> to vector<2x32xf32>
    %c1_114 = arith.constant 1 : index
    %229 = arith.index_cast %c5_i32 : i32 to index
    %c0_115 = arith.constant 0 : index
    %c0_116 = arith.constant 0 : index
    %230 = vector.load %arg1[%c1_114, %229, %c0_115, %c0_116] : memref<6x8x2x32xf32, #tpu.memory_space<vmem>>, vector<1x1x2x32xf32>
    %231 = vector.shape_cast %230 : vector<1x1x2x32xf32> to vector<2x32xf32>
    %c2_117 = arith.constant 2 : index
    %232 = arith.index_cast %c5_i32 : i32 to index
    %c0_118 = arith.constant 0 : index
    %c0_119 = arith.constant 0 : index
    %233 = vector.load %arg1[%c2_117, %232, %c0_118, %c0_119] : memref<6x8x2x32xf32, #tpu.memory_space<vmem>>, vector<1x1x2x32xf32>
    %234 = vector.shape_cast %233 : vector<1x1x2x32xf32> to vector<2x32xf32>
    %c3_120 = arith.constant 3 : index
    %235 = arith.index_cast %c5_i32 : i32 to index
    %c0_121 = arith.constant 0 : index
    %c0_122 = arith.constant 0 : index
    %236 = vector.load %arg1[%c3_120, %235, %c0_121, %c0_122] : memref<6x8x2x32xf32, #tpu.memory_space<vmem>>, vector<1x1x2x32xf32>
    %237 = vector.shape_cast %236 : vector<1x1x2x32xf32> to vector<2x32xf32>
    %c4_123 = arith.constant 4 : index
    %238 = arith.index_cast %c5_i32 : i32 to index
    %c0_124 = arith.constant 0 : index
    %c0_125 = arith.constant 0 : index
    %239 = vector.load %arg1[%c4_123, %238, %c0_124, %c0_125] : memref<6x8x2x32xf32, #tpu.memory_space<vmem>>, vector<1x1x2x32xf32>
    %240 = vector.shape_cast %239 : vector<1x1x2x32xf32> to vector<2x32xf32>
    %c5_126 = arith.constant 5 : index
    %241 = arith.index_cast %c5_i32 : i32 to index
    %c0_127 = arith.constant 0 : index
    %c0_128 = arith.constant 0 : index
    %242 = vector.load %arg1[%c5_126, %241, %c0_127, %c0_128] : memref<6x8x2x32xf32, #tpu.memory_space<vmem>>, vector<1x1x2x32xf32>
    %243 = vector.shape_cast %242 : vector<1x1x2x32xf32> to vector<2x32xf32>
    %244 = arith.addf %237, %201 : vector<2x32xf32>
    %245 = arith.maximumf %244, %234 : vector<2x32xf32>
    %246 = arith.subf %234, %245 : vector<2x32xf32>
    %247 = math.exp %246 : vector<2x32xf32>
    %248 = arith.addf %237, %201 : vector<2x32xf32>
    %249 = arith.subf %248, %245 : vector<2x32xf32>
    %250 = math.exp %249 : vector<2x32xf32>
    %251 = arith.mulf %250, %210 : vector<2x32xf32>
    %252 = arith.mulf %240, %231 : vector<2x32xf32>
    %253 = arith.mulf %247, %252 : vector<2x32xf32>
    %254 = arith.addf %251, %253 : vector<2x32xf32>
    %255 = arith.mulf %250, %213 : vector<2x32xf32>
    %256 = arith.mulf %247, %231 : vector<2x32xf32>
    %257 = arith.addf %255, %256 : vector<2x32xf32>
    %cst_129 = arith.constant dense<0.000000e+00> : vector<32x32xf32>
    %258 = tpu.matmul %228, %257, %cst_129 {dimension_numbers = #tpu.dot_dimension_numbers<[0], [0], [1], [1], [0, 1, 1, 1], [], []>} : vector<2x32xf32>, vector<2x32xf32>, vector<32x32xf32> -> vector<32x32xf32>
    %259 = math.absf %258 : vector<32x32xf32>
    %cst_130 = arith.constant dense<0xFF800000> : vector<32xf32>
    %260 = vector.multi_reduction <maximumf>, %259, %cst_130 [0] : vector<32x32xf32> to vector<32xf32>
    %261 = vector.shape_cast %260 : vector<32xf32> to vector<1x32xf32>
    %262 = arith.mulf %254, %228 : vector<2x32xf32>
    %263 = arith.mulf %243, %262 : vector<2x32xf32>
    %264 = vector.broadcast %261 : vector<1x32xf32> to vector<2x32xf32>
    %265 = arith.divf %263, %264 : vector<2x32xf32>
    %266 = arith.index_cast %c5_i32 : i32 to index
    %c0_131 = arith.constant 0 : index
    %c0_132 = arith.constant 0 : index
    %267 = vector.load %arg2[%266, %c0_131, %c0_132] : memref<8x2x32xf32, #tpu.memory_space<vmem>>, vector<1x2x32xf32>
    %268 = vector.shape_cast %267 : vector<1x2x32xf32> to vector<2x32xf32>
    %269 = vector.shape_cast %265 : vector<2x32xf32> to vector<1x2x32xf32>
    tpu.vector_store %arg2[%266, %c0_131, %c0_132], %269 {strides = array<i32>} : memref<8x2x32xf32, #tpu.memory_space<vmem>>, vector<1x2x32xf32>,
    %c6_i32 = arith.constant 6 : i32
    %c0_133 = arith.constant 0 : index
    %270 = arith.index_cast %c6_i32 : i32 to index
    %c0_134 = arith.constant 0 : index
    %c0_135 = arith.constant 0 : index
    %271 = vector.load %arg1[%c0_133, %270, %c0_134, %c0_135] : memref<6x8x2x32xf32, #tpu.memory_space<vmem>>, vector<1x1x2x32xf32>
    %272 = vector.shape_cast %271 : vector<1x1x2x32xf32> to vector<2x32xf32>
    %c1_136 = arith.constant 1 : index
    %273 = arith.index_cast %c6_i32 : i32 to index
    %c0_137 = arith.constant 0 : index
    %c0_138 = arith.constant 0 : index
    %274 = vector.load %arg1[%c1_136, %273, %c0_137, %c0_138] : memref<6x8x2x32xf32, #tpu.memory_space<vmem>>, vector<1x1x2x32xf32>
    %275 = vector.shape_cast %274 : vector<1x1x2x32xf32> to vector<2x32xf32>
    %c2_139 = arith.constant 2 : index
    %276 = arith.index_cast %c6_i32 : i32 to index
    %c0_140 = arith.constant 0 : index
    %c0_141 = arith.constant 0 : index
    %277 = vector.load %arg1[%c2_139, %276, %c0_140, %c0_141] : memref<6x8x2x32xf32, #tpu.memory_space<vmem>>, vector<1x1x2x32xf32>
    %278 = vector.shape_cast %277 : vector<1x1x2x32xf32> to vector<2x32xf32>
    %c3_142 = arith.constant 3 : index
    %279 = arith.index_cast %c6_i32 : i32 to index
    %c0_143 = arith.constant 0 : index
    %c0_144 = arith.constant 0 : index
    %280 = vector.load %arg1[%c3_142, %279, %c0_143, %c0_144] : memref<6x8x2x32xf32, #tpu.memory_space<vmem>>, vector<1x1x2x32xf32>
    %281 = vector.shape_cast %280 : vector<1x1x2x32xf32> to vector<2x32xf32>
    %c4_145 = arith.constant 4 : index
    %282 = arith.index_cast %c6_i32 : i32 to index
    %c0_146 = arith.constant 0 : index
    %c0_147 = arith.constant 0 : index
    %283 = vector.load %arg1[%c4_145, %282, %c0_146, %c0_147] : memref<6x8x2x32xf32, #tpu.memory_space<vmem>>, vector<1x1x2x32xf32>
    %284 = vector.shape_cast %283 : vector<1x1x2x32xf32> to vector<2x32xf32>
    %c5_148 = arith.constant 5 : index
    %285 = arith.index_cast %c6_i32 : i32 to index
    %c0_149 = arith.constant 0 : index
    %c0_150 = arith.constant 0 : index
    %286 = vector.load %arg1[%c5_148, %285, %c0_149, %c0_150] : memref<6x8x2x32xf32, #tpu.memory_space<vmem>>, vector<1x1x2x32xf32>
    %287 = vector.shape_cast %286 : vector<1x1x2x32xf32> to vector<2x32xf32>
    %288 = arith.addf %281, %245 : vector<2x32xf32>
    %289 = arith.maximumf %288, %278 : vector<2x32xf32>
    %290 = arith.subf %278, %289 : vector<2x32xf32>
    %291 = math.exp %290 : vector<2x32xf32>
    %292 = arith.addf %281, %245 : vector<2x32xf32>
    %293 = arith.subf %292, %289 : vector<2x32xf32>
    %294 = math.exp %293 : vector<2x32xf32>
    %295 = arith.mulf %294, %254 : vector<2x32xf32>
    %296 = arith.mulf %284, %275 : vector<2x32xf32>
    %297 = arith.mulf %291, %296 : vector<2x32xf32>
    %298 = arith.addf %295, %297 : vector<2x32xf32>
    %299 = arith.mulf %294, %257 : vector<2x32xf32>
    %300 = arith.mulf %291, %275 : vector<2x32xf32>
    %301 = arith.addf %299, %300 : vector<2x32xf32>
    %cst_151 = arith.constant dense<0.000000e+00> : vector<32x32xf32>
    %302 = tpu.matmul %272, %301, %cst_151 {dimension_numbers = #tpu.dot_dimension_numbers<[0], [0], [1], [1], [0, 1, 1, 1], [], []>} : vector<2x32xf32>, vector<2x32xf32>, vector<32x32xf32> -> vector<32x32xf32>
    %303 = math.absf %302 : vector<32x32xf32>
    %cst_152 = arith.constant dense<0xFF800000> : vector<32xf32>
    %304 = vector.multi_reduction <maximumf>, %303, %cst_152 [0] : vector<32x32xf32> to vector<32xf32>
    %305 = vector.shape_cast %304 : vector<32xf32> to vector<1x32xf32>
    %306 = arith.mulf %298, %272 : vector<2x32xf32>
    %307 = arith.mulf %287, %306 : vector<2x32xf32>
    %308 = vector.broadcast %305 : vector<1x32xf32> to vector<2x32xf32>
    %309 = arith.divf %307, %308 : vector<2x32xf32>
    %310 = arith.index_cast %c6_i32 : i32 to index
    %c0_153 = arith.constant 0 : index
    %c0_154 = arith.constant 0 : index
    %311 = vector.load %arg2[%310, %c0_153, %c0_154] : memref<8x2x32xf32, #tpu.memory_space<vmem>>, vector<1x2x32xf32>
    %312 = vector.shape_cast %311 : vector<1x2x32xf32> to vector<2x32xf32>
    %313 = vector.shape_cast %309 : vector<2x32xf32> to vector<1x2x32xf32>
    tpu.vector_store %arg2[%310, %c0_153, %c0_154], %313 {strides = array<i32>} : memref<8x2x32xf32, #tpu.memory_space<vmem>>, vector<1x2x32xf32>,
    %c7_i32 = arith.constant 7 : i32
    %c0_155 = arith.constant 0 : index
    %314 = arith.index_cast %c7_i32 : i32 to index
    %c0_156 = arith.constant 0 : index
    %c0_157 = arith.constant 0 : index
    %315 = vector.load %arg1[%c0_155, %314, %c0_156, %c0_157] : memref<6x8x2x32xf32, #tpu.memory_space<vmem>>, vector<1x1x2x32xf32>
    %316 = vector.shape_cast %315 : vector<1x1x2x32xf32> to vector<2x32xf32>
    %c1_158 = arith.constant 1 : index
    %317 = arith.index_cast %c7_i32 : i32 to index
    %c0_159 = arith.constant 0 : index
    %c0_160 = arith.constant 0 : index
    %318 = vector.load %arg1[%c1_158, %317, %c0_159, %c0_160] : memref<6x8x2x32xf32, #tpu.memory_space<vmem>>, vector<1x1x2x32xf32>
    %319 = vector.shape_cast %318 : vector<1x1x2x32xf32> to vector<2x32xf32>
    %c2_161 = arith.constant 2 : index
    %320 = arith.index_cast %c7_i32 : i32 to index
    %c0_162 = arith.constant 0 : index
    %c0_163 = arith.constant 0 : index
    %321 = vector.load %arg1[%c2_161, %320, %c0_162, %c0_163] : memref<6x8x2x32xf32, #tpu.memory_space<vmem>>, vector<1x1x2x32xf32>
    %322 = vector.shape_cast %321 : vector<1x1x2x32xf32> to vector<2x32xf32>
    %c3_164 = arith.constant 3 : index
    %323 = arith.index_cast %c7_i32 : i32 to index
    %c0_165 = arith.constant 0 : index
    %c0_166 = arith.constant 0 : index
    %324 = vector.load %arg1[%c3_164, %323, %c0_165, %c0_166] : memref<6x8x2x32xf32, #tpu.memory_space<vmem>>, vector<1x1x2x32xf32>
    %325 = vector.shape_cast %324 : vector<1x1x2x32xf32> to vector<2x32xf32>
    %c4_167 = arith.constant 4 : index
    %326 = arith.index_cast %c7_i32 : i32 to index
    %c0_168 = arith.constant 0 : index
    %c0_169 = arith.constant 0 : index
    %327 = vector.load %arg1[%c4_167, %326, %c0_168, %c0_169] : memref<6x8x2x32xf32, #tpu.memory_space<vmem>>, vector<1x1x2x32xf32>
    %328 = vector.shape_cast %327 : vector<1x1x2x32xf32> to vector<2x32xf32>
    %c5_170 = arith.constant 5 : index
    %329 = arith.index_cast %c7_i32 : i32 to index
    %c0_171 = arith.constant 0 : index
    %c0_172 = arith.constant 0 : index
    %330 = vector.load %arg1[%c5_170, %329, %c0_171, %c0_172] : memref<6x8x2x32xf32, #tpu.memory_space<vmem>>, vector<1x1x2x32xf32>
    %331 = vector.shape_cast %330 : vector<1x1x2x32xf32> to vector<2x32xf32>
    %332 = arith.addf %325, %289 : vector<2x32xf32>
    %333 = arith.maximumf %332, %322 : vector<2x32xf32>
    %334 = arith.subf %322, %333 : vector<2x32xf32>
    %335 = math.exp %334 : vector<2x32xf32>
    %336 = arith.addf %325, %289 : vector<2x32xf32>
    %337 = arith.subf %336, %333 : vector<2x32xf32>
    %338 = math.exp %337 : vector<2x32xf32>
    %339 = arith.mulf %338, %298 : vector<2x32xf32>
    %340 = arith.mulf %328, %319 : vector<2x32xf32>
    %341 = arith.mulf %335, %340 : vector<2x32xf32>
    %342 = arith.addf %339, %341 : vector<2x32xf32>
    %343 = arith.mulf %338, %301 : vector<2x32xf32>
    %344 = arith.mulf %335, %319 : vector<2x32xf32>
    %345 = arith.addf %343, %344 : vector<2x32xf32>
    %cst_173 = arith.constant dense<0.000000e+00> : vector<32x32xf32>
    %346 = tpu.matmul %316, %345, %cst_173 {dimension_numbers = #tpu.dot_dimension_numbers<[0], [0], [1], [1], [0, 1, 1, 1], [], []>} : vector<2x32xf32>, vector<2x32xf32>, vector<32x32xf32> -> vector<32x32xf32>
    %347 = math.absf %346 : vector<32x32xf32>
    %cst_174 = arith.constant dense<0xFF800000> : vector<32xf32>
    %348 = vector.multi_reduction <maximumf>, %347, %cst_174 [0] : vector<32x32xf32> to vector<32xf32>
    %349 = vector.shape_cast %348 : vector<32xf32> to vector<1x32xf32>
    %350 = arith.mulf %342, %316 : vector<2x32xf32>
    %351 = arith.mulf %331, %350 : vector<2x32xf32>
    %352 = vector.broadcast %349 : vector<1x32xf32> to vector<2x32xf32>
    %353 = arith.divf %351, %352 : vector<2x32xf32>
    %354 = arith.index_cast %c7_i32 : i32 to index
    %c0_175 = arith.constant 0 : index
    %c0_176 = arith.constant 0 : index
    %355 = vector.load %arg2[%354, %c0_175, %c0_176] : memref<8x2x32xf32, #tpu.memory_space<vmem>>, vector<1x2x32xf32>
    %356 = vector.shape_cast %355 : vector<1x2x32xf32> to vector<2x32xf32>
    %357 = vector.shape_cast %353 : vector<2x32xf32> to vector<1x2x32xf32>
    tpu.vector_store %arg2[%354, %c0_175, %c0_176], %357 {strides = array<i32>} : memref<8x2x32xf32, #tpu.memory_space<vmem>>, vector<1x2x32xf32>,
    %c8_i32 = arith.constant 8 : i32
    %c0_177 = arith.constant 0 : index
    %c0_178 = arith.constant 0 : index
    %358 = vector.load %arg3[%c0_177, %c0_178] : memref<2x32xf32, #tpu.memory_space<vmem>>, vector<2x32xf32>
    tpu.vector_store %arg3[%c0_177, %c0_178], %342 {strides = array<i32>} : memref<2x32xf32, #tpu.memory_space<vmem>>, vector<2x32xf32>,
    %c0_179 = arith.constant 0 : index
    %c0_180 = arith.constant 0 : index
    %359 = vector.load %arg4[%c0_179, %c0_180] : memref<2x32xf32, #tpu.memory_space<vmem>>, vector<2x32xf32>
    tpu.vector_store %arg4[%c0_179, %c0_180], %345 {strides = array<i32>} : memref<2x32xf32, #tpu.memory_space<vmem>>, vector<2x32xf32>,
    %c0_181 = arith.constant 0 : index
    %c0_182 = arith.constant 0 : index
    %360 = vector.load %arg5[%c0_181, %c0_182] : memref<2x32xf32, #tpu.memory_space<vmem>>, vector<2x32xf32>
    tpu.vector_store %arg5[%c0_181, %c0_182], %333 {strides = array<i32>} : memref<2x32xf32, #tpu.memory_space<vmem>>, vector<2x32xf32>,
    return
  }
  func.func @transform_0(%arg0: i32) -> (i32, i32, i32, i32) {
    %c0_i32 = arith.constant 0 : i32
    %c0_i32_0 = arith.constant 0 : i32
    %c0_i32_1 = arith.constant 0 : i32
    %c0_i32_2 = arith.constant 0 : i32
    return %c0_i32, %arg0, %c0_i32_0, %c0_i32_1 : i32, i32, i32, i32
  }
  func.func @transform_1(%arg0: i32) -> (i32, i32, i32) {
    %c0_i32 = arith.constant 0 : i32
    %c0_i32_0 = arith.constant 0 : i32
    %c0_i32_1 = arith.constant 0 : i32
    return %arg0, %c0_i32, %c0_i32_0 : i32, i32, i32
  }
  func.func @transform_2(%arg0: i32) -> (i32, i32) {
    %c0_i32 = arith.constant 0 : i32
    %c0_i32_0 = arith.constant 0 : i32
    %c0_i32_1 = arith.constant 0 : i32
    return %c0_i32, %c0_i32_0 : i32, i32
  }
  func.func @transform_3(%arg0: i32) -> (i32, i32) {
    %c0_i32 = arith.constant 0 : i32
    %c0_i32_0 = arith.constant 0 : i32
    %c0_i32_1 = arith.constant 0 : i32
    return %c0_i32, %c0_i32_0 : i32, i32
  }
  func.func @transform_4(%arg0: i32) -> (i32, i32) {
    %c0_i32 = arith.constant 0 : i32
    %c0_i32_0 = arith.constant 0 : i32
    %c0_i32_1 = arith.constant 0 : i32
    return %c0_i32, %c0_i32_0 : i32, i32
  }
}

module attributes {stable_mosaic.version = 11 : i64} {
  func.func @_slstm_pre_kernel(%arg0: i32, %arg1: memref<16x32xf32, #tpu.memory_space<vmem>>, %arg2: memref<1x32xf32, #tpu.memory_space<vmem>>, %arg3: memref<1x32xf32, #tpu.memory_space<vmem>>, %arg4: memref<32x32xf32, #tpu.memory_space<vmem>>, %arg5: memref<1x32xf32, #tpu.memory_space<vmem>>, %arg6: memref<32x64xf32, #tpu.memory_space<vmem>>, %arg7: memref<1x64xf32, #tpu.memory_space<vmem>>, %arg8: memref<32x64xf32, #tpu.memory_space<vmem>>, %arg9: memref<1x64xf32, #tpu.memory_space<vmem>>, %arg10: memref<16x128xf32, #tpu.memory_space<vmem>>) attributes {dimension_semantics = [#tpu.dimension_semantics<parallel>], iteration_bounds = array<i64: 1>, scalar_prefetch = 0 : i64, scratch_operands = 0 : i64, tpu.core_type = #tpu.core_type<tc>, window_params = [{transform_indices = @transform_0, window_bounds = array<i64: 16, 32>}, {pipeline_mode = #tpu.pipeline_mode<synchronous>, transform_indices = @transform_1, window_bounds = array<i64: 1, 32>}, {pipeline_mode = #tpu.pipeline_mode<synchronous>, transform_indices = @transform_2, window_bounds = array<i64: 1, 32>}, {pipeline_mode = #tpu.pipeline_mode<synchronous>, transform_indices = @transform_3, window_bounds = array<i64: 32, 32>}, {pipeline_mode = #tpu.pipeline_mode<synchronous>, transform_indices = @transform_4, window_bounds = array<i64: 1, 32>}, {pipeline_mode = #tpu.pipeline_mode<synchronous>, transform_indices = @transform_5, window_bounds = array<i64: 32, 64>}, {pipeline_mode = #tpu.pipeline_mode<synchronous>, transform_indices = @transform_6, window_bounds = array<i64: 1, 64>}, {pipeline_mode = #tpu.pipeline_mode<synchronous>, transform_indices = @transform_7, window_bounds = array<i64: 32, 64>}, {pipeline_mode = #tpu.pipeline_mode<synchronous>, transform_indices = @transform_8, window_bounds = array<i64: 1, 64>}, {transform_indices = @transform_9, window_bounds = array<i64: 16, 128>}]} {
    %c0 = arith.constant 0 : index
    %c0_0 = arith.constant 0 : index
    %0 = vector.load %arg1[%c0, %c0_0] : memref<16x32xf32, #tpu.memory_space<vmem>>, vector<16x32xf32>
    %c0_1 = arith.constant 0 : index
    %c0_2 = arith.constant 0 : index
    %1 = vector.load %arg2[%c0_1, %c0_2] : memref<1x32xf32, #tpu.memory_space<vmem>>, vector<1x32xf32>
    %c0_3 = arith.constant 0 : index
    %c0_4 = arith.constant 0 : index
    %2 = vector.load %arg3[%c0_3, %c0_4] : memref<1x32xf32, #tpu.memory_space<vmem>>, vector<1x32xf32>
    %cst = arith.constant dense<0.000000e+00> : vector<16xf32>
    %3 = vector.multi_reduction <add>, %0, %cst [1] : vector<16x32xf32> to vector<16xf32>
    %4 = vector.shape_cast %3 : vector<16xf32> to vector<16x1xf32>
    %cst_5 = arith.constant 3.200000e+01 : f32
    %5 = vector.broadcast %cst_5 : f32 to vector<16x1xf32>
    %6 = arith.divf %4, %5 : vector<16x1xf32>
    %7 = vector.broadcast %6 : vector<16x1xf32> to vector<16x32xf32>
    %8 = arith.subf %0, %7 : vector<16x32xf32>
    %9 = arith.mulf %8, %8 : vector<16x32xf32>
    %cst_6 = arith.constant dense<0.000000e+00> : vector<16xf32>
    %10 = vector.multi_reduction <add>, %9, %cst_6 [1] : vector<16x32xf32> to vector<16xf32>
    %11 = vector.shape_cast %10 : vector<16xf32> to vector<16x1xf32>
    %cst_7 = arith.constant 3.200000e+01 : f32
    %12 = vector.broadcast %cst_7 : f32 to vector<16x1xf32>
    %13 = arith.divf %11, %12 : vector<16x1xf32>
    %14 = vector.broadcast %6 : vector<16x1xf32> to vector<16x32xf32>
    %15 = arith.subf %0, %14 : vector<16x32xf32>
    %cst_8 = arith.constant 9.99999974E-6 : f32
    %16 = vector.broadcast %cst_8 : f32 to vector<16x1xf32>
    %17 = arith.addf %13, %16 : vector<16x1xf32>
    %18 = math.rsqrt %17 : vector<16x1xf32>
    %19 = vector.broadcast %18 : vector<16x1xf32> to vector<16x32xf32>
    %20 = arith.mulf %15, %19 : vector<16x32xf32>
    %21 = vector.broadcast %1 : vector<1x32xf32> to vector<16x32xf32>
    %22 = arith.mulf %20, %21 : vector<16x32xf32>
    %23 = vector.broadcast %2 : vector<1x32xf32> to vector<16x32xf32>
    %24 = arith.addf %22, %23 : vector<16x32xf32>
    %c0_9 = arith.constant 0 : index
    %c0_10 = arith.constant 0 : index
    %25 = vector.load %arg4[%c0_9, %c0_10] : memref<32x32xf32, #tpu.memory_space<vmem>>, vector<32x32xf32>
    %cst_11 = arith.constant dense<0.000000e+00> : vector<16x32xf32>
    %26 = tpu.matmul %24, %25, %cst_11 {dimension_numbers = #tpu.dot_dimension_numbers<[1], [0], [0], [1], [0, 0, 1, 1], [], []>} : vector<16x32xf32>, vector<32x32xf32>, vector<16x32xf32> -> vector<16x32xf32>
    %c0_12 = arith.constant 0 : index
    %c0_13 = arith.constant 0 : index
    %27 = vector.load %arg5[%c0_12, %c0_13] : memref<1x32xf32, #tpu.memory_space<vmem>>, vector<1x32xf32>
    %28 = vector.broadcast %27 : vector<1x32xf32> to vector<16x32xf32>
    %29 = arith.addf %26, %28 : vector<16x32xf32>
    %30 = arith.negf %29 : vector<16x32xf32>
    %31 = math.exp %30 : vector<16x32xf32>
    %cst_14 = arith.constant 1.000000e+00 : f32
    %32 = vector.broadcast %cst_14 : f32 to vector<16x32xf32>
    %33 = arith.addf %32, %31 : vector<16x32xf32>
    %34 = arith.divf %32, %33 : vector<16x32xf32>
    %35 = arith.mulf %29, %34 : vector<16x32xf32>
    %c0_15 = arith.constant 0 : index
    %c0_16 = arith.constant 0 : index
    %36 = vector.load %arg6[%c0_15, %c0_16] : memref<32x64xf32, #tpu.memory_space<vmem>>, vector<32x64xf32>
    %cst_17 = arith.constant dense<0.000000e+00> : vector<16x64xf32>
    %37 = tpu.matmul %24, %36, %cst_17 {dimension_numbers = #tpu.dot_dimension_numbers<[1], [0], [0], [1], [0, 0, 1, 1], [], []>} : vector<16x32xf32>, vector<32x64xf32>, vector<16x64xf32> -> vector<16x64xf32>
    %c0_18 = arith.constant 0 : index
    %c0_19 = arith.constant 0 : index
    %38 = vector.load %arg7[%c0_18, %c0_19] : memref<1x64xf32, #tpu.memory_space<vmem>>, vector<1x64xf32>
    %39 = vector.broadcast %38 : vector<1x64xf32> to vector<16x64xf32>
    %40 = arith.addf %37, %39 : vector<16x64xf32>
    %c0_20 = arith.constant 0 : index
    %c0_21 = arith.constant 0 : index
    %41 = vector.load %arg8[%c0_20, %c0_21] : memref<32x64xf32, #tpu.memory_space<vmem>>, vector<32x64xf32>
    %cst_22 = arith.constant dense<0.000000e+00> : vector<16x64xf32>
    %42 = tpu.matmul %35, %41, %cst_22 {dimension_numbers = #tpu.dot_dimension_numbers<[1], [0], [0], [1], [0, 0, 1, 1], [], []>} : vector<16x32xf32>, vector<32x64xf32>, vector<16x64xf32> -> vector<16x64xf32>
    %c0_23 = arith.constant 0 : index
    %c0_24 = arith.constant 0 : index
    %43 = vector.load %arg9[%c0_23, %c0_24] : memref<1x64xf32, #tpu.memory_space<vmem>>, vector<1x64xf32>
    %44 = vector.broadcast %43 : vector<1x64xf32> to vector<16x64xf32>
    %45 = arith.addf %42, %44 : vector<16x64xf32>
    %c0_25 = arith.constant 0 : index
    %c0_26 = arith.constant 0 : index
    %46 = vector.load %arg10[%c0_25, %c0_26] : memref<16x128xf32, #tpu.memory_space<vmem>>, vector<16x64xf32>
    tpu.vector_store %arg10[%c0_25, %c0_26], %40 {strides = array<i32>} : memref<16x128xf32, #tpu.memory_space<vmem>>, vector<16x64xf32>,
    %c0_27 = arith.constant 0 : index
    %c64 = arith.constant 64 : index
    %47 = vector.load %arg10[%c0_27, %c64] : memref<16x128xf32, #tpu.memory_space<vmem>>, vector<16x64xf32>
    tpu.vector_store %arg10[%c0_27, %c64], %45 {strides = array<i32>} : memref<16x128xf32, #tpu.memory_space<vmem>>, vector<16x64xf32>,
    return
  }
  func.func @transform_0(%arg0: i32) -> (i32, i32) {
    %c0_i32 = arith.constant 0 : i32
    %c0_i32_0 = arith.constant 0 : i32
    return %arg0, %c0_i32 : i32, i32
  }
  func.func @transform_1(%arg0: i32) -> (i32, i32) {
    %c0_i32 = arith.constant 0 : i32
    %c0_i32_0 = arith.constant 0 : i32
    %c0_i32_1 = arith.constant 0 : i32
    return %c0_i32, %c0_i32_0 : i32, i32
  }
  func.func @transform_2(%arg0: i32) -> (i32, i32) {
    %c0_i32 = arith.constant 0 : i32
    %c0_i32_0 = arith.constant 0 : i32
    %c0_i32_1 = arith.constant 0 : i32
    return %c0_i32, %c0_i32_0 : i32, i32
  }
  func.func @transform_3(%arg0: i32) -> (i32, i32) {
    %c0_i32 = arith.constant 0 : i32
    %c0_i32_0 = arith.constant 0 : i32
    %c0_i32_1 = arith.constant 0 : i32
    return %c0_i32, %c0_i32_0 : i32, i32
  }
  func.func @transform_4(%arg0: i32) -> (i32, i32) {
    %c0_i32 = arith.constant 0 : i32
    %c0_i32_0 = arith.constant 0 : i32
    %c0_i32_1 = arith.constant 0 : i32
    return %c0_i32, %c0_i32_0 : i32, i32
  }
  func.func @transform_5(%arg0: i32) -> (i32, i32) {
    %c0_i32 = arith.constant 0 : i32
    %c0_i32_0 = arith.constant 0 : i32
    %c0_i32_1 = arith.constant 0 : i32
    return %c0_i32, %c0_i32_0 : i32, i32
  }
  func.func @transform_6(%arg0: i32) -> (i32, i32) {
    %c0_i32 = arith.constant 0 : i32
    %c0_i32_0 = arith.constant 0 : i32
    %c0_i32_1 = arith.constant 0 : i32
    return %c0_i32, %c0_i32_0 : i32, i32
  }
  func.func @transform_7(%arg0: i32) -> (i32, i32) {
    %c0_i32 = arith.constant 0 : i32
    %c0_i32_0 = arith.constant 0 : i32
    %c0_i32_1 = arith.constant 0 : i32
    return %c0_i32, %c0_i32_0 : i32, i32
  }
  func.func @transform_8(%arg0: i32) -> (i32, i32) {
    %c0_i32 = arith.constant 0 : i32
    %c0_i32_0 = arith.constant 0 : i32
    %c0_i32_1 = arith.constant 0 : i32
    return %c0_i32, %c0_i32_0 : i32, i32
  }
  func.func @transform_9(%arg0: i32) -> (i32, i32) {
    %c0_i32 = arith.constant 0 : i32
    %c0_i32_0 = arith.constant 0 : i32
    return %arg0, %c0_i32 : i32, i32
  }
}

module attributes {stable_mosaic.version = 11 : i64} {
  func.func @_slstm_rec_kernel(%arg0: i32, %arg1: memref<8x2x128xf32, #tpu.memory_space<vmem>>, %arg2: memref<32x128xf32, #tpu.memory_space<vmem>>, %arg3: memref<1x128xf32, #tpu.memory_space<vmem>>, %arg4: memref<8x2x32xf32, #tpu.memory_space<vmem>>, %arg5: memref<2x32xf32, #tpu.memory_space<vmem>>, %arg6: memref<2x32xf32, #tpu.memory_space<vmem>>, %arg7: memref<2x32xf32, #tpu.memory_space<vmem>>, %arg8: memref<2x32xf32, #tpu.memory_space<vmem>>) attributes {dimension_semantics = [#tpu.dimension_semantics<arbitrary>], iteration_bounds = array<i64: 1>, scalar_prefetch = 0 : i64, scratch_operands = 0 : i64, tpu.core_type = #tpu.core_type<tc>, window_params = [{transform_indices = @transform_0, window_bounds = array<i64: 8, 2, 128>}, {pipeline_mode = #tpu.pipeline_mode<synchronous>, transform_indices = @transform_1, window_bounds = array<i64: 32, 128>}, {pipeline_mode = #tpu.pipeline_mode<synchronous>, transform_indices = @transform_2, window_bounds = array<i64: 1, 128>}, {transform_indices = @transform_3, window_bounds = array<i64: 8, 2, 32>}, {pipeline_mode = #tpu.pipeline_mode<synchronous>, transform_indices = @transform_4, window_bounds = array<i64: 2, 32>}, {pipeline_mode = #tpu.pipeline_mode<synchronous>, transform_indices = @transform_5, window_bounds = array<i64: 2, 32>}, {pipeline_mode = #tpu.pipeline_mode<synchronous>, transform_indices = @transform_6, window_bounds = array<i64: 2, 32>}, {pipeline_mode = #tpu.pipeline_mode<synchronous>, transform_indices = @transform_7, window_bounds = array<i64: 2, 32>}]} {
    %c0_i32 = arith.constant 0 : i32
    %0 = arith.cmpi eq, %arg0, %c0_i32 : i32
    %1 = arith.extui %0 : i1 to i32
    %c0_i32_0 = arith.constant 0 : i32
    %2 = arith.cmpi ne, %1, %c0_i32_0 : i32
    scf.if %2 {
      %cst_68 = arith.constant 0.000000e+00 : f32
      %293 = vector.broadcast %cst_68 : f32 to vector<2x32xf32>
      %c0_69 = arith.constant 0 : index
      %c0_70 = arith.constant 0 : index
      %294 = vector.load %arg5[%c0_69, %c0_70] : memref<2x32xf32, #tpu.memory_space<vmem>>, vector<2x32xf32>
      tpu.vector_store %arg5[%c0_69, %c0_70], %293 {strides = array<i32>} : memref<2x32xf32, #tpu.memory_space<vmem>>, vector<2x32xf32>,
      %cst_71 = arith.constant 0.000000e+00 : f32
      %295 = vector.broadcast %cst_71 : f32 to vector<2x32xf32>
      %c0_72 = arith.constant 0 : index
      %c0_73 = arith.constant 0 : index
      %296 = vector.load %arg6[%c0_72, %c0_73] : memref<2x32xf32, #tpu.memory_space<vmem>>, vector<2x32xf32>
      tpu.vector_store %arg6[%c0_72, %c0_73], %295 {strides = array<i32>} : memref<2x32xf32, #tpu.memory_space<vmem>>, vector<2x32xf32>,
      %cst_74 = arith.constant 0.000000e+00 : f32
      %297 = vector.broadcast %cst_74 : f32 to vector<2x32xf32>
      %c0_75 = arith.constant 0 : index
      %c0_76 = arith.constant 0 : index
      %298 = vector.load %arg7[%c0_75, %c0_76] : memref<2x32xf32, #tpu.memory_space<vmem>>, vector<2x32xf32>
      tpu.vector_store %arg7[%c0_75, %c0_76], %297 {strides = array<i32>} : memref<2x32xf32, #tpu.memory_space<vmem>>, vector<2x32xf32>,
      %cst_77 = arith.constant 0.000000e+00 : f32
      %299 = vector.broadcast %cst_77 : f32 to vector<2x32xf32>
      %c0_78 = arith.constant 0 : index
      %c0_79 = arith.constant 0 : index
      %300 = vector.load %arg8[%c0_78, %c0_79] : memref<2x32xf32, #tpu.memory_space<vmem>>, vector<2x32xf32>
      tpu.vector_store %arg8[%c0_78, %c0_79], %299 {strides = array<i32>} : memref<2x32xf32, #tpu.memory_space<vmem>>, vector<2x32xf32>,
    } else {
    }
    %c0 = arith.constant 0 : index
    %c0_1 = arith.constant 0 : index
    %3 = vector.load %arg2[%c0, %c0_1] : memref<32x128xf32, #tpu.memory_space<vmem>>, vector<32x128xf32>
    %c0_2 = arith.constant 0 : index
    %c0_3 = arith.constant 0 : index
    %4 = vector.load %arg3[%c0_2, %c0_3] : memref<1x128xf32, #tpu.memory_space<vmem>>, vector<1x128xf32>
    %c0_4 = arith.constant 0 : index
    %c0_5 = arith.constant 0 : index
    %5 = vector.load %arg5[%c0_4, %c0_5] : memref<2x32xf32, #tpu.memory_space<vmem>>, vector<2x32xf32>
    %c0_6 = arith.constant 0 : index
    %c0_7 = arith.constant 0 : index
    %6 = vector.load %arg6[%c0_6, %c0_7] : memref<2x32xf32, #tpu.memory_space<vmem>>, vector<2x32xf32>
    %c0_8 = arith.constant 0 : index
    %c0_9 = arith.constant 0 : index
    %7 = vector.load %arg7[%c0_8, %c0_9] : memref<2x32xf32, #tpu.memory_space<vmem>>, vector<2x32xf32>
    %c0_10 = arith.constant 0 : index
    %c0_11 = arith.constant 0 : index
    %8 = vector.load %arg8[%c0_10, %c0_11] : memref<2x32xf32, #tpu.memory_space<vmem>>, vector<2x32xf32>
    %c0_i32_12 = arith.constant 0 : i32
    %9 = arith.index_cast %c0_i32_12 : i32 to index
    %c0_13 = arith.constant 0 : index
    %c0_14 = arith.constant 0 : index
    %10 = vector.load %arg1[%9, %c0_13, %c0_14] : memref<8x2x128xf32, #tpu.memory_space<vmem>>, vector<1x2x128xf32>
    %11 = vector.shape_cast %10 : vector<1x2x128xf32> to vector<2x128xf32>
    %cst = arith.constant dense<0.000000e+00> : vector<2x128xf32>
    %12 = tpu.matmul %5, %3, %cst {dimension_numbers = #tpu.dot_dimension_numbers<[1], [0], [0], [1], [0, 0, 1, 1], [], []>} : vector<2x32xf32>, vector<32x128xf32>, vector<2x128xf32> -> vector<2x128xf32>
    %13 = arith.addf %11, %12 : vector<2x128xf32>
    %14 = vector.broadcast %4 : vector<1x128xf32> to vector<2x128xf32>
    %15 = arith.addf %13, %14 : vector<2x128xf32>
    %16 = vector.extract_strided_slice %15 {offsets = [0, 0], sizes = [2, 32], strides = [1, 1]} : vector<2x128xf32> to vector<2x32xf32>
    %17 = math.tanh %16 : vector<2x32xf32>
    %18 = vector.extract_strided_slice %15 {offsets = [0, 32], sizes = [2, 32], strides = [1, 1]} : vector<2x128xf32> to vector<2x32xf32>
    %19 = arith.negf %18 : vector<2x32xf32>
    %20 = math.exp %19 : vector<2x32xf32>
    %cst_15 = arith.constant 1.000000e+00 : f32
    %21 = vector.broadcast %cst_15 : f32 to vector<2x32xf32>
    %22 = arith.addf %21, %20 : vector<2x32xf32>
    %23 = arith.divf %21, %22 : vector<2x32xf32>
    %24 = vector.extract_strided_slice %15 {offsets = [0, 64], sizes = [2, 32], strides = [1, 1]} : vector<2x128xf32> to vector<2x32xf32>
    %25 = vector.extract_strided_slice %15 {offsets = [0, 96], sizes = [2, 32], strides = [1, 1]} : vector<2x128xf32> to vector<2x32xf32>
    %26 = arith.addf %25, %8 : vector<2x32xf32>
    %27 = arith.maximumf %26, %24 : vector<2x32xf32>
    %28 = arith.subf %24, %27 : vector<2x32xf32>
    %29 = math.exp %28 : vector<2x32xf32>
    %30 = arith.addf %25, %8 : vector<2x32xf32>
    %31 = arith.subf %30, %27 : vector<2x32xf32>
    %32 = math.exp %31 : vector<2x32xf32>
    %33 = arith.mulf %32, %6 : vector<2x32xf32>
    %34 = arith.mulf %29, %17 : vector<2x32xf32>
    %35 = arith.addf %33, %34 : vector<2x32xf32>
    %36 = arith.mulf %32, %7 : vector<2x32xf32>
    %37 = arith.addf %36, %29 : vector<2x32xf32>
    %38 = arith.mulf %23, %35 : vector<2x32xf32>
    %39 = arith.divf %38, %37 : vector<2x32xf32>
    %40 = arith.index_cast %c0_i32_12 : i32 to index
    %c0_16 = arith.constant 0 : index
    %c0_17 = arith.constant 0 : index
    %41 = vector.load %arg4[%40, %c0_16, %c0_17] : memref<8x2x32xf32, #tpu.memory_space<vmem>>, vector<1x2x32xf32>
    %42 = vector.shape_cast %41 : vector<1x2x32xf32> to vector<2x32xf32>
    %43 = vector.shape_cast %39 : vector<2x32xf32> to vector<1x2x32xf32>
    tpu.vector_store %arg4[%40, %c0_16, %c0_17], %43 {strides = array<i32>} : memref<8x2x32xf32, #tpu.memory_space<vmem>>, vector<1x2x32xf32>,
    %c1_i32 = arith.constant 1 : i32
    %44 = arith.index_cast %c1_i32 : i32 to index
    %c0_18 = arith.constant 0 : index
    %c0_19 = arith.constant 0 : index
    %45 = vector.load %arg1[%44, %c0_18, %c0_19] : memref<8x2x128xf32, #tpu.memory_space<vmem>>, vector<1x2x128xf32>
    %46 = vector.shape_cast %45 : vector<1x2x128xf32> to vector<2x128xf32>
    %cst_20 = arith.constant dense<0.000000e+00> : vector<2x128xf32>
    %47 = tpu.matmul %39, %3, %cst_20 {dimension_numbers = #tpu.dot_dimension_numbers<[1], [0], [0], [1], [0, 0, 1, 1], [], []>} : vector<2x32xf32>, vector<32x128xf32>, vector<2x128xf32> -> vector<2x128xf32>
    %48 = arith.addf %46, %47 : vector<2x128xf32>
    %49 = vector.broadcast %4 : vector<1x128xf32> to vector<2x128xf32>
    %50 = arith.addf %48, %49 : vector<2x128xf32>
    %51 = vector.extract_strided_slice %50 {offsets = [0, 0], sizes = [2, 32], strides = [1, 1]} : vector<2x128xf32> to vector<2x32xf32>
    %52 = math.tanh %51 : vector<2x32xf32>
    %53 = vector.extract_strided_slice %50 {offsets = [0, 32], sizes = [2, 32], strides = [1, 1]} : vector<2x128xf32> to vector<2x32xf32>
    %54 = arith.negf %53 : vector<2x32xf32>
    %55 = math.exp %54 : vector<2x32xf32>
    %cst_21 = arith.constant 1.000000e+00 : f32
    %56 = vector.broadcast %cst_21 : f32 to vector<2x32xf32>
    %57 = arith.addf %56, %55 : vector<2x32xf32>
    %58 = arith.divf %56, %57 : vector<2x32xf32>
    %59 = vector.extract_strided_slice %50 {offsets = [0, 64], sizes = [2, 32], strides = [1, 1]} : vector<2x128xf32> to vector<2x32xf32>
    %60 = vector.extract_strided_slice %50 {offsets = [0, 96], sizes = [2, 32], strides = [1, 1]} : vector<2x128xf32> to vector<2x32xf32>
    %61 = arith.addf %60, %27 : vector<2x32xf32>
    %62 = arith.maximumf %61, %59 : vector<2x32xf32>
    %63 = arith.subf %59, %62 : vector<2x32xf32>
    %64 = math.exp %63 : vector<2x32xf32>
    %65 = arith.addf %60, %27 : vector<2x32xf32>
    %66 = arith.subf %65, %62 : vector<2x32xf32>
    %67 = math.exp %66 : vector<2x32xf32>
    %68 = arith.mulf %67, %35 : vector<2x32xf32>
    %69 = arith.mulf %64, %52 : vector<2x32xf32>
    %70 = arith.addf %68, %69 : vector<2x32xf32>
    %71 = arith.mulf %67, %37 : vector<2x32xf32>
    %72 = arith.addf %71, %64 : vector<2x32xf32>
    %73 = arith.mulf %58, %70 : vector<2x32xf32>
    %74 = arith.divf %73, %72 : vector<2x32xf32>
    %75 = arith.index_cast %c1_i32 : i32 to index
    %c0_22 = arith.constant 0 : index
    %c0_23 = arith.constant 0 : index
    %76 = vector.load %arg4[%75, %c0_22, %c0_23] : memref<8x2x32xf32, #tpu.memory_space<vmem>>, vector<1x2x32xf32>
    %77 = vector.shape_cast %76 : vector<1x2x32xf32> to vector<2x32xf32>
    %78 = vector.shape_cast %74 : vector<2x32xf32> to vector<1x2x32xf32>
    tpu.vector_store %arg4[%75, %c0_22, %c0_23], %78 {strides = array<i32>} : memref<8x2x32xf32, #tpu.memory_space<vmem>>, vector<1x2x32xf32>,
    %c2_i32 = arith.constant 2 : i32
    %79 = arith.index_cast %c2_i32 : i32 to index
    %c0_24 = arith.constant 0 : index
    %c0_25 = arith.constant 0 : index
    %80 = vector.load %arg1[%79, %c0_24, %c0_25] : memref<8x2x128xf32, #tpu.memory_space<vmem>>, vector<1x2x128xf32>
    %81 = vector.shape_cast %80 : vector<1x2x128xf32> to vector<2x128xf32>
    %cst_26 = arith.constant dense<0.000000e+00> : vector<2x128xf32>
    %82 = tpu.matmul %74, %3, %cst_26 {dimension_numbers = #tpu.dot_dimension_numbers<[1], [0], [0], [1], [0, 0, 1, 1], [], []>} : vector<2x32xf32>, vector<32x128xf32>, vector<2x128xf32> -> vector<2x128xf32>
    %83 = arith.addf %81, %82 : vector<2x128xf32>
    %84 = vector.broadcast %4 : vector<1x128xf32> to vector<2x128xf32>
    %85 = arith.addf %83, %84 : vector<2x128xf32>
    %86 = vector.extract_strided_slice %85 {offsets = [0, 0], sizes = [2, 32], strides = [1, 1]} : vector<2x128xf32> to vector<2x32xf32>
    %87 = math.tanh %86 : vector<2x32xf32>
    %88 = vector.extract_strided_slice %85 {offsets = [0, 32], sizes = [2, 32], strides = [1, 1]} : vector<2x128xf32> to vector<2x32xf32>
    %89 = arith.negf %88 : vector<2x32xf32>
    %90 = math.exp %89 : vector<2x32xf32>
    %cst_27 = arith.constant 1.000000e+00 : f32
    %91 = vector.broadcast %cst_27 : f32 to vector<2x32xf32>
    %92 = arith.addf %91, %90 : vector<2x32xf32>
    %93 = arith.divf %91, %92 : vector<2x32xf32>
    %94 = vector.extract_strided_slice %85 {offsets = [0, 64], sizes = [2, 32], strides = [1, 1]} : vector<2x128xf32> to vector<2x32xf32>
    %95 = vector.extract_strided_slice %85 {offsets = [0, 96], sizes = [2, 32], strides = [1, 1]} : vector<2x128xf32> to vector<2x32xf32>
    %96 = arith.addf %95, %62 : vector<2x32xf32>
    %97 = arith.maximumf %96, %94 : vector<2x32xf32>
    %98 = arith.subf %94, %97 : vector<2x32xf32>
    %99 = math.exp %98 : vector<2x32xf32>
    %100 = arith.addf %95, %62 : vector<2x32xf32>
    %101 = arith.subf %100, %97 : vector<2x32xf32>
    %102 = math.exp %101 : vector<2x32xf32>
    %103 = arith.mulf %102, %70 : vector<2x32xf32>
    %104 = arith.mulf %99, %87 : vector<2x32xf32>
    %105 = arith.addf %103, %104 : vector<2x32xf32>
    %106 = arith.mulf %102, %72 : vector<2x32xf32>
    %107 = arith.addf %106, %99 : vector<2x32xf32>
    %108 = arith.mulf %93, %105 : vector<2x32xf32>
    %109 = arith.divf %108, %107 : vector<2x32xf32>
    %110 = arith.index_cast %c2_i32 : i32 to index
    %c0_28 = arith.constant 0 : index
    %c0_29 = arith.constant 0 : index
    %111 = vector.load %arg4[%110, %c0_28, %c0_29] : memref<8x2x32xf32, #tpu.memory_space<vmem>>, vector<1x2x32xf32>
    %112 = vector.shape_cast %111 : vector<1x2x32xf32> to vector<2x32xf32>
    %113 = vector.shape_cast %109 : vector<2x32xf32> to vector<1x2x32xf32>
    tpu.vector_store %arg4[%110, %c0_28, %c0_29], %113 {strides = array<i32>} : memref<8x2x32xf32, #tpu.memory_space<vmem>>, vector<1x2x32xf32>,
    %c3_i32 = arith.constant 3 : i32
    %114 = arith.index_cast %c3_i32 : i32 to index
    %c0_30 = arith.constant 0 : index
    %c0_31 = arith.constant 0 : index
    %115 = vector.load %arg1[%114, %c0_30, %c0_31] : memref<8x2x128xf32, #tpu.memory_space<vmem>>, vector<1x2x128xf32>
    %116 = vector.shape_cast %115 : vector<1x2x128xf32> to vector<2x128xf32>
    %cst_32 = arith.constant dense<0.000000e+00> : vector<2x128xf32>
    %117 = tpu.matmul %109, %3, %cst_32 {dimension_numbers = #tpu.dot_dimension_numbers<[1], [0], [0], [1], [0, 0, 1, 1], [], []>} : vector<2x32xf32>, vector<32x128xf32>, vector<2x128xf32> -> vector<2x128xf32>
    %118 = arith.addf %116, %117 : vector<2x128xf32>
    %119 = vector.broadcast %4 : vector<1x128xf32> to vector<2x128xf32>
    %120 = arith.addf %118, %119 : vector<2x128xf32>
    %121 = vector.extract_strided_slice %120 {offsets = [0, 0], sizes = [2, 32], strides = [1, 1]} : vector<2x128xf32> to vector<2x32xf32>
    %122 = math.tanh %121 : vector<2x32xf32>
    %123 = vector.extract_strided_slice %120 {offsets = [0, 32], sizes = [2, 32], strides = [1, 1]} : vector<2x128xf32> to vector<2x32xf32>
    %124 = arith.negf %123 : vector<2x32xf32>
    %125 = math.exp %124 : vector<2x32xf32>
    %cst_33 = arith.constant 1.000000e+00 : f32
    %126 = vector.broadcast %cst_33 : f32 to vector<2x32xf32>
    %127 = arith.addf %126, %125 : vector<2x32xf32>
    %128 = arith.divf %126, %127 : vector<2x32xf32>
    %129 = vector.extract_strided_slice %120 {offsets = [0, 64], sizes = [2, 32], strides = [1, 1]} : vector<2x128xf32> to vector<2x32xf32>
    %130 = vector.extract_strided_slice %120 {offsets = [0, 96], sizes = [2, 32], strides = [1, 1]} : vector<2x128xf32> to vector<2x32xf32>
    %131 = arith.addf %130, %97 : vector<2x32xf32>
    %132 = arith.maximumf %131, %129 : vector<2x32xf32>
    %133 = arith.subf %129, %132 : vector<2x32xf32>
    %134 = math.exp %133 : vector<2x32xf32>
    %135 = arith.addf %130, %97 : vector<2x32xf32>
    %136 = arith.subf %135, %132 : vector<2x32xf32>
    %137 = math.exp %136 : vector<2x32xf32>
    %138 = arith.mulf %137, %105 : vector<2x32xf32>
    %139 = arith.mulf %134, %122 : vector<2x32xf32>
    %140 = arith.addf %138, %139 : vector<2x32xf32>
    %141 = arith.mulf %137, %107 : vector<2x32xf32>
    %142 = arith.addf %141, %134 : vector<2x32xf32>
    %143 = arith.mulf %128, %140 : vector<2x32xf32>
    %144 = arith.divf %143, %142 : vector<2x32xf32>
    %145 = arith.index_cast %c3_i32 : i32 to index
    %c0_34 = arith.constant 0 : index
    %c0_35 = arith.constant 0 : index
    %146 = vector.load %arg4[%145, %c0_34, %c0_35] : memref<8x2x32xf32, #tpu.memory_space<vmem>>, vector<1x2x32xf32>
    %147 = vector.shape_cast %146 : vector<1x2x32xf32> to vector<2x32xf32>
    %148 = vector.shape_cast %144 : vector<2x32xf32> to vector<1x2x32xf32>
    tpu.vector_store %arg4[%145, %c0_34, %c0_35], %148 {strides = array<i32>} : memref<8x2x32xf32, #tpu.memory_space<vmem>>, vector<1x2x32xf32>,
    %c4_i32 = arith.constant 4 : i32
    %149 = arith.index_cast %c4_i32 : i32 to index
    %c0_36 = arith.constant 0 : index
    %c0_37 = arith.constant 0 : index
    %150 = vector.load %arg1[%149, %c0_36, %c0_37] : memref<8x2x128xf32, #tpu.memory_space<vmem>>, vector<1x2x128xf32>
    %151 = vector.shape_cast %150 : vector<1x2x128xf32> to vector<2x128xf32>
    %cst_38 = arith.constant dense<0.000000e+00> : vector<2x128xf32>
    %152 = tpu.matmul %144, %3, %cst_38 {dimension_numbers = #tpu.dot_dimension_numbers<[1], [0], [0], [1], [0, 0, 1, 1], [], []>} : vector<2x32xf32>, vector<32x128xf32>, vector<2x128xf32> -> vector<2x128xf32>
    %153 = arith.addf %151, %152 : vector<2x128xf32>
    %154 = vector.broadcast %4 : vector<1x128xf32> to vector<2x128xf32>
    %155 = arith.addf %153, %154 : vector<2x128xf32>
    %156 = vector.extract_strided_slice %155 {offsets = [0, 0], sizes = [2, 32], strides = [1, 1]} : vector<2x128xf32> to vector<2x32xf32>
    %157 = math.tanh %156 : vector<2x32xf32>
    %158 = vector.extract_strided_slice %155 {offsets = [0, 32], sizes = [2, 32], strides = [1, 1]} : vector<2x128xf32> to vector<2x32xf32>
    %159 = arith.negf %158 : vector<2x32xf32>
    %160 = math.exp %159 : vector<2x32xf32>
    %cst_39 = arith.constant 1.000000e+00 : f32
    %161 = vector.broadcast %cst_39 : f32 to vector<2x32xf32>
    %162 = arith.addf %161, %160 : vector<2x32xf32>
    %163 = arith.divf %161, %162 : vector<2x32xf32>
    %164 = vector.extract_strided_slice %155 {offsets = [0, 64], sizes = [2, 32], strides = [1, 1]} : vector<2x128xf32> to vector<2x32xf32>
    %165 = vector.extract_strided_slice %155 {offsets = [0, 96], sizes = [2, 32], strides = [1, 1]} : vector<2x128xf32> to vector<2x32xf32>
    %166 = arith.addf %165, %132 : vector<2x32xf32>
    %167 = arith.maximumf %166, %164 : vector<2x32xf32>
    %168 = arith.subf %164, %167 : vector<2x32xf32>
    %169 = math.exp %168 : vector<2x32xf32>
    %170 = arith.addf %165, %132 : vector<2x32xf32>
    %171 = arith.subf %170, %167 : vector<2x32xf32>
    %172 = math.exp %171 : vector<2x32xf32>
    %173 = arith.mulf %172, %140 : vector<2x32xf32>
    %174 = arith.mulf %169, %157 : vector<2x32xf32>
    %175 = arith.addf %173, %174 : vector<2x32xf32>
    %176 = arith.mulf %172, %142 : vector<2x32xf32>
    %177 = arith.addf %176, %169 : vector<2x32xf32>
    %178 = arith.mulf %163, %175 : vector<2x32xf32>
    %179 = arith.divf %178, %177 : vector<2x32xf32>
    %180 = arith.index_cast %c4_i32 : i32 to index
    %c0_40 = arith.constant 0 : index
    %c0_41 = arith.constant 0 : index
    %181 = vector.load %arg4[%180, %c0_40, %c0_41] : memref<8x2x32xf32, #tpu.memory_space<vmem>>, vector<1x2x32xf32>
    %182 = vector.shape_cast %181 : vector<1x2x32xf32> to vector<2x32xf32>
    %183 = vector.shape_cast %179 : vector<2x32xf32> to vector<1x2x32xf32>
    tpu.vector_store %arg4[%180, %c0_40, %c0_41], %183 {strides = array<i32>} : memref<8x2x32xf32, #tpu.memory_space<vmem>>, vector<1x2x32xf32>,
    %c5_i32 = arith.constant 5 : i32
    %184 = arith.index_cast %c5_i32 : i32 to index
    %c0_42 = arith.constant 0 : index
    %c0_43 = arith.constant 0 : index
    %185 = vector.load %arg1[%184, %c0_42, %c0_43] : memref<8x2x128xf32, #tpu.memory_space<vmem>>, vector<1x2x128xf32>
    %186 = vector.shape_cast %185 : vector<1x2x128xf32> to vector<2x128xf32>
    %cst_44 = arith.constant dense<0.000000e+00> : vector<2x128xf32>
    %187 = tpu.matmul %179, %3, %cst_44 {dimension_numbers = #tpu.dot_dimension_numbers<[1], [0], [0], [1], [0, 0, 1, 1], [], []>} : vector<2x32xf32>, vector<32x128xf32>, vector<2x128xf32> -> vector<2x128xf32>
    %188 = arith.addf %186, %187 : vector<2x128xf32>
    %189 = vector.broadcast %4 : vector<1x128xf32> to vector<2x128xf32>
    %190 = arith.addf %188, %189 : vector<2x128xf32>
    %191 = vector.extract_strided_slice %190 {offsets = [0, 0], sizes = [2, 32], strides = [1, 1]} : vector<2x128xf32> to vector<2x32xf32>
    %192 = math.tanh %191 : vector<2x32xf32>
    %193 = vector.extract_strided_slice %190 {offsets = [0, 32], sizes = [2, 32], strides = [1, 1]} : vector<2x128xf32> to vector<2x32xf32>
    %194 = arith.negf %193 : vector<2x32xf32>
    %195 = math.exp %194 : vector<2x32xf32>
    %cst_45 = arith.constant 1.000000e+00 : f32
    %196 = vector.broadcast %cst_45 : f32 to vector<2x32xf32>
    %197 = arith.addf %196, %195 : vector<2x32xf32>
    %198 = arith.divf %196, %197 : vector<2x32xf32>
    %199 = vector.extract_strided_slice %190 {offsets = [0, 64], sizes = [2, 32], strides = [1, 1]} : vector<2x128xf32> to vector<2x32xf32>
    %200 = vector.extract_strided_slice %190 {offsets = [0, 96], sizes = [2, 32], strides = [1, 1]} : vector<2x128xf32> to vector<2x32xf32>
    %201 = arith.addf %200, %167 : vector<2x32xf32>
    %202 = arith.maximumf %201, %199 : vector<2x32xf32>
    %203 = arith.subf %199, %202 : vector<2x32xf32>
    %204 = math.exp %203 : vector<2x32xf32>
    %205 = arith.addf %200, %167 : vector<2x32xf32>
    %206 = arith.subf %205, %202 : vector<2x32xf32>
    %207 = math.exp %206 : vector<2x32xf32>
    %208 = arith.mulf %207, %175 : vector<2x32xf32>
    %209 = arith.mulf %204, %192 : vector<2x32xf32>
    %210 = arith.addf %208, %209 : vector<2x32xf32>
    %211 = arith.mulf %207, %177 : vector<2x32xf32>
    %212 = arith.addf %211, %204 : vector<2x32xf32>
    %213 = arith.mulf %198, %210 : vector<2x32xf32>
    %214 = arith.divf %213, %212 : vector<2x32xf32>
    %215 = arith.index_cast %c5_i32 : i32 to index
    %c0_46 = arith.constant 0 : index
    %c0_47 = arith.constant 0 : index
    %216 = vector.load %arg4[%215, %c0_46, %c0_47] : memref<8x2x32xf32, #tpu.memory_space<vmem>>, vector<1x2x32xf32>
    %217 = vector.shape_cast %216 : vector<1x2x32xf32> to vector<2x32xf32>
    %218 = vector.shape_cast %214 : vector<2x32xf32> to vector<1x2x32xf32>
    tpu.vector_store %arg4[%215, %c0_46, %c0_47], %218 {strides = array<i32>} : memref<8x2x32xf32, #tpu.memory_space<vmem>>, vector<1x2x32xf32>,
    %c6_i32 = arith.constant 6 : i32
    %219 = arith.index_cast %c6_i32 : i32 to index
    %c0_48 = arith.constant 0 : index
    %c0_49 = arith.constant 0 : index
    %220 = vector.load %arg1[%219, %c0_48, %c0_49] : memref<8x2x128xf32, #tpu.memory_space<vmem>>, vector<1x2x128xf32>
    %221 = vector.shape_cast %220 : vector<1x2x128xf32> to vector<2x128xf32>
    %cst_50 = arith.constant dense<0.000000e+00> : vector<2x128xf32>
    %222 = tpu.matmul %214, %3, %cst_50 {dimension_numbers = #tpu.dot_dimension_numbers<[1], [0], [0], [1], [0, 0, 1, 1], [], []>} : vector<2x32xf32>, vector<32x128xf32>, vector<2x128xf32> -> vector<2x128xf32>
    %223 = arith.addf %221, %222 : vector<2x128xf32>
    %224 = vector.broadcast %4 : vector<1x128xf32> to vector<2x128xf32>
    %225 = arith.addf %223, %224 : vector<2x128xf32>
    %226 = vector.extract_strided_slice %225 {offsets = [0, 0], sizes = [2, 32], strides = [1, 1]} : vector<2x128xf32> to vector<2x32xf32>
    %227 = math.tanh %226 : vector<2x32xf32>
    %228 = vector.extract_strided_slice %225 {offsets = [0, 32], sizes = [2, 32], strides = [1, 1]} : vector<2x128xf32> to vector<2x32xf32>
    %229 = arith.negf %228 : vector<2x32xf32>
    %230 = math.exp %229 : vector<2x32xf32>
    %cst_51 = arith.constant 1.000000e+00 : f32
    %231 = vector.broadcast %cst_51 : f32 to vector<2x32xf32>
    %232 = arith.addf %231, %230 : vector<2x32xf32>
    %233 = arith.divf %231, %232 : vector<2x32xf32>
    %234 = vector.extract_strided_slice %225 {offsets = [0, 64], sizes = [2, 32], strides = [1, 1]} : vector<2x128xf32> to vector<2x32xf32>
    %235 = vector.extract_strided_slice %225 {offsets = [0, 96], sizes = [2, 32], strides = [1, 1]} : vector<2x128xf32> to vector<2x32xf32>
    %236 = arith.addf %235, %202 : vector<2x32xf32>
    %237 = arith.maximumf %236, %234 : vector<2x32xf32>
    %238 = arith.subf %234, %237 : vector<2x32xf32>
    %239 = math.exp %238 : vector<2x32xf32>
    %240 = arith.addf %235, %202 : vector<2x32xf32>
    %241 = arith.subf %240, %237 : vector<2x32xf32>
    %242 = math.exp %241 : vector<2x32xf32>
    %243 = arith.mulf %242, %210 : vector<2x32xf32>
    %244 = arith.mulf %239, %227 : vector<2x32xf32>
    %245 = arith.addf %243, %244 : vector<2x32xf32>
    %246 = arith.mulf %242, %212 : vector<2x32xf32>
    %247 = arith.addf %246, %239 : vector<2x32xf32>
    %248 = arith.mulf %233, %245 : vector<2x32xf32>
    %249 = arith.divf %248, %247 : vector<2x32xf32>
    %250 = arith.index_cast %c6_i32 : i32 to index
    %c0_52 = arith.constant 0 : index
    %c0_53 = arith.constant 0 : index
    %251 = vector.load %arg4[%250, %c0_52, %c0_53] : memref<8x2x32xf32, #tpu.memory_space<vmem>>, vector<1x2x32xf32>
    %252 = vector.shape_cast %251 : vector<1x2x32xf32> to vector<2x32xf32>
    %253 = vector.shape_cast %249 : vector<2x32xf32> to vector<1x2x32xf32>
    tpu.vector_store %arg4[%250, %c0_52, %c0_53], %253 {strides = array<i32>} : memref<8x2x32xf32, #tpu.memory_space<vmem>>, vector<1x2x32xf32>,
    %c7_i32 = arith.constant 7 : i32
    %254 = arith.index_cast %c7_i32 : i32 to index
    %c0_54 = arith.constant 0 : index
    %c0_55 = arith.constant 0 : index
    %255 = vector.load %arg1[%254, %c0_54, %c0_55] : memref<8x2x128xf32, #tpu.memory_space<vmem>>, vector<1x2x128xf32>
    %256 = vector.shape_cast %255 : vector<1x2x128xf32> to vector<2x128xf32>
    %cst_56 = arith.constant dense<0.000000e+00> : vector<2x128xf32>
    %257 = tpu.matmul %249, %3, %cst_56 {dimension_numbers = #tpu.dot_dimension_numbers<[1], [0], [0], [1], [0, 0, 1, 1], [], []>} : vector<2x32xf32>, vector<32x128xf32>, vector<2x128xf32> -> vector<2x128xf32>
    %258 = arith.addf %256, %257 : vector<2x128xf32>
    %259 = vector.broadcast %4 : vector<1x128xf32> to vector<2x128xf32>
    %260 = arith.addf %258, %259 : vector<2x128xf32>
    %261 = vector.extract_strided_slice %260 {offsets = [0, 0], sizes = [2, 32], strides = [1, 1]} : vector<2x128xf32> to vector<2x32xf32>
    %262 = math.tanh %261 : vector<2x32xf32>
    %263 = vector.extract_strided_slice %260 {offsets = [0, 32], sizes = [2, 32], strides = [1, 1]} : vector<2x128xf32> to vector<2x32xf32>
    %264 = arith.negf %263 : vector<2x32xf32>
    %265 = math.exp %264 : vector<2x32xf32>
    %cst_57 = arith.constant 1.000000e+00 : f32
    %266 = vector.broadcast %cst_57 : f32 to vector<2x32xf32>
    %267 = arith.addf %266, %265 : vector<2x32xf32>
    %268 = arith.divf %266, %267 : vector<2x32xf32>
    %269 = vector.extract_strided_slice %260 {offsets = [0, 64], sizes = [2, 32], strides = [1, 1]} : vector<2x128xf32> to vector<2x32xf32>
    %270 = vector.extract_strided_slice %260 {offsets = [0, 96], sizes = [2, 32], strides = [1, 1]} : vector<2x128xf32> to vector<2x32xf32>
    %271 = arith.addf %270, %237 : vector<2x32xf32>
    %272 = arith.maximumf %271, %269 : vector<2x32xf32>
    %273 = arith.subf %269, %272 : vector<2x32xf32>
    %274 = math.exp %273 : vector<2x32xf32>
    %275 = arith.addf %270, %237 : vector<2x32xf32>
    %276 = arith.subf %275, %272 : vector<2x32xf32>
    %277 = math.exp %276 : vector<2x32xf32>
    %278 = arith.mulf %277, %245 : vector<2x32xf32>
    %279 = arith.mulf %274, %262 : vector<2x32xf32>
    %280 = arith.addf %278, %279 : vector<2x32xf32>
    %281 = arith.mulf %277, %247 : vector<2x32xf32>
    %282 = arith.addf %281, %274 : vector<2x32xf32>
    %283 = arith.mulf %268, %280 : vector<2x32xf32>
    %284 = arith.divf %283, %282 : vector<2x32xf32>
    %285 = arith.index_cast %c7_i32 : i32 to index
    %c0_58 = arith.constant 0 : index
    %c0_59 = arith.constant 0 : index
    %286 = vector.load %arg4[%285, %c0_58, %c0_59] : memref<8x2x32xf32, #tpu.memory_space<vmem>>, vector<1x2x32xf32>
    %287 = vector.shape_cast %286 : vector<1x2x32xf32> to vector<2x32xf32>
    %288 = vector.shape_cast %284 : vector<2x32xf32> to vector<1x2x32xf32>
    tpu.vector_store %arg4[%285, %c0_58, %c0_59], %288 {strides = array<i32>} : memref<8x2x32xf32, #tpu.memory_space<vmem>>, vector<1x2x32xf32>,
    %c8_i32 = arith.constant 8 : i32
    %c0_60 = arith.constant 0 : index
    %c0_61 = arith.constant 0 : index
    %289 = vector.load %arg5[%c0_60, %c0_61] : memref<2x32xf32, #tpu.memory_space<vmem>>, vector<2x32xf32>
    tpu.vector_store %arg5[%c0_60, %c0_61], %284 {strides = array<i32>} : memref<2x32xf32, #tpu.memory_space<vmem>>, vector<2x32xf32>,
    %c0_62 = arith.constant 0 : index
    %c0_63 = arith.constant 0 : index
    %290 = vector.load %arg6[%c0_62, %c0_63] : memref<2x32xf32, #tpu.memory_space<vmem>>, vector<2x32xf32>
    tpu.vector_store %arg6[%c0_62, %c0_63], %280 {strides = array<i32>} : memref<2x32xf32, #tpu.memory_space<vmem>>, vector<2x32xf32>,
    %c0_64 = arith.constant 0 : index
    %c0_65 = arith.constant 0 : index
    %291 = vector.load %arg7[%c0_64, %c0_65] : memref<2x32xf32, #tpu.memory_space<vmem>>, vector<2x32xf32>
    tpu.vector_store %arg7[%c0_64, %c0_65], %282 {strides = array<i32>} : memref<2x32xf32, #tpu.memory_space<vmem>>, vector<2x32xf32>,
    %c0_66 = arith.constant 0 : index
    %c0_67 = arith.constant 0 : index
    %292 = vector.load %arg8[%c0_66, %c0_67] : memref<2x32xf32, #tpu.memory_space<vmem>>, vector<2x32xf32>
    tpu.vector_store %arg8[%c0_66, %c0_67], %272 {strides = array<i32>} : memref<2x32xf32, #tpu.memory_space<vmem>>, vector<2x32xf32>,
    return
  }
  func.func @transform_0(%arg0: i32) -> (i32, i32, i32) {
    %c0_i32 = arith.constant 0 : i32
    %c0_i32_0 = arith.constant 0 : i32
    %c0_i32_1 = arith.constant 0 : i32
    return %arg0, %c0_i32, %c0_i32_0 : i32, i32, i32
  }
  func.func @transform_1(%arg0: i32) -> (i32, i32) {
    %c0_i32 = arith.constant 0 : i32
    %c0_i32_0 = arith.constant 0 : i32
    %c0_i32_1 = arith.constant 0 : i32
    return %c0_i32, %c0_i32_0 : i32, i32
  }
  func.func @transform_2(%arg0: i32) -> (i32, i32) {
    %c0_i32 = arith.constant 0 : i32
    %c0_i32_0 = arith.constant 0 : i32
    %c0_i32_1 = arith.constant 0 : i32
    return %c0_i32, %c0_i32_0 : i32, i32
  }
  func.func @transform_3(%arg0: i32) -> (i32, i32, i32) {
    %c0_i32 = arith.constant 0 : i32
    %c0_i32_0 = arith.constant 0 : i32
    %c0_i32_1 = arith.constant 0 : i32
    return %arg0, %c0_i32, %c0_i32_0 : i32, i32, i32
  }
  func.func @transform_4(%arg0: i32) -> (i32, i32) {
    %c0_i32 = arith.constant 0 : i32
    %c0_i32_0 = arith.constant 0 : i32
    %c0_i32_1 = arith.constant 0 : i32
    return %c0_i32, %c0_i32_0 : i32, i32
  }
  func.func @transform_5(%arg0: i32) -> (i32, i32) {
    %c0_i32 = arith.constant 0 : i32
    %c0_i32_0 = arith.constant 0 : i32
    %c0_i32_1 = arith.constant 0 : i32
    return %c0_i32, %c0_i32_0 : i32, i32
  }
  func.func @transform_6(%arg0: i32) -> (i32, i32) {
    %c0_i32 = arith.constant 0 : i32
    %c0_i32_0 = arith.constant 0 : i32
    %c0_i32_1 = arith.constant 0 : i32
    return %c0_i32, %c0_i32_0 : i32, i32
  }
  func.func @transform_7(%arg0: i32) -> (i32, i32) {
    %c0_i32 = arith.constant 0 : i32
    %c0_i32_0 = arith.constant 0 : i32
    %c0_i32_1 = arith.constant 0 : i32
    return %c0_i32, %c0_i32_0 : i32, i32
  }
}

module attributes {stable_mosaic.version = 11 : i64} {
  func.func @_slstm_post_kernel(%arg0: i32, %arg1: memref<16x32xf32, #tpu.memory_space<vmem>>, %arg2: memref<16x32xf32, #tpu.memory_space<vmem>>, %arg3: memref<1x32xf32, #tpu.memory_space<vmem>>, %arg4: memref<1x32xf32, #tpu.memory_space<vmem>>, %arg5: memref<32x4xf32, #tpu.memory_space<vmem>>, %arg6: memref<4x32xf32, #tpu.memory_space<vmem>>, %arg7: memref<32x42xf32, #tpu.memory_space<vmem>>, %arg8: memref<1x42xf32, #tpu.memory_space<vmem>>, %arg9: memref<32x42xf32, #tpu.memory_space<vmem>>, %arg10: memref<1x42xf32, #tpu.memory_space<vmem>>, %arg11: memref<42x32xf32, #tpu.memory_space<vmem>>, %arg12: memref<1x32xf32, #tpu.memory_space<vmem>>, %arg13: memref<16x32xf32, #tpu.memory_space<vmem>>) attributes {dimension_semantics = [#tpu.dimension_semantics<parallel>], iteration_bounds = array<i64: 1>, scalar_prefetch = 0 : i64, scratch_operands = 0 : i64, tpu.core_type = #tpu.core_type<tc>, window_params = [{transform_indices = @transform_0, window_bounds = array<i64: 16, 32>}, {transform_indices = @transform_1, window_bounds = array<i64: 16, 32>}, {pipeline_mode = #tpu.pipeline_mode<synchronous>, transform_indices = @transform_2, window_bounds = array<i64: 1, 32>}, {pipeline_mode = #tpu.pipeline_mode<synchronous>, transform_indices = @transform_3, window_bounds = array<i64: 1, 32>}, {pipeline_mode = #tpu.pipeline_mode<synchronous>, transform_indices = @transform_4, window_bounds = array<i64: 32, 4>}, {pipeline_mode = #tpu.pipeline_mode<synchronous>, transform_indices = @transform_5, window_bounds = array<i64: 4, 32>}, {pipeline_mode = #tpu.pipeline_mode<synchronous>, transform_indices = @transform_6, window_bounds = array<i64: 32, 42>}, {pipeline_mode = #tpu.pipeline_mode<synchronous>, transform_indices = @transform_7, window_bounds = array<i64: 1, 42>}, {pipeline_mode = #tpu.pipeline_mode<synchronous>, transform_indices = @transform_8, window_bounds = array<i64: 32, 42>}, {pipeline_mode = #tpu.pipeline_mode<synchronous>, transform_indices = @transform_9, window_bounds = array<i64: 1, 42>}, {pipeline_mode = #tpu.pipeline_mode<synchronous>, transform_indices = @transform_10, window_bounds = array<i64: 42, 32>}, {pipeline_mode = #tpu.pipeline_mode<synchronous>, transform_indices = @transform_11, window_bounds = array<i64: 1, 32>}, {transform_indices = @transform_12, window_bounds = array<i64: 16, 32>}]} {
    %c0 = arith.constant 0 : index
    %c0_0 = arith.constant 0 : index
    %0 = vector.load %arg1[%c0, %c0_0] : memref<16x32xf32, #tpu.memory_space<vmem>>, vector<16x32xf32>
    %c0_1 = arith.constant 0 : index
    %c0_2 = arith.constant 0 : index
    %1 = vector.load %arg5[%c0_1, %c0_2] : memref<32x4xf32, #tpu.memory_space<vmem>>, vector<32x4xf32>
    %c0_3 = arith.constant 0 : index
    %c0_4 = arith.constant 0 : index
    %2 = vector.load %arg6[%c0_3, %c0_4] : memref<4x32xf32, #tpu.memory_space<vmem>>, vector<4x32xf32>
    %c0_5 = arith.constant 0 : index
    %c0_6 = arith.constant 0 : index
    %3 = vector.load %arg3[%c0_5, %c0_6] : memref<1x32xf32, #tpu.memory_space<vmem>>, vector<1x32xf32>
    %c0_7 = arith.constant 0 : index
    %c0_8 = arith.constant 0 : index
    %4 = vector.load %arg4[%c0_7, %c0_8] : memref<1x32xf32, #tpu.memory_space<vmem>>, vector<1x32xf32>
    %5 = arith.mulf %0, %0 : vector<16x32xf32>
    %6 = tpu.concatenate %0, %5 in 0 : vector<16x32xf32>, vector<16x32xf32> -> vector<32x32xf32>
    %cst = arith.constant dense<0.000000e+00> : vector<32x4xf32>
    %7 = tpu.matmul %6, %1, %cst {dimension_numbers = #tpu.dot_dimension_numbers<[1], [0], [0], [1], [0, 0, 1, 1], [], []>} : vector<32x32xf32>, vector<32x4xf32>, vector<32x4xf32> -> vector<32x4xf32>
    %cst_9 = arith.constant 1.250000e-01 : f32
    %8 = vector.broadcast %cst_9 : f32 to vector<32x4xf32>
    %9 = arith.mulf %7, %8 : vector<32x4xf32>
    %10 = vector.extract_strided_slice %9 {offsets = [0, 0], sizes = [16, 4], strides = [1, 1]} : vector<32x4xf32> to vector<16x4xf32>
    %11 = vector.extract_strided_slice %9 {offsets = [16, 0], sizes = [16, 4], strides = [1, 1]} : vector<32x4xf32> to vector<16x4xf32>
    %12 = arith.mulf %10, %10 : vector<16x4xf32>
    %13 = arith.subf %11, %12 : vector<16x4xf32>
    %cst_10 = arith.constant 9.99999974E-6 : f32
    %14 = vector.broadcast %cst_10 : f32 to vector<16x4xf32>
    %15 = arith.addf %13, %14 : vector<16x4xf32>
    %16 = math.rsqrt %15 : vector<16x4xf32>
    %17 = tpu.concatenate %10, %16 in 0 : vector<16x4xf32>, vector<16x4xf32> -> vector<32x4xf32>
    %cst_11 = arith.constant dense<0.000000e+00> : vector<32x32xf32>
    %18 = tpu.matmul %17, %2, %cst_11 {dimension_numbers = #tpu.dot_dimension_numbers<[1], [0], [0], [1], [0, 0, 1, 1], [], []>} : vector<32x4xf32>, vector<4x32xf32>, vector<32x32xf32> -> vector<32x32xf32>
    %19 = vector.extract_strided_slice %18 {offsets = [0, 0], sizes = [16, 32], strides = [1, 1]} : vector<32x32xf32> to vector<16x32xf32>
    %20 = arith.subf %0, %19 : vector<16x32xf32>
    %21 = vector.extract_strided_slice %18 {offsets = [16, 0], sizes = [16, 32], strides = [1, 1]} : vector<32x32xf32> to vector<16x32xf32>
    %22 = arith.mulf %20, %21 : vector<16x32xf32>
    %23 = vector.broadcast %3 : vector<1x32xf32> to vector<16x32xf32>
    %24 = arith.mulf %22, %23 : vector<16x32xf32>
    %25 = vector.broadcast %4 : vector<1x32xf32> to vector<16x32xf32>
    %26 = arith.addf %24, %25 : vector<16x32xf32>
    %c0_12 = arith.constant 0 : index
    %c0_13 = arith.constant 0 : index
    %27 = vector.load %arg7[%c0_12, %c0_13] : memref<32x42xf32, #tpu.memory_space<vmem>>, vector<32x42xf32>
    %cst_14 = arith.constant dense<0.000000e+00> : vector<16x42xf32>
    %28 = tpu.matmul %26, %27, %cst_14 {dimension_numbers = #tpu.dot_dimension_numbers<[1], [0], [0], [1], [0, 0, 1, 1], [], []>} : vector<16x32xf32>, vector<32x42xf32>, vector<16x42xf32> -> vector<16x42xf32>
    %c0_15 = arith.constant 0 : index
    %c0_16 = arith.constant 0 : index
    %29 = vector.load %arg8[%c0_15, %c0_16] : memref<1x42xf32, #tpu.memory_space<vmem>>, vector<1x42xf32>
    %30 = vector.broadcast %29 : vector<1x42xf32> to vector<16x42xf32>
    %31 = arith.addf %28, %30 : vector<16x42xf32>
    %c0_17 = arith.constant 0 : index
    %c0_18 = arith.constant 0 : index
    %32 = vector.load %arg9[%c0_17, %c0_18] : memref<32x42xf32, #tpu.memory_space<vmem>>, vector<32x42xf32>
    %cst_19 = arith.constant dense<0.000000e+00> : vector<16x42xf32>
    %33 = tpu.matmul %26, %32, %cst_19 {dimension_numbers = #tpu.dot_dimension_numbers<[1], [0], [0], [1], [0, 0, 1, 1], [], []>} : vector<16x32xf32>, vector<32x42xf32>, vector<16x42xf32> -> vector<16x42xf32>
    %c0_20 = arith.constant 0 : index
    %c0_21 = arith.constant 0 : index
    %34 = vector.load %arg10[%c0_20, %c0_21] : memref<1x42xf32, #tpu.memory_space<vmem>>, vector<1x42xf32>
    %35 = vector.broadcast %34 : vector<1x42xf32> to vector<16x42xf32>
    %36 = arith.addf %33, %35 : vector<16x42xf32>
    %cst_22 = arith.constant 5.000000e-01 : f32
    %37 = vector.broadcast %cst_22 : f32 to vector<16x42xf32>
    %38 = arith.mulf %37, %36 : vector<16x42xf32>
    %cst_23 = arith.constant 0.707106769 : f32
    %39 = vector.broadcast %cst_23 : f32 to vector<16x42xf32>
    %40 = arith.mulf %36, %39 : vector<16x42xf32>
    %41 = math.absf %40 : vector<16x42xf32>
    %cst_24 = arith.constant 0.327591091 : f32
    %42 = vector.broadcast %cst_24 : f32 to vector<16x42xf32>
    %43 = arith.mulf %42, %41 : vector<16x42xf32>
    %cst_25 = arith.constant 1.000000e+00 : f32
    %44 = vector.broadcast %cst_25 : f32 to vector<16x42xf32>
    %45 = arith.addf %44, %43 : vector<16x42xf32>
    %cst_26 = arith.constant 1.000000e+00 : f32
    %46 = vector.broadcast %cst_26 : f32 to vector<16x42xf32>
    %47 = arith.divf %46, %45 : vector<16x42xf32>
    %cst_27 = arith.constant 1.06140542 : f32
    %48 = vector.broadcast %cst_27 : f32 to vector<16x42xf32>
    %49 = arith.mulf %47, %48 : vector<16x42xf32>
    %cst_28 = arith.constant -1.45315206 : f32
    %50 = vector.broadcast %cst_28 : f32 to vector<16x42xf32>
    %51 = arith.addf %50, %49 : vector<16x42xf32>
    %52 = arith.mulf %47, %51 : vector<16x42xf32>
    %cst_29 = arith.constant 1.42141378 : f32
    %53 = vector.broadcast %cst_29 : f32 to vector<16x42xf32>
    %54 = arith.addf %53, %52 : vector<16x42xf32>
    %55 = arith.mulf %47, %54 : vector<16x42xf32>
    %cst_30 = arith.constant -0.284496725 : f32
    %56 = vector.broadcast %cst_30 : f32 to vector<16x42xf32>
    %57 = arith.addf %56, %55 : vector<16x42xf32>
    %58 = arith.mulf %47, %57 : vector<16x42xf32>
    %cst_31 = arith.constant 0.254829586 : f32
    %59 = vector.broadcast %cst_31 : f32 to vector<16x42xf32>
    %60 = arith.addf %59, %58 : vector<16x42xf32>
    %61 = arith.mulf %47, %60 : vector<16x42xf32>
    %cst_32 = arith.constant 0.000000e+00 : f32
    %62 = vector.broadcast %cst_32 : f32 to vector<16x42xf32>
    %63 = arith.subf %62, %41 : vector<16x42xf32>
    %64 = arith.mulf %63, %41 : vector<16x42xf32>
    %65 = math.exp %64 : vector<16x42xf32>
    %66 = arith.mulf %61, %65 : vector<16x42xf32>
    %cst_33 = arith.constant 1.000000e+00 : f32
    %67 = vector.broadcast %cst_33 : f32 to vector<16x42xf32>
    %68 = arith.subf %67, %66 : vector<16x42xf32>
    %cst_34 = arith.constant 0.000000e+00 : f32
    %69 = vector.broadcast %cst_34 : f32 to vector<16x42xf32>
    %70 = arith.cmpf oge, %40, %69 : vector<16x42xf32>
    %cst_35 = arith.constant 0.000000e+00 : f32
    %71 = vector.broadcast %cst_35 : f32 to vector<16x42xf32>
    %72 = arith.subf %71, %68 : vector<16x42xf32>
    %73 = arith.select %70, %68, %72 : vector<16x42xi1>, vector<16x42xf32>
    %cst_36 = arith.constant 1.000000e+00 : f32
    %74 = vector.broadcast %cst_36 : f32 to vector<16x42xf32>
    %75 = arith.addf %74, %73 : vector<16x42xf32>
    %76 = arith.mulf %38, %75 : vector<16x42xf32>
    %77 = arith.mulf %31, %76 : vector<16x42xf32>
    %c0_37 = arith.constant 0 : index
    %c0_38 = arith.constant 0 : index
    %78 = vector.load %arg11[%c0_37, %c0_38] : memref<42x32xf32, #tpu.memory_space<vmem>>, vector<42x32xf32>
    %cst_39 = arith.constant dense<0.000000e+00> : vector<16x32xf32>
    %79 = tpu.matmul %77, %78, %cst_39 {dimension_numbers = #tpu.dot_dimension_numbers<[1], [0], [0], [1], [0, 0, 1, 1], [], []>} : vector<16x42xf32>, vector<42x32xf32>, vector<16x32xf32> -> vector<16x32xf32>
    %c0_40 = arith.constant 0 : index
    %c0_41 = arith.constant 0 : index
    %80 = vector.load %arg12[%c0_40, %c0_41] : memref<1x32xf32, #tpu.memory_space<vmem>>, vector<1x32xf32>
    %81 = vector.broadcast %80 : vector<1x32xf32> to vector<16x32xf32>
    %82 = arith.addf %79, %81 : vector<16x32xf32>
    %c0_42 = arith.constant 0 : index
    %c0_43 = arith.constant 0 : index
    %83 = vector.load %arg2[%c0_42, %c0_43] : memref<16x32xf32, #tpu.memory_space<vmem>>, vector<16x32xf32>
    %84 = arith.addf %82, %83 : vector<16x32xf32>
    %c0_44 = arith.constant 0 : index
    %c0_45 = arith.constant 0 : index
    %85 = vector.load %arg13[%c0_44, %c0_45] : memref<16x32xf32, #tpu.memory_space<vmem>>, vector<16x32xf32>
    tpu.vector_store %arg13[%c0_44, %c0_45], %84 {strides = array<i32>} : memref<16x32xf32, #tpu.memory_space<vmem>>, vector<16x32xf32>,
    return
  }
  func.func @transform_0(%arg0: i32) -> (i32, i32) {
    %c0_i32 = arith.constant 0 : i32
    %c0_i32_0 = arith.constant 0 : i32
    return %arg0, %c0_i32 : i32, i32
  }
  func.func @transform_1(%arg0: i32) -> (i32, i32) {
    %c0_i32 = arith.constant 0 : i32
    %c0_i32_0 = arith.constant 0 : i32
    return %arg0, %c0_i32 : i32, i32
  }
  func.func @transform_2(%arg0: i32) -> (i32, i32) {
    %c0_i32 = arith.constant 0 : i32
    %c0_i32_0 = arith.constant 0 : i32
    %c0_i32_1 = arith.constant 0 : i32
    return %c0_i32, %c0_i32_0 : i32, i32
  }
  func.func @transform_3(%arg0: i32) -> (i32, i32) {
    %c0_i32 = arith.constant 0 : i32
    %c0_i32_0 = arith.constant 0 : i32
    %c0_i32_1 = arith.constant 0 : i32
    return %c0_i32, %c0_i32_0 : i32, i32
  }
  func.func @transform_4(%arg0: i32) -> (i32, i32) {
    %c0_i32 = arith.constant 0 : i32
    %c0_i32_0 = arith.constant 0 : i32
    %c0_i32_1 = arith.constant 0 : i32
    return %c0_i32, %c0_i32_0 : i32, i32
  }
  func.func @transform_5(%arg0: i32) -> (i32, i32) {
    %c0_i32 = arith.constant 0 : i32
    %c0_i32_0 = arith.constant 0 : i32
    %c0_i32_1 = arith.constant 0 : i32
    return %c0_i32, %c0_i32_0 : i32, i32
  }
  func.func @transform_6(%arg0: i32) -> (i32, i32) {
    %c0_i32 = arith.constant 0 : i32
    %c0_i32_0 = arith.constant 0 : i32
    %c0_i32_1 = arith.constant 0 : i32
    return %c0_i32, %c0_i32_0 : i32, i32
  }
  func.func @transform_7(%arg0: i32) -> (i32, i32) {
    %c0_i32 = arith.constant 0 : i32
    %c0_i32_0 = arith.constant 0 : i32
    %c0_i32_1 = arith.constant 0 : i32
    return %c0_i32, %c0_i32_0 : i32, i32
  }
  func.func @transform_8(%arg0: i32) -> (i32, i32) {
    %c0_i32 = arith.constant 0 : i32
    %c0_i32_0 = arith.constant 0 : i32
    %c0_i32_1 = arith.constant 0 : i32
    return %c0_i32, %c0_i32_0 : i32, i32
  }
  func.func @transform_9(%arg0: i32) -> (i32, i32) {
    %c0_i32 = arith.constant 0 : i32
    %c0_i32_0 = arith.constant 0 : i32
    %c0_i32_1 = arith.constant 0 : i32
    return %c0_i32, %c0_i32_0 : i32, i32
  }
  func.func @transform_10(%arg0: i32) -> (i32, i32) {
    %c0_i32 = arith.constant 0 : i32
    %c0_i32_0 = arith.constant 0 : i32
    %c0_i32_1 = arith.constant 0 : i32
    return %c0_i32, %c0_i32_0 : i32, i32
  }
  func.func @transform_11(%arg0: i32) -> (i32, i32) {
    %c0_i32 = arith.constant 0 : i32
    %c0_i32_0 = arith.constant 0 : i32
    %c0_i32_1 = arith.constant 0 : i32
    return %c0_i32, %c0_i32_0 : i32, i32
  }
  func.func @transform_12(%arg0: i32) -> (i32, i32) {
    %c0_i32 = arith.constant 0 : i32
    %c0_i32_0 = arith.constant 0 : i32
    return %arg0, %c0_i32 : i32, i32
  }
}

</mosaic_0001>

<bundles_post_ra>
// kernel: xlstm_forward.6
= control target key start
LH: loop header
LB: loop body
LE: loop exit
PB: predicated region body
PF: predicated region fallthrough
CT: control target
= control target key end

     0   :  { %20 = vsyncpa [#allocation3], 0  ;;  %s1033_s0 = inlined_call_operand.vmem [shape: f32[16,32], index: 0, kind: input, shape index: {}]   ;;  %s1034_s1 = inlined_call_operand.vmem [shape: f32[1,32], index: 1, kind: input, shape index: {}]   ;;  %s1035_s2 = inlined_call_operand.vmem [shape: f32[1,32], index: 2, kind: input, shape index: {}]   ;;  %s1036_s3 = inlined_call_operand.hbm [shape: f32[32,64], index: 3, kind: input, shape index: {}]   ;;  %s1037_s4 = inlined_call_operand.vmem [shape: f32[1,64], index: 4, kind: input, shape index: {}]   ;;  %s1038_s5 = inlined_call_operand.hbm [shape: f32[32,32], index: 5, kind: input, shape index: {}]   ;;  %s1039_s6 = inlined_call_operand.vmem [shape: f32[1,32], index: 6, kind: input, shape index: {}]   ;;  %s1040_s7 = inlined_call_operand.hbm [shape: f32[64,64], index: 7, kind: input, shape index: {}]   ;;  %s1041_s8 = inlined_call_operand.vmem [shape: f32[1,64], index: 8, kind: input, shape index: {}]   ;;  %s1042_s9 = inlined_call_operand.hbm [shape: f32[64,160], index: 9, kind: input, shape index: {}]   ;;  %s1043_s10 = inlined_call_operand.vmem [shape: f32[1,160], index: 10, kind: input, shape index: {}]   ;;  %s1044_s11 = inlined_call_operand.hbm [shape: f32[64,64], index: 11, kind: input, shape index: {}]   ;;  %s1045_s12 = inlined_call_operand.vmem [shape: f32[1,64], index: 12, kind: input, shape index: {}]   ;;  %s1046_s13 = inlined_call_operand.vmem [shape: f32[6,16,32], index: 13, kind: output, shape index: {0}]   ;;  %s1047_s14 = inlined_call_operand.vmem [shape: f32[2,16,32], index: 14, kind: output, shape index: {1}]  }
   0x1   :  { %21 = vsyncpa [#allocation5], 0 }
   0x2   :  { %22 = vsyncpa [#allocation8], 0  ;;  %s48_s15 = sshll.u32 %s1038_s5, 4  ;;  %s793_s16 = smov [#allocation4]   ;;  %s49_s15 = int_to_ptr.hbm [resolvable:$true] %s48_s15 }
   0x3   :  { %s50_s17 = sshll.u32 %s793_s16, 4  ;;  %s78_s20 = sshll.u32 %s1042_s9, 4  ;;  %s51_s17 = int_to_ptr.vmem [resolvable:$true] %s50_s17  ;;  %s79_s20 = int_to_ptr.hbm [resolvable:$true] %s78_s20 }
   0x4   :  { %s794_s21 = smov 128   ;;  %s795_s22 = smov 8  }
   0x5   :  { %56 = dma.hbm_to_vmem [thread:$0]  %s49_s15, 512, %s51_s17, [#allocation5], %s794_s21, %s794_s21, %s795_s22  }
   0x6   :  { %s796_s23 = smov [#allocation7]   ;;  %s797_s25 = smov 256  }
   0x7   :  { %s80_s24 = sshll.u32 %s796_s23, 4  ;;  %s798_s5 = smov 16   ;;  %s81_s24 = int_to_ptr.vmem [resolvable:$true] %s80_s24 }
   0x8   :  { %86 = dma.hbm_to_vmem [thread:$0]  %s79_s20, 2048, %s81_s24, [#allocation8], %s797_s25, %s797_s25, %s798_s5  }
   0x9   :  { %s33_s28 = sshll.u32 %s1036_s3, 4  ;;  %s799_s29 = smov [#allocation2]   ;;  %s34_s28 = int_to_ptr.hbm [resolvable:$true] %s33_s28 }
   0xa   :  { %s35_s9 = sshll.u32 %s799_s29, 4  ;;  %s63_s18 = sshll.u32 %s1040_s7, 4  ;;  %s36_s9 = int_to_ptr.vmem [resolvable:$true] %s35_s9  ;;  %s64_s18 = int_to_ptr.hbm [resolvable:$true] %s63_s18 }
   0xb   :  { %41 = dma.hbm_to_vmem [thread:$0]  %s34_s28, 512, %s36_s9, [#allocation3], %s794_s21, %s794_s21, %s795_s22  }
   0xc   :  { %s800_s15 = smov [#allocation6]   ;;  %s93_s23 = sshll.u32 %s1044_s11, 4  ;;  %s94_s23 = int_to_ptr.hbm [resolvable:$true] %s93_s23 }
   0xd   :  { %s65_s17 = sshll.u32 %s800_s15, 4  ;;  %s801_s3 = smov [#allocation9]   ;;  %s66_s17 = int_to_ptr.vmem [resolvable:$true] %s65_s17 }
   0xe   :  { %71 = dma.hbm_to_vmem [thread:$0]  %s64_s18, 1024, %s66_s17, [#allocation5], %s794_s21, %s794_s21, %s795_s22  }
   0xf   :  { %s95_s24 = sshll.u32 %s801_s3, 4  ;;  %s96_s24 = int_to_ptr.vmem [resolvable:$true] %s95_s24 }
  0x10   :  { %101 = dma.hbm_to_vmem [thread:$0]  %s94_s23, 1024, %s96_s24, [#allocation8], %s794_s21, %s794_s21, %s795_s22  }
  0x11   :  { %787 = dma.done.wait [#allocation3], 512  }
  0x12   :  { %788 = vsyncadd [#allocation3], 4294966784 }
  0x13   :  { %789 = dma.done.wait [#allocation5], 1536  }
  0x14   :  { %790 = vsyncadd [#allocation5], 4294965760 }
  0x15   :  { %791 = dma.done.wait [#allocation8], 3072  }
  0x16   :  { %792 = vsyncadd [#allocation8], 4294964224  ;;  %vm128_vm0 = vcmask 261120   ;;  %v124_v0 = vld [vmem:[%s1033_s0] sm:$0xff]  ;;  %v125_v2 = vld [vmem:[%s1033_s0 + $0x8] sm:$0xff]  ;;  %v802_v4 = vmov 32.0  }
  0x17   :  { %v129_v1 = vsel %vm128_vm0, %v124_v0, 0.0  ;;  %v132_v3 = vsel %vm128_vm0, %v125_v2, 0.0  ;;  %637 = vrcp.f32 %v802_v4  ;;  %v193_v21 = vld [vmem:[#allocation2 + $0x18] sm:$0xff]  ;;  %v192_v23 = vld [vmem:[#allocation2 + $0x10] sm:$0xff]  ;;  %v191_v25 = vld [vmem:[#allocation2 + $0x8] sm:$0xff]  ;;  %vm270_vm8 = vcmask 523264  }
  0x18   :  { %130 = vadd.xlane.f32.xlu0 %v129_v1  ;;  %v230_v22 = vld [vmem:[#allocation4 + $0x18] sm:$0xff]  ;;  %216 = vmatpush.msra.mxu0 %v193_v21  ;;  %v229_v24 = vld [vmem:[#allocation4 + $0x10] sm:$0xff]  ;;  %v228_v26 = vld [vmem:[#allocation4 + $0x8] sm:$0xff]  ;;  %s803_s11 = smov 64   ;;  %s804_s25 = smov 96  }
  0x19   :  { %247 = vmatpush.msra.mxu1 %v230_v22  ;;  %v190_v27 = vld [vmem:[#allocation2] sm:$0xff]  ;;  %v265_v32 = vld [vmem:[#allocation6 + $0x38] sm:$0xff]  ;;  %v264_v34 = vld [vmem:[#allocation6 + $0x30] sm:$0xff] }
  0x1a   :  { %217 = vmatpush.msra.mxu0 %v192_v23  ;;  %v227_v28 = vld [vmem:[#allocation4] sm:$0xff]  ;;  %v421_v33 = vld [vmem:[#allocation9 + $0x38] sm:$0xff]  ;;  %285 = vmatpush.msra.mxu2 %v265_v32  ;;  %v420_v35 = vld [vmem:[#allocation9 + $0x30] sm:$0xff] }
  0x1b   :  { %248 = vmatpush.msra.mxu1 %v229_v24  ;;  %v263_v36 = vld [vmem:[#allocation6 + $0x28] sm:$0xff]  ;;  %v262_v40 = vld [vmem:[#allocation6 + $0x20] sm:$0xff]  ;;  %v261_v44 = vld [vmem:[#allocation6 + $0x18] sm:$0xff] }
  0x1c   :  { %218 = vmatpush.msra.mxu0 %v191_v25  ;;  %v419_v37 = vld [vmem:[#allocation9 + $0x28] sm:$0xff]  ;;  %286 = vmatpush.msra.mxu2 %v264_v34  ;;  %v418_v41 = vld [vmem:[#allocation9 + $0x20] sm:$0xff]  ;;  %v417_v45 = vld [vmem:[#allocation9 + $0x18] sm:$0xff] }
  0x1d   :  { %v638_v5 = vpop.eup %637  ;;  %249 = vmatpush.msra.mxu1 %v228_v26  ;;  %v260_v47 = vld [vmem:[#allocation6 + $0x10] sm:$0xff]  ;;  %v631_v55 = vld [vmem:[%s1034_s1] ss:$0 sm:$0xff] }
  0x1e   :  { %v136_v6 = vmul.f32 32.0, %v638_v5  ;;  %vm140_vm1 = vweird.f32 %v638_v5  ;;  %219 = vmatpush.msra.mxu0 %v190_v27  ;;  %287 = vmatpush.msra.mxu2 %v263_v36  ;;  %v416_v48 = vld [vmem:[#allocation9 + $0x10] sm:$0xff]  ;;  %v632_v59 = vld [vmem:[%s1035_s2] ss:$0 sm:$0xff] }
  0x1f   :  { %250 = vmatpush.msra.mxu1 %v227_v28 }
  0x20   :  { %133 = vadd.xlane.f32.xlu0 %v132_v3  ;;  %v137_v7 = vsub.f32 1.0, %v136_v6  ;;  %288 = vmatpush.msra.mxu2 %v262_v40  ;;  %v415_v6 = vld [vmem:[#allocation9 + $0x8] sm:$0xff] }
  0x21   :  { %434 = vmatpush.msrb.mxu1 %v421_v33 }
  0x22   :  { %v138_v8 = vmul.f32 %v638_v5, %v137_v7  ;;  %289 = vmatpush.msra.mxu2 %v261_v44  ;;  %v258_v7 = vld [vmem:[#allocation6] sm:$0xff] }
  0x23   :  { %435 = vmatpush.msrb.mxu1 %v420_v35 }
  0x24   :  { %v139_v9 = vadd.f32 %v638_v5, %v138_v8  ;;  %290 = vmatpush.msra.mxu2 %v260_v47  ;;  %v414_v8 = vld [vmem:[#allocation9] sm:$0xff]  ;;  %v354_v47 = vld [vmem:[#allocation7 + $0x70] sm:$0xff] }
  0x25   :  { %436 = vmatpush.msrb.mxu1 %v419_v37  ;;  %376 = vmatpush.msra.mxu3 %v354_v47 }
  0x26   :  { %v141_v10 = vsel %vm140_vm1, %v638_v5, %v139_v9  ;;  %v259_v5 = vld [vmem:[#allocation6 + $0x8] sm:$0xff]  ;;  %v633_v9 = vld [vmem:[%s1037_s4] ss:$0 sm:$0xff] }
  0x27   :  { %437 = vmatpush.msrb.mxu1 %v418_v41  ;;  %291 = vmatpush.msra.mxu2 %v259_v5 }
  0x29   :  { %438 = vmatpush.msrb.mxu1 %v417_v45  ;;  %292 = vmatpush.msra.mxu2 %v258_v7 }
  0x2b   :  { %439 = vmatpush.msrb.mxu1 %v416_v48  ;;  %v355_v48 = vld [vmem:[#allocation7 + $0x78] sm:$0xff] }
  0x2c   :  { %399 = vmatpush.msrb.mxu0 %v355_v48 }
  0x2d   :  { %440 = vmatpush.msrb.mxu1 %v415_v6 }
  0x2f   :  { %441 = vmatpush.msrb.mxu1 %v414_v8 }
  0x8b   :  { %v131_v11 = vpop.xlane.xlu0 %130 }
  0x8c   :  { %v142_v12 = vmul.f32 %v141_v10, %v131_v11 }
  0x8e   :  { %v916_v13 = vsub.f32 %v124_v0, %v142_v12 }
  0x90   :  { %v146_v14 = vmul.f32 %v916_v13, %v916_v13 }
  0x92   :  { %v148_v15 = vsel %vm128_vm0, %v146_v14, 0.0 }
  0x93   :  { %149 = vadd.xlane.f32.xlu1 %v148_v15  ;;  %v134_v16 = vpop.xlane.xlu0 %133 }
  0x94   :  { %v143_v17 = vmul.f32 %v141_v10, %v134_v16 }
  0x96   :  { %v921_v18 = vsub.f32 %v125_v2, %v143_v17 }
  0x98   :  { %v147_v19 = vmul.f32 %v921_v18, %v921_v18 }
  0x9a   :  { %v151_v20 = vsel %vm128_vm0, %v147_v19, 0.0 }
  0x9b   :  { %152 = vadd.xlane.f32.xlu1 %v151_v20 }
 0x106   :  { %v150_v29 = vpop.xlane.xlu1 %149 }
 0x107   :  { %v154_v30 = vmul.f32 %v150_v29, %v141_v10 }
 0x109   :  { %v156_v31 = vadd.f32 1e-05, %v154_v30 }
 0x10b   :  { %639 = vrsqrt.f32 %v156_v31  ;;  %vm164_vm3 = vweird.f32 %v156_v31 }
 0x10e   :  { %v153_v38 = vpop.xlane.xlu1 %152 }
 0x10f   :  { %v155_v39 = vmul.f32 %v153_v38, %v141_v10  ;;  %v634_v10 = vld [vmem:[%s1039_s6] ss:$0 sm:$0xff] }
 0x111   :  { %v640_v42 = vpop.eup %639  ;;  %v157_v43 = vadd.f32 1e-05, %v155_v39 }
 0x112   :  { %v159_v46 = vmul.f32 %v640_v42, %v156_v31  ;;  %vm165_vm2 = vweird.f32 %v640_v42 }
 0x113   :  { %641 = vrsqrt.f32 %v157_v43  ;;  %vm166_vm4 = vmor %vm164_vm3, %vm165_vm2  ;;  %vm174_vm6 = vweird.f32 %v157_v43 }
 0x114   :  { %v160_v49 = vmul.f32 %v640_v42, %v159_v46 }
 0x116   :  { %v161_v50 = vmul.f32 0.5, %v160_v49  ;;  %v352_v49 = vld [vmem:[#allocation7 + $0x60] sm:$0xff] }
 0x117   :  { %377 = vmatpush.msra.mxu3 %v352_v49 }
 0x118   :  { %v162_v51 = vsub.f32 1.5, %v161_v50  ;;  %v353_v50 = vld [vmem:[#allocation7 + $0x68] sm:$0xff] }
 0x119   :  { %v642_v52 = vpop.eup %641  ;;  %400 = vmatpush.msrb.mxu0 %v353_v50 }
 0x11a   :  { %v163_v53 = vmul.f32 %v640_v42, %v162_v51  ;;  %v169_v54 = vmul.f32 %v642_v52, %v157_v43  ;;  %vm175_vm5 = vweird.f32 %v642_v52  ;;  %v350_v51 = vld [vmem:[#allocation7 + $0x50] sm:$0xff] }
 0x11b   :  { %vm176_vm7 = vmor %vm174_vm6, %vm175_vm5  ;;  %378 = vmatpush.msra.mxu3 %v350_v51 }
 0x11c   :  { %v167_v56 = vsel %vm166_vm4, %v640_v42, %v163_v53  ;;  %v170_v57 = vmul.f32 %v642_v52, %v169_v54  ;;  %v635_v53 = vld [vmem:[%s1045_s12] ss:$0 sm:$0xff] }
 0x11d   :  { %v178_v58 = vmul.f32 %v167_v56, %v916_v13  ;;  %v348_v54 = vld [vmem:[#allocation7 + $0x40] sm:$0xff] }
 0x11e   :  { %v171_v60 = vmul.f32 0.5, %v170_v57  ;;  %379 = vmatpush.msra.mxu3 %v348_v54  ;;  %v346_v57 = vld [vmem:[#allocation7 + $0x30] sm:$0xff] }
 0x11f   :  { %v183_v61 = vmul.f32 %v631_v55, %v178_v58  ;;  %v347_v58 = vld [vmem:[#allocation7 + $0x38] sm:$0xff] }
 0x120   :  { %v172_v62 = vsub.f32 1.5, %v171_v60  ;;  %380 = vmatpush.msra.mxu3 %v346_v57  ;;  %v344_v60 = vld [vmem:[#allocation7 + $0x20] sm:$0xff] }
 0x121   :  { %v188_v63 = vadd.f32 %v632_v59, %v183_v61  ;;  %v345_v61 = vld [vmem:[#allocation7 + $0x28] sm:$0xff] }
 0x122   :  { %v173_v0 = vmul.f32 %v642_v52, %v172_v62  ;;  %v636_v62 = vld [vmem:[%s1041_s8] ss:$0 sm:$0xff]  ;;  %381 = vmatpush.msra.mxu3 %v344_v60 }
 0x123   :  { %588 = vmatmul.msk.f32.vlgmr.msra.gmra.mxu0 %vm128_vm0, %v188_v63  ;;  %590 = vmatmul.msk.f32.vlgmr.msra.gmra.mxu1 %vm128_vm0, %v188_v63  ;;  %v342_v63 = vld [vmem:[#allocation7 + $0x10] sm:$0xff] }
 0x124   :  { %v177_v1 = vsel %vm176_vm7, %v642_v52, %v173_v0  ;;  %v351_v52 = vld [vmem:[#allocation7 + $0x58] sm:$0xff]  ;;  %382 = vmatpush.msra.mxu3 %v342_v63 }
 0x125   :  { %v179_v2 = vmul.f32 %v177_v1, %v921_v18  ;;  %401 = vmatpush.msrb.mxu0 %v351_v52  ;;  %v343_v0 = vld [vmem:[#allocation7 + $0x18] sm:$0xff] }
 0x127   :  { %v184_v3 = vmul.f32 %v631_v55, %v179_v2  ;;  %v349_v55 = vld [vmem:[#allocation7 + $0x48] sm:$0xff]  ;;  %v340_v2 = vld [vmem:[#allocation7] sm:$0xff] }
 0x128   :  { %402 = vmatpush.msrb.mxu0 %v349_v55  ;;  %383 = vmatpush.msra.mxu3 %v340_v2 }
 0x129   :  { %v189_v4 = vadd.f32 %v632_v59, %v184_v3  ;;  %v341_v3 = vld [vmem:[#allocation7 + $0x8] sm:$0xff] }
 0x12a   :  { %403 = vmatpush.msrb.mxu0 %v347_v58 }
 0x12b   :  { %589 = vmatmul.msk.f32.gmra.mxu0 %vm128_vm0, %v189_v4  ;;  %591 = vmatmul.msk.f32.gmra.mxu1 %vm128_vm0, %v189_v4 }
 0x12c   :  { %404 = vmatpush.msrb.mxu0 %v345_v61 }
 0x12e   :  { %405 = vmatpush.msrb.mxu0 %v343_v0 }
 0x130   :  { %406 = vmatpush.msrb.mxu0 %v341_v3 }
 0x1a0   :  { %v221_v11 = vpop.f32.mrf.mxu0  ;;  %v252_v12 = vpop.f32.mrf.mxu1 }
 0x1a1   :  { %v222_v13 = vadd.f32 %v633_v9, %v221_v11  ;;  %v253_v14 = vadd.f32 %v634_v10, %v252_v12 }
 0x1a3   :  { %v614_v15 = vmul.f32 -1.442695, %v253_v14  ;;  %592 = vmatmul.msk.f32.vlgmr.msra.gmra.mxu2 %vm270_vm8, %v222_v13  ;;  %600 = vmatmul.msk.f32.vlgmr.msrb.gmra.mxu1 %vm270_vm8, %v222_v13 }
 0x1a5   :  { %643 = vpow2.f32 %v614_v15 }
 0x1a8   :  { %v224_v16 = vpop.f32.mrf.mxu0  ;;  %v255_v17 = vpop.f32.mrf.mxu1 }
 0x1a9   :  { %v225_v18 = vadd.f32 %v633_v9, %v224_v16  ;;  %v256_v19 = vadd.f32 %v634_v10, %v255_v17 }
 0x1ab   :  { %v644_v20 = vpop.eup %643  ;;  %v615_v21 = vmul.f32 -1.442695, %v256_v19  ;;  %593 = vmatmul.msk.f32.gmra.mxu2 %vm270_vm8, %v225_v18  ;;  %601 = vmatmul.msk.f32.gmra.mxu1 %vm270_vm8, %v225_v18 }
 0x1ac   :  { %v540_v22 = vadd.f32 1.0, %v644_v20 }
 0x1ad   :  { %645 = vpow2.f32 %v615_v21 }
 0x1ae   :  { %647 = vrcp.f32 %v540_v22  ;;  %v553_v28 = vand.u32 2147483648, %v540_v22  ;;  %v551_v30 = vand.u32 2147483647, %v540_v22  ;;  %vm547_vm10 = vweird.f32 %v540_v22 }
 0x1b0   :  { %v554_v33 = vor.u32 1.1754944e-38, %v553_v28  ;;  %vm552_vm12 = vcmp.eq.f32.partialorder %v551_v30, 8.507059e+37 }
 0x1b3   :  { %v646_v23 = vpop.eup %645 }
 0x1b4   :  { %v648_v24 = vpop.eup %647  ;;  %v541_v25 = vadd.f32 1.0, %v646_v23 }
 0x1b5   :  { %v543_v26 = vmul.f32 %v648_v24, %v540_v22  ;;  %vm548_vm9 = vweird.f32 %v648_v24 }
 0x1b6   :  { %649 = vrcp.f32 %v541_v25  ;;  %vm549_vm11 = vmor %vm547_vm10, %vm548_vm9  ;;  %v568_v39 = vand.u32 2147483648, %v541_v25  ;;  %v566_v41 = vand.u32 2147483647, %v541_v25  ;;  %vm562_vm14 = vweird.f32 %v541_v25 }
 0x1b7   :  { %v544_v27 = vsub.f32 1.0, %v543_v26 }
 0x1b8   :  { %v569_v43 = vor.u32 1.1754944e-38, %v568_v39  ;;  %vm567_vm1 = vcmp.eq.f32.partialorder %v566_v41, 8.507059e+37  ;;  %v356_v41 = vld [vmem:[%s1043_s10] sm:$0x3] }
 0x1b9   :  { %v545_v29 = vmul.f32 %v648_v24, %v544_v27  ;;  %v358_v48 = vperm.slane %v356_v41, 0 }
 0x1bb   :  { %v546_v31 = vadd.f32 %v648_v24, %v545_v29 }
 0x1bc   :  { %v650_v32 = vpop.eup %649 }
 0x1bd   :  { %v550_v34 = vsel %vm549_vm11, %v648_v24, %v546_v31  ;;  %v558_v35 = vmul.f32 %v650_v32, %v541_v25  ;;  %vm563_vm13 = vweird.f32 %v650_v32 }
 0x1be   :  { %v555_v36 = vsel %vm552_vm12, %v554_v33, %v550_v34  ;;  %vm564_vm15 = vmor %vm562_vm14, %vm563_vm13 }
 0x1bf   :  { %v572_v37 = vmul.f32 %v555_v36, %v253_v14  ;;  %v559_v38 = vsub.f32 1.0, %v558_v35 }
 0x1c1   :  { %616 = vst.msk [vmem:[%s1047_s14 + $0x10] sm:$0xff] %vm128_vm0, %v572_v37  ;;  %v560_v40 = vmul.f32 %v650_v32, %v559_v38 }
 0x1c3   :  { %v561_v42 = vadd.f32 %v650_v32, %v560_v40 }
 0x1c5   :  { %v565_v44 = vsel %vm564_vm15, %v650_v32, %v561_v42 }
 0x1c6   :  { %v570_v45 = vsel %vm567_vm1, %v569_v43, %v565_v44  ;;  %v359_v43 = vperm.slane %v356_v41, 1 }
 0x1c7   :  { %v573_v46 = vmul.f32 %v570_v45, %v256_v19 }
 0x1c9   :  { %617 = vst.msk [vmem:[%s1047_s14 + $0x18] sm:$0xff] %vm128_vm0, %v573_v46 }
 0x220   :  { %v443_v56 = vpop.f32.mrf.mxu1 }
 0x221   :  { %v959_v59 = vadd.f32 %v635_v53, %v443_v56 }
 0x223   :  { %608 = vst.msk [vmem:[%s1046_s13 + $0x40] sm:$0xff] %vm128_vm0, %v959_v59  ;;  %v610_v42 = vmul.f32 -1.442695, %v959_v59 }
 0x226   :  { %v294_v1 = vpop.f32.mrf.mxu2 }
 0x227   :  { %v295_v4 = vadd.f32 %v636_v62, %v294_v1 }
 0x228   :  { %v446_v5 = vpop.f32.mrf.mxu1 }
 0x229   :  { %v594_v6 = vmul.f32 -1.442695, %v295_v4  ;;  %v447_v7 = vadd.f32 %v635_v53, %v446_v5 }
 0x22b   :  { %651 = vpow2.f32 %v594_v6  ;;  %609 = vst.msk [vmem:[%s1046_s13 + $0x48] sm:$0xff] %vm128_vm0, %v447_v7  ;;  %v611_v37 = vmul.f32 -1.442695, %v447_v7 }
 0x22e   :  { %v297_v8 = vpop.f32.mrf.mxu2 }
 0x22f   :  { %v298_v9 = vadd.f32 %v636_v62, %v297_v8 }
 0x231   :  { %v652_v10 = vpop.eup %651  ;;  %v595_v11 = vmul.f32 -1.442695, %v298_v9 }
 0x232   :  { %v306_v12 = vadd.f32 1.0, %v652_v10 }
 0x233   :  { %653 = vpow2.f32 %v595_v11 }
 0x234   :  { %655 = vrcp.f32 %v306_v12  ;;  %v319_v18 = vand.u32 2147483648, %v306_v12  ;;  %v317_v20 = vand.u32 2147483647, %v306_v12  ;;  %vm313_vm3 = vweird.f32 %v306_v12 }
 0x236   :  { %v320_v23 = vor.u32 1.1754944e-38, %v319_v18  ;;  %vm318_vm5 = vcmp.eq.f32.partialorder %v317_v20, 8.507059e+37 }
 0x239   :  { %v654_v13 = vpop.eup %653 }
 0x23a   :  { %v656_v14 = vpop.eup %655  ;;  %v307_v15 = vadd.f32 1.0, %v654_v13 }
 0x23b   :  { %v309_v16 = vmul.f32 %v656_v14, %v306_v12  ;;  %vm314_vm2 = vweird.f32 %v656_v14 }
 0x23c   :  { %657 = vrcp.f32 %v307_v15  ;;  %vm315_vm4 = vmor %vm313_vm3, %vm314_vm2  ;;  %v334_v29 = vand.u32 2147483648, %v307_v15  ;;  %v332_v31 = vand.u32 2147483647, %v307_v15  ;;  %vm328_vm7 = vweird.f32 %v307_v15 }
 0x23d   :  { %v310_v17 = vsub.f32 1.0, %v309_v16  ;;  %659 = vpow2.f32 %v611_v37 }
 0x23e   :  { %v335_v33 = vor.u32 1.1754944e-38, %v334_v29  ;;  %vm333_vm10 = vcmp.eq.f32.partialorder %v332_v31, 8.507059e+37 }
 0x23f   :  { %v311_v19 = vmul.f32 %v656_v14, %v310_v17 }
 0x241   :  { %v312_v21 = vadd.f32 %v656_v14, %v311_v19 }
 0x242   :  { %v658_v22 = vpop.eup %657 }
 0x243   :  { %v316_v24 = vsel %vm315_vm4, %v656_v14, %v312_v21  ;;  %v324_v25 = vmul.f32 %v658_v22, %v307_v15  ;;  %vm329_vm6 = vweird.f32 %v658_v22  ;;  %v660_v38 = vpop.eup %659 }
 0x244   :  { %v321_v26 = vsel %vm318_vm5, %v320_v23, %v316_v24  ;;  %vm330_vm9 = vmor %vm328_vm7, %vm329_vm6  ;;  %v490_v39 = vadd.f32 1.0, %v660_v38 }
 0x245   :  { %v338_v27 = vmul.f32 %v321_v26, %v295_v4  ;;  %v325_v28 = vsub.f32 1.0, %v324_v25 }
 0x246   :  { %661 = vrcp.f32 %v490_v39  ;;  %v517_v57 = vand.u32 2147483648, %v490_v39  ;;  %vm511_vm11 = vweird.f32 %v490_v39  ;;  %v515_v58 = vand.u32 2147483647, %v490_v39 }
 0x247   :  { %v326_v30 = vmul.f32 %v658_v22, %v325_v28  ;;  %596 = vmatmul.msk.f32.vlgmr.msra.gmra.mxu3 %vm270_vm8, %v338_v27  ;;  %598 = vmatmul.msk.f32.vlgmr.msrb.gmra.mxu0 %vm270_vm8, %v338_v27  ;;  %663 = vpow2.f32 %v610_v42 }
 0x248   :  { %v518_v61 = vor.u32 1.1754944e-38, %v517_v57  ;;  %vm516_vm13 = vcmp.eq.f32.partialorder %v515_v58, 8.507059e+37 }
 0x249   :  { %v327_v32 = vadd.f32 %v658_v22, %v326_v30 }
 0x24b   :  { %v331_v34 = vsel %vm330_vm9, %v658_v22, %v327_v32 }
 0x24c   :  { %v336_v35 = vsel %vm333_vm10, %v335_v33, %v331_v34  ;;  %v662_v40 = vpop.eup %661 }
 0x24d   :  { %v339_v36 = vmul.f32 %v336_v35, %v298_v9  ;;  %v507_v44 = vmul.f32 %v662_v40, %v490_v39  ;;  %v664_v50 = vpop.eup %663 }
 0x24e   :  { %v489_v54 = vadd.f32 1.0, %v664_v50 }
 0x24f   :  { %597 = vmatmul.msk.f32.gmra.mxu3 %vm270_vm8, %v339_v36  ;;  %599 = vmatmul.msk.f32.gmra.mxu0 %vm270_vm8, %v339_v36  ;;  %v508_v47 = vsub.f32 1.0, %v507_v44  ;;  %vm512_vm8 = vweird.f32 %v662_v40 }
 0x250   :  { %vm513_vm12 = vmor %vm511_vm11, %vm512_vm8  ;;  %665 = vrcp.f32 %v489_v54  ;;  %v502_v5 = vand.u32 2147483648, %v489_v54  ;;  %vm496_vm15 = vweird.f32 %v489_v54  ;;  %v500_v6 = vand.u32 2147483647, %v489_v54 }
 0x251   :  { %v509_v49 = vmul.f32 %v662_v40, %v508_v47 }
 0x252   :  { %v503_v8 = vor.u32 1.1754944e-38, %v502_v5  ;;  %vm501_vm2 = vcmp.eq.f32.partialorder %v500_v6, 8.507059e+37 }
 0x253   :  { %v510_v56 = vadd.f32 %v662_v40, %v509_v49 }
 0x255   :  { %v514_v59 = vsel %vm513_vm12, %v662_v40, %v510_v56 }
 0x256   :  { %v519_v63 = vsel %vm516_vm13, %v518_v61, %v514_v59  ;;  %v666_v0 = vpop.eup %665 }
 0x257   :  { %v492_v1 = vmul.f32 %v666_v0, %v489_v54  ;;  %vm497_vm14 = vweird.f32 %v666_v0 }
 0x258   :  { %vm498_vm1 = vmor %vm496_vm15, %vm497_vm14 }
 0x259   :  { %v493_v2 = vsub.f32 1.0, %v492_v1 }
 0x25b   :  { %v494_v3 = vmul.f32 %v666_v0, %v493_v2 }
 0x25d   :  { %v495_v4 = vadd.f32 %v666_v0, %v494_v3 }
 0x25f   :  { %v499_v7 = vsel %vm498_vm1, %v666_v0, %v495_v4 }
 0x260   :  { %v504_v9 = vsel %vm501_vm2, %v503_v8, %v499_v7 }
 0x2c4   :  { %v408_v45 = vpop.f32.mrf.mxu0 }
 0x2c5   :  { %v409_v46 = vadd.f32 %v408_v45, %v359_v43 }
 0x2c7   :  { %532 = vst.msk [vmem:[%s1047_s14] sm:$0xff] %vm128_vm0, %v409_v46 }
 0x2ca   :  { %v385_v51 = vpop.f32.mrf.mxu3 }
 0x2cb   :  { %v386_v52 = vadd.f32 %v385_v51, %v358_v48 }
 0x2cc   :  { %v411_v53 = vpop.f32.mrf.mxu0 }
 0x2cd   :  { %449 = vst.msk [vmem:[%s1046_s13] sm:$0xff] %vm128_vm0, %v386_v52  ;;  %v412_v55 = vadd.f32 %v411_v53, %v359_v43  ;;  %462 = vrot.lane.b32.xlu0 %v386_v52, %s803_s11  ;;  %453 = vrot.lane.b32.xlu2 %v386_v52, %s804_s25 }
 0x2cf   :  { %533 = vst.msk [vmem:[%s1047_s14 + $0x8] sm:$0xff] %vm128_vm0, %v412_v55  ;;  %s805_s14 = smov 32  }
 0x2d2   :  { %v388_v60 = vpop.f32.mrf.mxu3 }
 0x2d3   :  { %v389_v62 = vadd.f32 %v388_v60, %v358_v48 }
 0x2d5   :  { %450 = vst.msk [vmem:[%s1046_s13 + $0x8] sm:$0xff] %vm128_vm0, %v389_v62  ;;  %525 = vrot.lane.b32.xlu0 %v519_v63, %s804_s25  ;;  %464 = vrot.lane.b32.xlu1 %v389_v62, %s803_s11 }
 0x2d6   :  { %455 = vrot.lane.b32.xlu2 %v389_v62, %s804_s25 }
 0x2de   :  { %471 = vrot.lane.b32.xlu2 %v386_v52, %s805_s14 }
 0x2e6   :  { %473 = vrot.lane.b32.xlu2 %v389_v62, %s805_s14 }
 0x2ee   :  { %523 = vrot.lane.b32.xlu2 %v504_v9, %s804_s25 }
 0x327   :  { %v454_v10 = vpop.permute.xlu2 %453 }
 0x328   :  { %602 = vst.msk [vmem:[%s1046_s13 + $0x10] sm:$0xff] %vm128_vm0, %v454_v10 }
 0x330   :  { %v456_v11 = vpop.permute.xlu2 %455 }
 0x331   :  { %603 = vst.msk [vmem:[%s1046_s13 + $0x18] sm:$0xff] %vm128_vm0, %v456_v11 }
 0x338   :  { %v472_v12 = vpop.permute.xlu2 %471 }
 0x339   :  { %606 = vst.msk [vmem:[%s1046_s13 + $0x30] sm:$0xff] %vm128_vm0, %v472_v12 }
 0x33f   :  { %v463_v13 = vpop.permute.xlu0 %462 }
 0x340   :  { %v474_v14 = vpop.permute.xlu2 %473  ;;  %604 = vst.msk [vmem:[%s1046_s13 + $0x20] sm:$0xff] %vm128_vm0, %v463_v13 }
 0x341   :  { %607 = vst.msk [vmem:[%s1046_s13 + $0x38] sm:$0xff] %vm128_vm0, %v474_v14 }
 0x347   :  { %v465_v15 = vpop.permute.xlu1 %464  ;;  %v526_v16 = vpop.permute.xlu0 %525 }
 0x348   :  { %605 = vst.msk [vmem:[%s1046_s13 + $0x28] sm:$0xff] %vm128_vm0, %v465_v15  ;;  %v524_v17 = vpop.permute.xlu2 %523 }
 0x349   :  { %612 = vst.msk [vmem:[%s1046_s13 + $0x50] sm:$0xff] %vm128_vm0, %v524_v17 }
 0x34a   :  { %613 = vst.msk [vmem:[%s1046_s13 + $0x58] sm:$0xff] %vm128_vm0, %v526_v16 }
 0x34b   :  { %585 = vsyncpa [#allocation3], 1 }
 0x34c   :  { %586 = vsyncpa [#allocation5], 1 }
 0x34d   :  { %587 = vsyncpa [#allocation8], 1 }

// kernel: xlstm_forward.8
= control target key start
LH: loop header
LB: loop body
LE: loop exit
PB: predicated region body
PF: predicated region fallthrough
CT: control target
= control target key end

     0   :  { %14 = vsyncpa [#allocation3], 0  ;;  %s302_s12 = smov [#allocation2]   ;;  %s303_s14 = smov 128   ;;  %s436_s0 = inlined_call_operand.vmem [shape: f32[16,32], index: 0, kind: input, shape index: {}]   ;;  %s437_s1 = inlined_call_operand.vmem [shape: f32[2,16,32], index: 1, kind: input, shape index: {}]   ;;  %s438_s2 = inlined_call_operand.vmem [shape: f32[16,32], index: 2, kind: input, shape index: {}]   ;;  %s439_s3 = inlined_call_operand.vmem [shape: f32[1,32], index: 3, kind: input, shape index: {}]   ;;  %s440_s4 = inlined_call_operand.vmem [shape: f32[1,32], index: 4, kind: input, shape index: {}]   ;;  %s441_s5 = inlined_call_operand.vmem [shape: f32[32,4], index: 5, kind: input, shape index: {}]   ;;  %s442_s6 = inlined_call_operand.vmem [shape: f32[4,32], index: 6, kind: input, shape index: {}]   ;;  %s443_s7 = inlined_call_operand.hbm [shape: f32[32,32], index: 7, kind: input, shape index: {}]   ;;  %s444_s8 = inlined_call_operand.vmem [shape: f32[1,32], index: 8, kind: input, shape index: {}]   ;;  %s445_s9 = inlined_call_operand.vmem [shape: f32[16,32], index: 9, kind: output, shape index: {}]  }
   0x1   :  { %s33_s11 = sshll.u32 %s443_s7, 4  ;;  %s35_s13 = sshll.u32 %s302_s12, 4  ;;  %s34_s11 = int_to_ptr.hbm [resolvable:$true] %s33_s11  ;;  %s36_s13 = int_to_ptr.vmem [resolvable:$true] %s35_s13 }
   0x2   :  { %s304_s15 = smov 8  }
   0x3   :  { %41 = dma.hbm_to_vmem [thread:$0]  %s34_s11, 512, %s36_s13, [#allocation3], %s303_s14, %s303_s14, %s304_s15  }
   0x4   :  { %300 = dma.done.wait [#allocation3], 512  }
   0x5   :  { %301 = vsyncadd [#allocation3], 4294966784  ;;  %v53_v0 = vld [vmem:[%s441_s5 + $0x18] sm:$0xff]  ;;  %v52_v1 = vld [vmem:[%s441_s5 + $0x10] sm:$0xff]  ;;  %vm59_vm0 = vcmask 261120   ;;  %vm144_vm1 = vcmask 1043456  }
   0x6   :  { %261 = vmatpush.msra.mxu3 %v53_v0  ;;  %v51_v2 = vld [vmem:[%s441_s5 + $0x8] sm:$0xff]  ;;  %84 = vmatpush.msra.mxu0 %v53_v0  ;;  %v50_v3 = vld [vmem:[%s441_s5] sm:$0xff]  ;;  %vm131_vm2 = vcmask 31744   ;;  %v203_v37 = vld [vmem:[#allocation2 + $0x18] sm:$0xff] }
   0x7   :  { %v373_v4 = vld [vmem:[%s436_s0 + $0x8] sm:$0xff]  ;;  %v378_v5 = vld [vmem:[%s436_s0] sm:$0xff]  ;;  %226 = vmatpush.msra.mxu2 %v203_v37  ;;  %v202_v38 = vld [vmem:[#allocation2 + $0x10] sm:$0xff] }
   0x8   :  { %262 = vmatpush.msra.mxu3 %v52_v1  ;;  %85 = vmatpush.msra.mxu0 %v52_v1  ;;  %v57_v6 = vmul.f32 %v378_v5, %v378_v5  ;;  %v58_v7 = vmul.f32 %v373_v4, %v373_v4  ;;  %v54_v8 = vld [vmem:[%s442_s6] sm:$0xf]  ;;  %v201_v39 = vld [vmem:[#allocation2 + $0x8] sm:$0xff]  ;;  %v257_v51 = vld [vmem:[%s437_s1 + $0x10] sm:$0xff] }
   0x9   :  { %265 = vmatpush.msk.msra.mxu1 %vm144_vm1, %v54_v8  ;;  %227 = vmatpush.msra.mxu2 %v202_v38  ;;  %v200_v40 = vld [vmem:[#allocation2] sm:$0xff]  ;;  %v192_v58 = vld [vmem:[%s437_s1 + $0x8] sm:$0xff]  ;;  %v258_v60 = vld [vmem:[%s437_s1 + $0x18] sm:$0xff] }
   0xa   :  { %263 = vmatpush.msra.mxu3 %v51_v2  ;;  %86 = vmatpush.msra.mxu0 %v51_v2  ;;  %v269_v44 = vld [vmem:[%s439_s3] ss:$0 sm:$0xff] }
   0xb   :  { %228 = vmatpush.msra.mxu2 %v201_v39  ;;  %v270_v47 = vld [vmem:[%s440_s4] ss:$0 sm:$0xff] }
   0xc   :  { %264 = vmatpush.msra.mxu3 %v50_v3  ;;  %87 = vmatpush.msra.mxu0 %v50_v3  ;;  %v191_v49 = vld [vmem:[%s437_s1] sm:$0xff] }
   0xd   :  { %249 = vmatmul.msk.f32.vlgmr.msra.gmra.mxu3 %vm59_vm0, %v373_v4  ;;  %248 = vmatmul.msk.f32.vlgmr.msra.gmra.mxu0 %vm59_vm0, %v378_v5  ;;  %v271_v63 = vld [vmem:[%s444_s8] ss:$0 sm:$0xff] }
   0xe   :  { %252 = vmatpush.msk.msrb.mxu0 %vm144_vm1, %v54_v8  ;;  %229 = vmatpush.msra.mxu2 %v200_v40  ;;  %v237_v1 = vld [vmem:[%s438_s2] sm:$0xff] }
  0x15   :  { %250 = vmatmul.msk.f32.gmra.mxu3 %vm59_vm0, %v57_v6 }
  0x1d   :  { %251 = vmatmul.msk.f32.gmra.mxu3 %vm59_vm0, %v58_v7 }
  0x8a   :  { %v89_v9 = vpop.f32.mrf.mxu0 }
  0x8b   :  { %v101_v10 = vmul.f32 0.125, %v89_v9 }
  0x8d   :  { %253 = vmatmul.msk.f32.vlgmr.msrb.gmra.mxu0 %vm131_vm2, %v101_v10  ;;  %v105_v13 = vmul.f32 %v101_v10, %v101_v10 }
  0x90   :  { %v92_v11 = vpop.f32.mrf.mxu3 }
  0x91   :  { %v102_v12 = vmul.f32 0.125, %v92_v11 }
  0x93   :  { %254 = vmatmul.msk.f32.vlgmr.msra.gmra.mxu1 %vm131_vm2, %v102_v12  ;;  %v106_v19 = vmul.f32 %v102_v12, %v102_v12 }
  0x98   :  { %v95_v14 = vpop.f32.mrf.mxu3 }
  0x99   :  { %v103_v15 = vmul.f32 0.125, %v95_v14 }
  0x9b   :  { %v107_v16 = vsub.f32 %v103_v15, %v105_v13 }
  0x9d   :  { %v109_v17 = vadd.f32 1e-05, %v107_v16 }
  0x9f   :  { %272 = vrsqrt.f32 %v109_v17  ;;  %vm117_vm4 = vweird.f32 %v109_v17 }
  0xa0   :  { %v98_v18 = vpop.f32.mrf.mxu3 }
  0xa1   :  { %v104_v20 = vmul.f32 0.125, %v98_v18 }
  0xa3   :  { %v108_v21 = vsub.f32 %v104_v20, %v106_v19 }
  0xa5   :  { %v273_v22 = vpop.eup %272  ;;  %v110_v23 = vadd.f32 1e-05, %v108_v21 }
  0xa6   :  { %v112_v24 = vmul.f32 %v273_v22, %v109_v17  ;;  %vm118_vm3 = vweird.f32 %v273_v22 }
  0xa7   :  { %274 = vrsqrt.f32 %v110_v23  ;;  %vm119_vm5 = vmor %vm117_vm4, %vm118_vm3  ;;  %vm127_vm7 = vweird.f32 %v110_v23 }
  0xa8   :  { %v113_v25 = vmul.f32 %v273_v22, %v112_v24 }
  0xaa   :  { %v114_v26 = vmul.f32 0.5, %v113_v25 }
  0xac   :  { %v115_v27 = vsub.f32 1.5, %v114_v26 }
  0xad   :  { %v275_v28 = vpop.eup %274 }
  0xae   :  { %v122_v29 = vmul.f32 %v275_v28, %v110_v23  ;;  %v116_v30 = vmul.f32 %v273_v22, %v115_v27  ;;  %vm128_vm6 = vweird.f32 %v275_v28 }
  0xaf   :  { %vm129_vm8 = vmor %vm127_vm7, %vm128_vm6 }
  0xb0   :  { %v123_v31 = vmul.f32 %v275_v28, %v122_v29  ;;  %v120_v32 = vsel %vm119_vm5, %v273_v22, %v116_v30 }
  0xb1   :  { %255 = vmatmul.msk.f32.gmra.mxu1 %vm131_vm2, %v120_v32 }
  0xb2   :  { %v124_v33 = vmul.f32 0.5, %v123_v31 }
  0xb4   :  { %v125_v34 = vsub.f32 1.5, %v124_v33 }
  0xb6   :  { %v126_v35 = vmul.f32 %v275_v28, %v125_v34 }
  0xb8   :  { %v130_v36 = vsel %vm129_vm8, %v275_v28, %v126_v35 }
  0xb9   :  { %256 = vmatmul.msk.f32.gmra.mxu1 %vm131_vm2, %v130_v36 }
 0x10a   :  { %v165_v42 = vpop.f32.mrf.mxu0 }
 0x10b   :  { %v177_v43 = vsub.f32 %v378_v5, %v165_v42  ;;  %v238_v5 = vld [vmem:[%s438_s2 + $0x8] sm:$0xff] }
 0x110   :  { %v168_v41 = vpop.f32.mrf.mxu1 }
 0x111   :  { %v178_v52 = vsub.f32 %v373_v4, %v168_v41 }
 0x12e   :  { %v171_v45 = vpop.f32.mrf.mxu1 }
 0x12f   :  { %v179_v46 = vmul.f32 %v177_v43, %v171_v45 }
 0x131   :  { %v184_v48 = vmul.f32 %v269_v44, %v179_v46 }
 0x133   :  { %v189_v50 = vadd.f32 %v270_v47, %v184_v48 }
 0x135   :  { %v193_v53 = vadd.f32 %v191_v49, %v189_v50 }
 0x136   :  { %v174_v54 = vpop.f32.mrf.mxu1 }
 0x137   :  { %v180_v55 = vmul.f32 %v178_v52, %v174_v54  ;;  %v198_v56 = vmul.f32 %v257_v51, %v193_v53 }
 0x139   :  { %v185_v57 = vmul.f32 %v269_v44, %v180_v55  ;;  %259 = vmatmul.msk.f32.vlgmr.msra.gmra.mxu2 %vm59_vm0, %v198_v56 }
 0x13b   :  { %v190_v59 = vadd.f32 %v270_v47, %v185_v57 }
 0x13d   :  { %v194_v61 = vadd.f32 %v192_v58, %v190_v59 }
 0x13f   :  { %v199_v62 = vmul.f32 %v258_v60, %v194_v61 }
 0x141   :  { %260 = vmatmul.msk.f32.gmra.mxu2 %vm59_vm0, %v199_v62 }
 0x1bc   :  { %v231_v0 = vpop.f32.mrf.mxu2 }
 0x1bd   :  { %v232_v2 = vadd.f32 %v271_v63, %v231_v0 }
 0x1bf   :  { %v239_v3 = vadd.f32 %v237_v1, %v232_v2 }
 0x1c1   :  { %241 = vst.msk [vmem:[%s445_s9] sm:$0xff] %vm59_vm0, %v239_v3 }
 0x1c4   :  { %v234_v4 = vpop.f32.mrf.mxu2 }
 0x1c5   :  { %v235_v6 = vadd.f32 %v271_v63, %v234_v4 }
 0x1c7   :  { %v240_v7 = vadd.f32 %v238_v5, %v235_v6 }
 0x1c9   :  { %242 = vst.msk [vmem:[%s445_s9 + $0x8] sm:$0xff] %vm59_vm0, %v240_v7 }
 0x1ca   :  { %247 = vsyncpa [#allocation3], 1 }

// kernel: xlstm_forward.9
= control target key start
LH: loop header
LB: loop body
LE: loop exit
PB: predicated region body
PF: predicated region fallthrough
CT: control target
= control target key end

     0   :  { %14 = vsyncpa [#allocation3], 0  ;;  %s533_s0 = inlined_call_operand.vmem [shape: f32[16,32], index: 0, kind: input, shape index: {}]   ;;  %s534_s1 = inlined_call_operand.vmem [shape: f32[1,32], index: 1, kind: input, shape index: {}]   ;;  %s535_s2 = inlined_call_operand.vmem [shape: f32[1,32], index: 2, kind: input, shape index: {}]   ;;  %s536_s3 = inlined_call_operand.hbm [shape: f32[32,32], index: 3, kind: input, shape index: {}]   ;;  %s537_s4 = inlined_call_operand.vmem [shape: f32[1,32], index: 4, kind: input, shape index: {}]   ;;  %s538_s5 = inlined_call_operand.hbm [shape: f32[32,64], index: 5, kind: input, shape index: {}]   ;;  %s539_s6 = inlined_call_operand.vmem [shape: f32[1,64], index: 6, kind: input, shape index: {}]   ;;  %s540_s7 = inlined_call_operand.hbm [shape: f32[32,64], index: 7, kind: input, shape index: {}]   ;;  %s541_s8 = inlined_call_operand.vmem [shape: f32[1,64], index: 8, kind: input, shape index: {}]   ;;  %s542_s9 = inlined_call_operand.vmem [shape: f32[16,128], index: 9, kind: output, shape index: {}]  }
   0x1   :  { %15 = vsyncpa [#allocation5], 0  ;;  %s41_s11 = sshll.u32 %s538_s5, 4  ;;  %s424_s12 = smov [#allocation4]   ;;  %s42_s11 = int_to_ptr.hbm [resolvable:$true] %s41_s11 }
   0x2   :  { %s43_s13 = sshll.u32 %s424_s12, 4  ;;  %s26_s16 = sshll.u32 %s536_s3, 4  ;;  %s44_s13 = int_to_ptr.vmem [resolvable:$true] %s43_s13  ;;  %s27_s16 = int_to_ptr.hbm [resolvable:$true] %s26_s16 }
   0x3   :  { %s425_s17 = smov 128   ;;  %s426_s18 = smov 8  }
   0x4   :  { %49 = dma.hbm_to_vmem [thread:$0]  %s42_s11, 512, %s44_s13, [#allocation5], %s425_s17, %s425_s17, %s426_s18  }
   0x5   :  { %s427_s19 = smov [#allocation2]   ;;  %s56_s23 = sshll.u32 %s540_s7, 4  ;;  %s57_s23 = int_to_ptr.hbm [resolvable:$true] %s56_s23 }
   0x6   :  { %s28_s20 = sshll.u32 %s427_s19, 4  ;;  %s428_s5 = smov [#allocation6]   ;;  %s29_s20 = int_to_ptr.vmem [resolvable:$true] %s28_s20 }
   0x7   :  { %34 = dma.hbm_to_vmem [thread:$0]  %s27_s16, 512, %s29_s20, [#allocation3], %s425_s17, %s425_s17, %s426_s18  }
   0x8   :  { %s58_s24 = sshll.u32 %s428_s5, 4  ;;  %s59_s24 = int_to_ptr.vmem [resolvable:$true] %s58_s24 }
   0x9   :  { %64 = dma.hbm_to_vmem [thread:$0]  %s57_s23, 512, %s59_s24, [#allocation5], %s425_s17, %s425_s17, %s426_s18  }
   0xa   :  { %420 = dma.done.wait [#allocation3], 512  }
   0xb   :  { %421 = vsyncadd [#allocation3], 4294966784 }
   0xc   :  { %422 = dma.done.wait [#allocation5], 1024  }
   0xd   :  { %423 = vsyncadd [#allocation5], 4294966272  ;;  %vm83_vm0 = vcmask 261120   ;;  %v79_v0 = vld [vmem:[%s533_s0] sm:$0xff]  ;;  %v80_v2 = vld [vmem:[%s533_s0 + $0x8] sm:$0xff]  ;;  %v429_v4 = vmov 32.0  }
   0xe   :  { %v84_v1 = vsel %vm83_vm0, %v79_v0, 0.0  ;;  %v87_v3 = vsel %vm83_vm0, %v80_v2, 0.0  ;;  %334 = vrcp.f32 %v429_v4  ;;  %v148_v21 = vld [vmem:[#allocation2 + $0x18] sm:$0xff]  ;;  %v147_v23 = vld [vmem:[#allocation2 + $0x10] sm:$0xff]  ;;  %v146_v25 = vld [vmem:[#allocation2 + $0x8] sm:$0xff]  ;;  %vm290_vm8 = vcmask 523264  }
   0xf   :  { %85 = vadd.xlane.f32.xlu0 %v84_v1  ;;  %v225_v22 = vld [vmem:[#allocation4 + $0x18] sm:$0xff]  ;;  %171 = vmatpush.msra.mxu0 %v148_v21  ;;  %v224_v24 = vld [vmem:[#allocation4 + $0x10] sm:$0xff]  ;;  %v223_v26 = vld [vmem:[#allocation4 + $0x8] sm:$0xff]  ;;  %s430_s15 = smov 64  }
  0x10   :  { %242 = vmatpush.msra.mxu1 %v225_v22  ;;  %318 = vmatpush.msra.mxu3 %v148_v21  ;;  %v145_v27 = vld [vmem:[#allocation2] sm:$0xff]  ;;  %v256_v57 = vld [vmem:[#allocation6 + $0x18] sm:$0xff]  ;;  %v255_v58 = vld [vmem:[#allocation6 + $0x10] sm:$0xff] }
  0x11   :  { %172 = vmatpush.msra.mxu0 %v147_v23  ;;  %v222_v28 = vld [vmem:[#allocation4] sm:$0xff]  ;;  %279 = vmatpush.msra.mxu2 %v256_v57  ;;  %v254_v61 = vld [vmem:[#allocation6 + $0x8] sm:$0xff] }
  0x12   :  { %243 = vmatpush.msra.mxu1 %v224_v24  ;;  %319 = vmatpush.msra.mxu3 %v147_v23  ;;  %v329_v43 = vld [vmem:[%s534_s1] ss:$0 sm:$0xff] }
  0x13   :  { %173 = vmatpush.msra.mxu0 %v146_v25  ;;  %v330_v47 = vld [vmem:[%s535_s2] ss:$0 sm:$0xff]  ;;  %280 = vmatpush.msra.mxu2 %v255_v58 }
  0x14   :  { %v335_v5 = vpop.eup %334  ;;  %244 = vmatpush.msra.mxu1 %v223_v26  ;;  %320 = vmatpush.msra.mxu3 %v146_v25  ;;  %v331_v59 = vld [vmem:[%s537_s4] ss:$0 sm:$0xff] }
  0x15   :  { %v91_v6 = vmul.f32 32.0, %v335_v5  ;;  %vm95_vm1 = vweird.f32 %v335_v5  ;;  %174 = vmatpush.msra.mxu0 %v145_v27  ;;  %v332_v60 = vld [vmem:[%s539_s6] ss:$0 sm:$0xff]  ;;  %281 = vmatpush.msra.mxu2 %v254_v61 }
  0x16   :  { %245 = vmatpush.msra.mxu1 %v222_v28  ;;  %321 = vmatpush.msra.mxu3 %v145_v27  ;;  %v253_v62 = vld [vmem:[#allocation6] sm:$0xff] }
  0x17   :  { %88 = vadd.xlane.f32.xlu0 %v87_v3  ;;  %v92_v7 = vsub.f32 1.0, %v91_v6  ;;  %282 = vmatpush.msra.mxu2 %v253_v62 }
  0x19   :  { %v93_v8 = vmul.f32 %v335_v5, %v92_v7 }
  0x1b   :  { %v94_v9 = vadd.f32 %v335_v5, %v93_v8 }
  0x1d   :  { %v96_v10 = vsel %vm95_vm1, %v335_v5, %v94_v9 }
  0x82   :  { %v86_v11 = vpop.xlane.xlu0 %85 }
  0x83   :  { %v97_v12 = vmul.f32 %v96_v10, %v86_v11 }
  0x85   :  { %v99_v13 = vsub.f32 %v79_v0, %v97_v12 }
  0x87   :  { %v101_v14 = vmul.f32 %v99_v13, %v99_v13 }
  0x89   :  { %v103_v15 = vsel %vm83_vm0, %v101_v14, 0.0 }
  0x8a   :  { %104 = vadd.xlane.f32.xlu1 %v103_v15  ;;  %v89_v16 = vpop.xlane.xlu0 %88 }
  0x8b   :  { %v98_v17 = vmul.f32 %v96_v10, %v89_v16 }
  0x8d   :  { %v100_v18 = vsub.f32 %v80_v2, %v98_v17 }
  0x8f   :  { %v102_v19 = vmul.f32 %v100_v18, %v100_v18 }
  0x91   :  { %v106_v20 = vsel %vm83_vm0, %v102_v19, 0.0 }
  0x92   :  { %107 = vadd.xlane.f32.xlu1 %v106_v20 }
  0xfd   :  { %v105_v29 = vpop.xlane.xlu1 %104 }
  0xfe   :  { %v109_v30 = vmul.f32 %v105_v29, %v96_v10 }
 0x100   :  { %v111_v31 = vadd.f32 1e-05, %v109_v30 }
 0x102   :  { %336 = vrsqrt.f32 %v111_v31  ;;  %vm119_vm3 = vweird.f32 %v111_v31 }
 0x105   :  { %v108_v32 = vpop.xlane.xlu1 %107 }
 0x106   :  { %v110_v33 = vmul.f32 %v108_v32, %v96_v10 }
 0x108   :  { %v337_v34 = vpop.eup %336  ;;  %v112_v35 = vadd.f32 1e-05, %v110_v33 }
 0x109   :  { %v114_v36 = vmul.f32 %v337_v34, %v111_v31  ;;  %vm120_vm2 = vweird.f32 %v337_v34 }
 0x10a   :  { %338 = vrsqrt.f32 %v112_v35  ;;  %vm121_vm4 = vmor %vm119_vm3, %vm120_vm2  ;;  %vm129_vm6 = vweird.f32 %v112_v35  ;;  %vm301_vm2 = vcmask 1048064  }
 0x10b   :  { %v115_v37 = vmul.f32 %v337_v34, %v114_v36 }
 0x10d   :  { %v116_v38 = vmul.f32 0.5, %v115_v37 }
 0x10f   :  { %v117_v39 = vsub.f32 1.5, %v116_v38 }
 0x110   :  { %v339_v40 = vpop.eup %338 }
 0x111   :  { %v118_v41 = vmul.f32 %v337_v34, %v117_v39  ;;  %v124_v42 = vmul.f32 %v339_v40, %v112_v35  ;;  %vm130_vm5 = vweird.f32 %v339_v40  ;;  %v333_v35 = vld [vmem:[%s541_s8] ss:$0 sm:$0xff] }
 0x112   :  { %vm131_vm7 = vmor %vm129_vm6, %vm130_vm5 }
 0x113   :  { %v122_v44 = vsel %vm121_vm4, %v337_v34, %v118_v41  ;;  %v125_v45 = vmul.f32 %v339_v40, %v124_v42 }
 0x114   :  { %v133_v46 = vmul.f32 %v122_v44, %v99_v13 }
 0x115   :  { %v126_v48 = vmul.f32 0.5, %v125_v45 }
 0x116   :  { %v138_v49 = vmul.f32 %v329_v43, %v133_v46 }
 0x117   :  { %v127_v50 = vsub.f32 1.5, %v126_v48 }
 0x118   :  { %v143_v51 = vadd.f32 %v330_v47, %v138_v49 }
 0x119   :  { %v128_v52 = vmul.f32 %v339_v40, %v127_v50 }
 0x11a   :  { %310 = vmatmul.msk.f32.vlgmr.msra.gmra.mxu0 %vm83_vm0, %v143_v51  ;;  %314 = vmatmul.msk.f32.vlgmr.msra.gmra.mxu1 %vm83_vm0, %v143_v51 }
 0x11b   :  { %v132_v53 = vsel %vm131_vm7, %v339_v40, %v128_v52 }
 0x11c   :  { %v134_v54 = vmul.f32 %v132_v53, %v100_v18 }
 0x11e   :  { %v139_v55 = vmul.f32 %v329_v43, %v134_v54 }
 0x120   :  { %v144_v56 = vadd.f32 %v330_v47, %v139_v55 }
 0x122   :  { %311 = vmatmul.msk.f32.vlgmr.msra.gmra.mxu3 %vm83_vm0, %v144_v56  ;;  %315 = vmatmul.msk.f32.gmra.mxu1 %vm83_vm0, %v144_v56 }
 0x197   :  { %v176_v63 = vpop.f32.mrf.mxu0  ;;  %v247_v0 = vpop.f32.mrf.mxu1 }
 0x198   :  { %v177_v1 = vadd.f32 %v331_v59, %v176_v63  ;;  %v248_v2 = vadd.f32 %v332_v60, %v247_v0 }
 0x19a   :  { %v312_v3 = vmul.f32 -1.442695, %v177_v1  ;;  %291 = vst.msk [vmem:[%s542_s9] sm:$0xff] %vm290_vm8, %v248_v2 }
 0x19c   :  { %340 = vpow2.f32 %v312_v3 }
 0x19f   :  { %v250_v4 = vpop.f32.mrf.mxu1 }
 0x1a0   :  { %v251_v5 = vadd.f32 %v332_v60, %v250_v4 }
 0x1a2   :  { %v341_v6 = vpop.eup %340  ;;  %292 = vst.msk [vmem:[%s542_s9 + $0x8] sm:$0xff] %vm290_vm8, %v251_v5 }
 0x1a3   :  { %v188_v7 = vadd.f32 1.0, %v341_v6 }
 0x1a5   :  { %342 = vrcp.f32 %v188_v7  ;;  %v179_v8 = vpop.f32.mrf.mxu3  ;;  %v201_v14 = vand.u32 2147483648, %v188_v7  ;;  %v199_v17 = vand.u32 2147483647, %v188_v7  ;;  %vm195_vm10 = vweird.f32 %v188_v7 }
 0x1a6   :  { %v180_v9 = vadd.f32 %v331_v59, %v179_v8 }
 0x1a7   :  { %v202_v20 = vor.u32 1.1754944e-38, %v201_v14  ;;  %vm200_vm12 = vcmp.eq.f32.partialorder %v199_v17, 8.507059e+37 }
 0x1a8   :  { %v313_v10 = vmul.f32 -1.442695, %v180_v9 }
 0x1aa   :  { %344 = vpow2.f32 %v313_v10 }
 0x1ab   :  { %v343_v11 = vpop.eup %342 }
 0x1ac   :  { %v191_v12 = vmul.f32 %v343_v11, %v188_v7  ;;  %vm196_vm9 = vweird.f32 %v343_v11 }
 0x1ad   :  { %vm197_vm11 = vmor %vm195_vm10, %vm196_vm9 }
 0x1ae   :  { %v192_v13 = vsub.f32 1.0, %v191_v12 }
 0x1b0   :  { %v345_v15 = vpop.eup %344  ;;  %v193_v16 = vmul.f32 %v343_v11, %v192_v13 }
 0x1b1   :  { %v189_v18 = vadd.f32 1.0, %v345_v15 }
 0x1b2   :  { %v194_v19 = vadd.f32 %v343_v11, %v193_v16 }
 0x1b3   :  { %346 = vrcp.f32 %v189_v18  ;;  %v216_v27 = vand.u32 2147483648, %v189_v18  ;;  %v214_v29 = vand.u32 2147483647, %v189_v18  ;;  %vm210_vm14 = vweird.f32 %v189_v18 }
 0x1b4   :  { %v198_v21 = vsel %vm197_vm11, %v343_v11, %v194_v19 }
 0x1b5   :  { %v203_v22 = vsel %vm200_vm12, %v202_v20, %v198_v21  ;;  %v217_v31 = vor.u32 1.1754944e-38, %v216_v27  ;;  %vm215_vm1 = vcmp.eq.f32.partialorder %v214_v29, 8.507059e+37 }
 0x1b6   :  { %v220_v23 = vmul.f32 %v203_v22, %v177_v1 }
 0x1b8   :  { %316 = vmatmul.msk.f32.vlgmr.msra.gmra.mxu2 %vm83_vm0, %v220_v23 }
 0x1b9   :  { %v347_v24 = vpop.eup %346 }
 0x1ba   :  { %v206_v25 = vmul.f32 %v347_v24, %v189_v18  ;;  %vm211_vm13 = vweird.f32 %v347_v24 }
 0x1bb   :  { %vm212_vm15 = vmor %vm210_vm14, %vm211_vm13 }
 0x1bc   :  { %v207_v26 = vsub.f32 1.0, %v206_v25 }
 0x1be   :  { %v208_v28 = vmul.f32 %v347_v24, %v207_v26 }
 0x1c0   :  { %v209_v30 = vadd.f32 %v347_v24, %v208_v28 }
 0x1c2   :  { %v213_v32 = vsel %vm212_vm15, %v347_v24, %v209_v30 }
 0x1c3   :  { %v218_v33 = vsel %vm215_vm1, %v217_v31, %v213_v32 }
 0x1c4   :  { %v221_v34 = vmul.f32 %v218_v33, %v180_v9 }
 0x1c6   :  { %317 = vmatmul.msk.f32.gmra.mxu2 %vm83_vm0, %v221_v34 }
 0x23b   :  { %v284_v36 = vpop.f32.mrf.mxu2 }
 0x23c   :  { %v285_v37 = vadd.f32 %v333_v35, %v284_v36 }
 0x23e   :  { %295 = vrot.lane.b32.xlu2 %v285_v37, %s430_s15 }
 0x249   :  { %v287_v38 = vpop.f32.mrf.mxu2 }
 0x24a   :  { %v288_v39 = vadd.f32 %v333_v35, %v287_v38 }
 0x24c   :  { %297 = vrot.lane.b32.xlu2 %v288_v39, %s430_s15 }
 0x298   :  { %v296_v40 = vpop.permute.xlu2 %295 }
 0x299   :  { %302 = vst.msk [vmem:[%s542_s9] sm:$0xff] %vm301_vm2, %v296_v40 }
 0x2a6   :  { %v298_v41 = vpop.permute.xlu2 %297 }
 0x2a7   :  { %303 = vst.msk [vmem:[%s542_s9 + $0x8] sm:$0xff] %vm301_vm2, %v298_v41 }
 0x2a8   :  { %308 = vsyncpa [#allocation3], 1 }
 0x2a9   :  { %309 = vsyncpa [#allocation5], 1 }

// kernel: xlstm_forward.7
= control target key start
LH: loop header
LB: loop body
LE: loop exit
PB: predicated region body
PF: predicated region fallthrough
CT: control target
= control target key end

     0   :  { %vm16_vm0 = vcmask 254976   ;;  %v1299_v0 = vmov 0.0   ;;  %vm94_vm1 = vcmask 1041408   ;;  %vm81_vm2 = vcmask 15360   ;;  %s1781_s0 = inlined_call_operand.vmem [shape: f32[6,8,2,32], index: 0, kind: input, shape index: {}]   ;;  %s1782_s2 = inlined_call_operand.vmem [shape: f32[2,32], index: 2, kind: output, shape index: {1}]   ;;  %s1783_s4 = inlined_call_operand.vmem [shape: f32[2,32], index: 4, kind: output, shape index: {3}]   ;;  %s1784_s3 = inlined_call_operand.vmem [shape: f32[2,32], index: 3, kind: output, shape index: {2}]   ;;  %s1785_s1 = inlined_call_operand.vmem [shape: f32[8,2,32], index: 1, kind: output, shape index: {0}]  }
   0x1   :  { %17 = vst.msk [vmem:[%s1782_s2] sm:$0x3] %vm16_vm0, %v1299_v0  ;;  %v1332_v1 = vld [vmem:[%s1781_s0 + $0x4] sm:$0x3]  ;;  %v1342_v2 = vld [vmem:[%s1781_s0] sm:$0x3] }
   0x2   :  { %19 = vst.msk [vmem:[%s1783_s4] sm:$0x3] %vm16_vm0, %v1299_v0  ;;  %330 = vxpose.xlu0.b32.start.end [1/1] (short) (narrow) %v1332_v1, 32  ;;  %v1158_v3 = vld [vmem:[%s1781_s0 + $0x30] sm:$0x3]  ;;  %49 = vxpose.xlu1.b32.start.end [1/1] (short) (narrow) %v1342_v2, 32 }
   0x3   :  { %v1157_v5 = vld [vmem:[%s1781_s0 + $0x20] sm:$0x3]  ;;  %v1169_v7 = vld [vmem:[%s1781_s0 + $0x32] sm:$0x3]  ;;  %v1168_v9 = vld [vmem:[%s1781_s0 + $0x22] sm:$0x3] }
   0x4   :  { %v1363_v10 = vld [vmem:[%s1781_s0 + $0xc] sm:$0x3]  ;;  %v1181_v14 = vld [vmem:[%s1781_s0 + $0x34] sm:$0x3]  ;;  %v1180_v18 = vld [vmem:[%s1781_s0 + $0x24] sm:$0x3] }
   0x5   :  { %886 = vxpose.xlu2.b32.start.end [1/1] (short) (narrow) %v1363_v10, 32  ;;  %v1159_v19 = vld [vmem:[%s1781_s0 + $0x40] sm:$0x3]  ;;  %v1193_v23 = vld [vmem:[%s1781_s0 + $0x36] sm:$0x3]  ;;  %vm131_vm3 = vcmask 261120  }
   0x6   :  { %v1381_v24 = vld [vmem:[%s1781_s0 + $0x10] sm:$0x3]  ;;  %v1192_v29 = vld [vmem:[%s1781_s0 + $0x26] sm:$0x3]  ;;  %v1170_v30 = vld [vmem:[%s1781_s0 + $0x42] sm:$0x3] }
   0x7   :  { %v43_v28 = vmul.f32 %v1159_v19, %v1381_v24  ;;  %v1396_v35 = vld [vmem:[%s1781_s0 + $0x12] sm:$0x3]  ;;  %18 = vst.msk [vmem:[%s1784_s3] sm:$0x3] %vm16_vm0, %v1299_v0  ;;  %v1205_v39 = vld [vmem:[%s1781_s0 + $0x38] sm:$0x3] }
   0x8   :  { %v20_v34 = vld [vmem:[%s1782_s2] sm:$0x3]  ;;  %v185_v43 = vmul.f32 %v1170_v30, %v1396_v35  ;;  %v1182_v44 = vld [vmem:[%s1781_s0 + $0x44] sm:$0x3]  ;;  %v1204_v46 = vld [vmem:[%s1781_s0 + $0x28] sm:$0x3] }
   0x9   :  { %v22_v4 = vld [vmem:[%s1783_s4] sm:$0x3]  ;;  %v1421_v49 = vld [vmem:[%s1781_s0 + $0x14] sm:$0x3]  ;;  %v1217_v55 = vld [vmem:[%s1781_s0 + $0x3a] sm:$0x3] }
   0xa   :  { %v34_v6 = vadd.f32 %v1158_v3, %v22_v4  ;;  %v324_v57 = vmul.f32 %v1182_v44, %v1421_v49  ;;  %v1160_v59 = vld [vmem:[%s1781_s0 + $0x50] sm:$0x3]  ;;  %v1194_v60 = vld [vmem:[%s1781_s0 + $0x46] sm:$0x3]  ;;  %v1216_v0 = vld [vmem:[%s1781_s0 + $0x2a] sm:$0x3] }
   0xb   :  { %v1446_v3 = vld [vmem:[%s1781_s0 + $0x16] sm:$0x3]  ;;  %v1218_v44 = vld [vmem:[%s1781_s0 + $0x4a] sm:$0x3] }
   0xc   :  { %v35_v8 = vmax.f32 %v34_v6, %v1157_v5 }
   0xe   :  { %v36_v11 = vsub.f32 %v1157_v5, %v35_v8  ;;  %v39_v12 = vsub.f32 %v34_v6, %v35_v8  ;;  %v176_v13 = vadd.f32 %v1169_v7, %v35_v8 }
  0x10   :  { %v37_v15 = vmul.f32 1.442695, %v36_v11  ;;  %v40_v16 = vmul.f32 1.442695, %v39_v12  ;;  %v177_v17 = vmax.f32 %v176_v13, %v1168_v9  ;;  %v463_v11 = vmul.f32 %v1194_v60, %v1446_v3  ;;  %v1166_v12 = vld [vmem:[%s1781_s0 + $0x2] sm:$0x3] }
  0x12   :  { %1251 = vpow2.f32 %v37_v15  ;;  %v178_v20 = vsub.f32 %v1168_v9, %v177_v17  ;;  %v181_v21 = vsub.f32 %v176_v13, %v177_v17  ;;  %v315_v22 = vadd.f32 %v1181_v14, %v177_v17  ;;  %v1229_v13 = vld [vmem:[%s1781_s0 + $0x3c] sm:$0x3] }
  0x13   :  { %1253 = vpow2.f32 %v40_v16 }
  0x14   :  { %v179_v25 = vmul.f32 1.442695, %v178_v20  ;;  %v182_v26 = vmul.f32 1.442695, %v181_v21  ;;  %v316_v27 = vmax.f32 %v315_v22, %v1180_v18 }
  0x16   :  { %1255 = vpow2.f32 %v179_v25  ;;  %v317_v31 = vsub.f32 %v1180_v18, %v316_v27  ;;  %v320_v32 = vsub.f32 %v315_v22, %v316_v27  ;;  %v454_v33 = vadd.f32 %v1193_v23, %v316_v27  ;;  %v1171_v18 = vld [vmem:[%s1781_s0 + $0x52] sm:$0x3]  ;;  %v1228_v22 = vld [vmem:[%s1781_s0 + $0x2c] sm:$0x3]  ;;  %v1206_v23 = vld [vmem:[%s1781_s0 + $0x48] sm:$0x3] }
  0x17   :  { %1257 = vpow2.f32 %v182_v26 }
  0x18   :  { %v1402_v36 = vpop.eup %1251  ;;  %v318_v37 = vmul.f32 1.442695, %v317_v31  ;;  %v321_v38 = vmul.f32 1.442695, %v320_v32  ;;  %v455_v40 = vmax.f32 %v454_v33, %v1192_v29 }
  0x19   :  { %v1407_v41 = vpop.eup %1253  ;;  %v44_v42 = vmul.f32 %v1402_v36, %v43_v28 }
  0x1a   :  { %v42_v45 = vmul.f32 %v1407_v41, %v20_v34  ;;  %1259 = vpow2.f32 %v318_v37  ;;  %v456_v47 = vsub.f32 %v1192_v29, %v455_v40  ;;  %v459_v48 = vsub.f32 %v454_v33, %v455_v40  ;;  %v1183_v29 = vld [vmem:[%s1781_s0 + $0x54] sm:$0x3]  ;;  %v1487_v33 = vld [vmem:[%s1781_s0 + $0x18] sm:$0x3] }
  0x1b   :  { %1261 = vpow2.f32 %v321_v38  ;;  %v593_v50 = vadd.f32 %v1205_v39, %v455_v40 }
  0x1c   :  { %v1423_v51 = vpop.eup %1255  ;;  %v45_v52 = vadd.f32 %v44_v42, %v42_v45  ;;  %v457_v53 = vmul.f32 1.442695, %v456_v47  ;;  %v460_v54 = vmul.f32 1.442695, %v459_v48  ;;  %v602_v42 = vmul.f32 %v1206_v23, %v1487_v33  ;;  %v1195_v48 = vld [vmem:[%s1781_s0 + $0x56] sm:$0x3] }
  0x1d   :  { %v1428_v56 = vpop.eup %1257  ;;  %v186_v58 = vmul.f32 %v1423_v51, %v185_v43  ;;  %v594_v61 = vmax.f32 %v593_v50, %v1204_v46 }
  0x1e   :  { %v184_v62 = vmul.f32 %v1428_v56, %v45_v52  ;;  %v145_v63 = vmul.f32 %v45_v52, %v1342_v2  ;;  %1263 = vpow2.f32 %v457_v53  ;;  %v1190_v2 = vld [vmem:[%s1781_s0 + $0x6] sm:$0x3]  ;;  %v1241_v52 = vld [vmem:[%s1781_s0 + $0x3e] sm:$0x3] }
  0x1f   :  { %1265 = vpow2.f32 %v460_v54  ;;  %v595_v4 = vsub.f32 %v1204_v46, %v594_v61  ;;  %v598_v5 = vsub.f32 %v593_v50, %v594_v61  ;;  %v732_v6 = vadd.f32 %v1217_v55, %v594_v61  ;;  %v1512_v54 = vld [vmem:[%s1781_s0 + $0x1a] sm:$0x3] }
  0x20   :  { %v1448_v7 = vpop.eup %1259  ;;  %v187_v8 = vadd.f32 %v186_v58, %v184_v62  ;;  %v1450_v9 = vmul.f32 %v1160_v59, %v145_v63  ;;  %v741_v62 = vmul.f32 %v1218_v44, %v1512_v54 }
  0x21   :  { %v1462_v14 = vpop.eup %1261  ;;  %v325_v15 = vmul.f32 %v1448_v7, %v324_v57  ;;  %v596_v16 = vmul.f32 1.442695, %v595_v4  ;;  %v599_v17 = vmul.f32 1.442695, %v598_v5  ;;  %v733_v19 = vmax.f32 %v732_v6, %v1216_v0 }
  0x22   :  { %v323_v20 = vmul.f32 %v1462_v14, %v187_v8  ;;  %v284_v21 = vmul.f32 %v1166_v12, %v187_v8  ;;  %469 = vxpose.xlu0.b32.start.end [1/1] (short) (narrow) %v1190_v2, 32  ;;  %191 = vxpose.xlu1.b32.start.end [1/1] (short) (narrow) %v1166_v12, 32 }
  0x23   :  { %1267 = vpow2.f32 %v596_v16  ;;  %v734_v25 = vsub.f32 %v1216_v0, %v733_v19  ;;  %v737_v26 = vsub.f32 %v732_v6, %v733_v19  ;;  %v871_v27 = vadd.f32 %v1229_v13, %v733_v19  ;;  %v1230_v0 = vld [vmem:[%s1781_s0 + $0x4c] sm:$0x3]  ;;  %v1238_v6 = vld [vmem:[%s1781_s0 + $0xe] sm:$0x3]  ;;  %v1207_v19 = vld [vmem:[%s1781_s0 + $0x58] sm:$0x3] }
  0x24   :  { %v1475_v28 = vpop.eup %1263  ;;  %v326_v30 = vadd.f32 %v325_v15, %v323_v20  ;;  %1269 = vpow2.f32 %v599_v17  ;;  %v1480_v31 = vmul.f32 %v1171_v18, %v284_v21  ;;  %v1202_v18 = vld [vmem:[%s1781_s0 + $0x8] sm:$0x3] }
  0x25   :  { %v1482_v32 = vpop.eup %1265  ;;  %v464_v34 = vmul.f32 %v1475_v28, %v463_v11  ;;  %v735_v37 = vmul.f32 1.442695, %v734_v25  ;;  %v738_v38 = vmul.f32 1.442695, %v737_v26  ;;  %v872_v39 = vmax.f32 %v871_v27, %v1228_v22  ;;  %v1532_v11 = vld [vmem:[%s1781_s0 + $0x1c] sm:$0x3] }
  0x26   :  { %v423_v40 = vmul.f32 %v1332_v1, %v326_v30  ;;  %v462_v43 = vmul.f32 %v1482_v32, %v326_v30  ;;  %v1240_v1 = vld [vmem:[%s1781_s0 + $0x2e] sm:$0x3]  ;;  %v880_v16 = vmul.f32 %v1230_v0, %v1532_v11  ;;  %1025 = vxpose.xlu2.b32.start.end [1/1] (short) (narrow) %v1238_v6, 32  ;;  %v47_v0 = vmul.f32 %v1402_v36, %v1381_v24 }
  0x27   :  { %1271 = vpow2.f32 %v735_v37  ;;  %v873_v45 = vsub.f32 %v1228_v22, %v872_v39  ;;  %v876_v46 = vsub.f32 %v871_v27, %v872_v39  ;;  %v1010_v58 = vadd.f32 %v1241_v52, %v872_v39  ;;  %v1214_v37 = vld [vmem:[%s1781_s0 + $0xa] sm:$0x3] }
  0x28   :  { %v1496_v47 = vmul.f32 %v1183_v29, %v423_v40  ;;  %v465_v50 = vadd.f32 %v464_v34, %v462_v43  ;;  %1273 = vpow2.f32 %v738_v38  ;;  %v1242_v29 = vld [vmem:[%s1781_s0 + $0x4e] sm:$0x3]  ;;  %v1219_v38 = vld [vmem:[%s1781_s0 + $0x5a] sm:$0x3]  ;;  %v467_v36 = vmul.f32 %v1475_v28, %v1446_v3 }
  0x29   :  { %v1507_v53 = vpop.eup %1267  ;;  %v874_v55 = vmul.f32 1.442695, %v873_v45  ;;  %v877_v57 = vmul.f32 1.442695, %v876_v46  ;;  %v1011_v4 = vmax.f32 %v1010_v58, %v1240_v1  ;;  %v1231_v46 = vld [vmem:[%s1781_s0 + $0x5c] sm:$0x3] }
  0x2a   :  { %v1514_v59 = vpop.eup %1269  ;;  %v562_v60 = vmul.f32 %v1190_v2, %v465_v50  ;;  %v603_v61 = vmul.f32 %v1507_v53, %v602_v42  ;;  %v1239_v42 = vld [vmem:[%s1781_s0 + $0x1e] sm:$0x3] }
  0x2b   :  { %v601_v63 = vmul.f32 %v1514_v59, %v465_v50  ;;  %1275 = vpow2.f32 %v874_v55  ;;  %v1012_v12 = vsub.f32 %v1240_v1, %v1011_v4  ;;  %v1015_v13 = vsub.f32 %v1010_v58, %v1011_v4  ;;  %1139 = vst.msk [vmem:[%s1783_s4] sm:$0x3] %vm16_vm0, %v1011_v4 }
  0x2c   :  { %v1522_v5 = vmul.f32 %v1195_v48, %v562_v60  ;;  %1277 = vpow2.f32 %v877_v57  ;;  %v1019_v43 = vmul.f32 %v1242_v29, %v1239_v42  ;;  %v1243_v60 = vld [vmem:[%s1781_s0 + $0x5e] sm:$0x3] }
  0x2d   :  { %v1527_v8 = vpop.eup %1271  ;;  %v604_v2 = vadd.f32 %v603_v61, %v601_v63  ;;  %v1013_v22 = vmul.f32 1.442695, %v1012_v12  ;;  %v1016_v23 = vmul.f32 1.442695, %v1015_v13 }
  0x2e   :  { %v1274_v15 = vpop.eup %1273  ;;  %v742_v17 = vmul.f32 %v1527_v8, %v741_v62 }
  0x2f   :  { %v740_v20 = vmul.f32 %v1274_v15, %v604_v2  ;;  %v701_v21 = vmul.f32 %v1202_v18, %v604_v2  ;;  %1279 = vpow2.f32 %v1013_v22  ;;  %v189_v2 = vmul.f32 %v1423_v51, %v1396_v35 }
  0x30   :  { %1281 = vpow2.f32 %v1016_v23 }
  0x31   :  { %v1276_v25 = vpop.eup %1275  ;;  %v743_v26 = vadd.f32 %v742_v17, %v740_v20  ;;  %v1546_v27 = vmul.f32 %v1207_v19, %v701_v21 }
  0x32   :  { %v1278_v30 = vpop.eup %1277  ;;  %v881_v34 = vmul.f32 %v1276_v25, %v880_v16  ;;  %v328_v16 = vmul.f32 %v1448_v7, %v1421_v49  ;;  %v606_v49 = vmul.f32 %v1507_v53, %v1487_v33  ;;  %v884_v3 = vmul.f32 %v1276_v25, %v1532_v11 }
  0x33   :  { %v879_v39 = vmul.f32 %v1278_v30, %v743_v26  ;;  %v840_v40 = vmul.f32 %v1214_v37, %v743_v26 }
  0x35   :  { %v882_v44 = vadd.f32 %v881_v34, %v879_v39  ;;  %v1560_v45 = vmul.f32 %v1219_v38, %v840_v40  ;;  %v1280_v48 = vpop.eup %1279 }
  0x36   :  { %v1282_v1 = vpop.eup %1281  ;;  %v1020_v52 = vmul.f32 %v1280_v48, %v1019_v43  ;;  %v1023_v53 = vmul.f32 %v1280_v48, %v1239_v42 }
  0x37   :  { %v979_v50 = vmul.f32 %v1363_v10, %v882_v44  ;;  %v1018_v57 = vmul.f32 %v1282_v1, %v882_v44  ;;  %v21_v10 = vld [vmem:[%s1784_s3] sm:$0x3] }
  0x38   :  { %v46_v63 = vmul.f32 %v1407_v41, %v21_v10 }
  0x39   :  { %v1566_v55 = vmul.f32 %v1231_v46, %v979_v50  ;;  %v1021_v58 = vadd.f32 %v1020_v52, %v1018_v57 }
  0x3a   :  { %v48_v4 = vadd.f32 %v47_v0, %v46_v63 }
  0x3b   :  { %v1118_v61 = vmul.f32 %v1238_v6, %v1021_v58  ;;  %1137 = vst.msk [vmem:[%s1782_s2] sm:$0x3] %vm16_vm0, %v1021_v58 }
  0x3c   :  { %v188_v6 = vmul.f32 %v1428_v56, %v48_v4  ;;  %1161 = vmatpush.msk.msra.mxu0 %vm94_vm1, %v48_v4 }
  0x3d   :  { %v1575_v62 = vmul.f32 %v1243_v60, %v1118_v61 }
  0x3e   :  { %v190_v12 = vadd.f32 %v189_v2, %v188_v6 }
  0x40   :  { %v327_v13 = vmul.f32 %v1462_v14, %v190_v12  ;;  %1172 = vmatpush.msk.msra.mxu1 %vm94_vm1, %v190_v12  ;;  %v745_v14 = vmul.f32 %v1527_v8, %v1512_v54 }
  0x42   :  { %608 = vxpose.xlu0.b32.start.end [1/1] (short) (narrow) %v1202_v18, 32  ;;  %747 = vxpose.xlu1.b32.start.end [1/1] (short) (narrow) %v1214_v37, 32  ;;  %v329_v41 = vadd.f32 %v328_v16, %v327_v13 }
  0x44   :  { %1184 = vmatpush.msk.msra.mxu2 %vm94_vm1, %v329_v41  ;;  %v466_v24 = vmul.f32 %v1482_v32, %v329_v41 }
  0x46   :  { %v468_v35 = vadd.f32 %v467_v36, %v466_v24 }
  0x48   :  { %1196 = vmatpush.msk.msra.mxu3 %vm94_vm1, %v468_v35  ;;  %v605_v51 = vmul.f32 %v1514_v59, %v468_v35 }
  0x4a   :  { %v607_v56 = vadd.f32 %v606_v49, %v605_v51 }
  0x4c   :  { %v744_v7 = vmul.f32 %v1274_v15, %v607_v56  ;;  %1208 = vmatpush.msk.msrb.mxu0 %vm94_vm1, %v607_v56 }
  0x4e   :  { %v746_v32 = vadd.f32 %v745_v14, %v744_v7 }
  0x50   :  { %v883_v18 = vmul.f32 %v1278_v30, %v746_v32  ;;  %1220 = vmatpush.msk.msrb.mxu1 %vm94_vm1, %v746_v32 }
  0x52   :  { %v885_v28 = vadd.f32 %v884_v3, %v883_v18 }
  0x54   :  { %1232 = vmatpush.msk.msrb.mxu2 %vm94_vm1, %v885_v28  ;;  %v1022_v33 = vmul.f32 %v1282_v1, %v885_v28 }
  0x56   :  { %v1024_v54 = vadd.f32 %v1023_v53, %v1022_v33 }
  0x58   :  { %1244 = vmatpush.msk.msrb.mxu3 %vm94_vm1, %v1024_v54  ;;  %1138 = vst.msk [vmem:[%s1784_s3] sm:$0x3] %vm16_vm0, %v1024_v54 }
  0x9e   :  { %v902_v19 = vpop.trf.xlu2 }
  0xa6   :  { %v346_v17 = vpop.trf.xlu0  ;;  %v65_v59 = vpop.trf.xlu1 }
  0xa7   :  { %1185 = vmatmul.msk.f32.vlgmr.msra.gmra.mxu2 %vm81_vm2, %v346_v17  ;;  %1162 = vmatmul.msk.f32.vlgmr.msra.gmra.mxu0 %vm81_vm2, %v65_v59  ;;  %v903_v22 = vpop.trf.xlu2 }
  0xae   :  { %v347_v8 = vpop.trf.xlu0  ;;  %v66_v11 = vpop.trf.xlu1 }
  0xaf   :  { %1186 = vmatmul.msk.f32.gmra.mxu2 %vm81_vm2, %v347_v8  ;;  %1163 = vmatmul.msk.f32.gmra.mxu0 %vm81_vm2, %v66_v11  ;;  %v904_v29 = vpop.trf.xlu2 }
  0xb6   :  { %v348_v15 = vpop.trf.xlu0  ;;  %v67_v20 = vpop.trf.xlu1 }
  0xb7   :  { %1187 = vmatmul.msk.f32.gmra.mxu2 %vm81_vm2, %v348_v15  ;;  %1164 = vmatmul.msk.f32.gmra.mxu0 %vm81_vm2, %v67_v20  ;;  %v905_v37 = vpop.trf.xlu2 }
  0xbe   :  { %v349_v21 = vpop.trf.xlu0  ;;  %v68_v23 = vpop.trf.xlu1 }
  0xbf   :  { %1188 = vmatmul.msk.f32.gmra.mxu2 %vm81_vm2, %v349_v21  ;;  %1165 = vmatmul.msk.f32.gmra.mxu0 %vm81_vm2, %v68_v23  ;;  %v1041_v42 = vpop.trf.xlu2 }
  0xc6   :  { %v485_v25 = vpop.trf.xlu0  ;;  %v207_v26 = vpop.trf.xlu1 }
  0xc7   :  { %1197 = vmatmul.msk.f32.vlgmr.msra.gmra.mxu3 %vm81_vm2, %v485_v25  ;;  %1233 = vmatmul.msk.f32.vlgmr.msrb.gmra.mxu2 %vm81_vm2, %v902_v19  ;;  %v1042_v46 = vpop.trf.xlu2 }
  0xc8   :  { %1173 = vmatmul.msk.f32.vlgmr.msra.gmra.mxu1 %vm81_vm2, %v207_v26 }
  0xce   :  { %v486_v30 = vpop.trf.xlu0  ;;  %v208_v34 = vpop.trf.xlu1 }
  0xcf   :  { %1198 = vmatmul.msk.f32.gmra.mxu3 %vm81_vm2, %v486_v30  ;;  %1234 = vmatmul.msk.f32.gmra.mxu2 %vm81_vm2, %v903_v22  ;;  %v1043_v52 = vpop.trf.xlu2 }
  0xd0   :  { %1174 = vmatmul.msk.f32.gmra.mxu1 %vm81_vm2, %v208_v34 }
  0xd6   :  { %v487_v38 = vpop.trf.xlu0  ;;  %v209_v39 = vpop.trf.xlu1 }
  0xd7   :  { %1199 = vmatmul.msk.f32.gmra.mxu3 %vm81_vm2, %v487_v38  ;;  %1235 = vmatmul.msk.f32.gmra.mxu2 %vm81_vm2, %v904_v29  ;;  %v1044_v60 = vpop.trf.xlu2 }
  0xd8   :  { %1175 = vmatmul.msk.f32.gmra.mxu1 %vm81_vm2, %v209_v39 }
  0xde   :  { %v488_v40 = vpop.trf.xlu0  ;;  %v210_v43 = vpop.trf.xlu1 }
  0xdf   :  { %1200 = vmatmul.msk.f32.gmra.mxu3 %vm81_vm2, %v488_v40  ;;  %1236 = vmatmul.msk.f32.gmra.mxu2 %vm81_vm2, %v905_v37 }
  0xe0   :  { %1176 = vmatmul.msk.f32.gmra.mxu1 %vm81_vm2, %v210_v43 }
  0xe6   :  { %v624_v44 = vpop.trf.xlu0  ;;  %v763_v48 = vpop.trf.xlu1 }
  0xe7   :  { %1209 = vmatmul.msk.f32.vlgmr.msrb.gmra.mxu0 %vm81_vm2, %v624_v44  ;;  %1245 = vmatmul.msk.f32.vlgmr.msrb.gmra.mxu3 %vm81_vm2, %v1041_v42 }
  0xe8   :  { %1221 = vmatmul.msk.f32.vlgmr.msrb.gmra.mxu1 %vm81_vm2, %v763_v48 }
  0xee   :  { %v625_v50 = vpop.trf.xlu0  ;;  %v764_v1 = vpop.trf.xlu1 }
  0xef   :  { %1210 = vmatmul.msk.f32.gmra.mxu0 %vm81_vm2, %v625_v50  ;;  %1246 = vmatmul.msk.f32.gmra.mxu3 %vm81_vm2, %v1042_v46 }
  0xf0   :  { %1222 = vmatmul.msk.f32.gmra.mxu1 %vm81_vm2, %v764_v1 }
  0xf6   :  { %v626_v57 = vpop.trf.xlu0  ;;  %v765_v58 = vpop.trf.xlu1 }
  0xf7   :  { %1211 = vmatmul.msk.f32.gmra.mxu0 %vm81_vm2, %v626_v57  ;;  %1247 = vmatmul.msk.f32.gmra.mxu3 %vm81_vm2, %v1043_v52 }
  0xf8   :  { %1223 = vmatmul.msk.f32.gmra.mxu1 %vm81_vm2, %v765_v58 }
  0xfe   :  { %v627_v61 = vpop.trf.xlu0  ;;  %v766_v10 = vpop.trf.xlu1 }
  0xff   :  { %1212 = vmatmul.msk.f32.gmra.mxu0 %vm81_vm2, %v627_v61  ;;  %1248 = vmatmul.msk.f32.gmra.mxu3 %vm81_vm2, %v1044_v60 }
 0x100   :  { %1224 = vmatmul.msk.f32.gmra.mxu1 %vm81_vm2, %v766_v10 }
 0x124   :  { %v115_v63 = vpop.f32.mrf.mxu0 }
 0x125   :  { %v127_v16 = vand.u32 2147483647, %v115_v63 }
 0x127   :  { %v132_v7 = vsel %vm131_vm3, %v127_v16, -inf }
 0x12a   :  { %v394_v0 = vpop.f32.mrf.mxu2 }
 0x12b   :  { %v406_v36 = vand.u32 2147483647, %v394_v0 }
 0x12c   :  { %v118_v4 = vpop.f32.mrf.mxu0 }
 0x12d   :  { %v128_v13 = vand.u32 2147483647, %v118_v4  ;;  %v410_v33 = vsel %vm131_vm3, %v406_v36, -inf }
 0x12f   :  { %v133_v51 = vsel %vm131_vm3, %v128_v13, -inf }
 0x130   :  { %v136_v28 = vmax.f32 %v132_v7, %v133_v51 }
 0x132   :  { %v397_v6 = vpop.f32.mrf.mxu2 }
 0x133   :  { %v407_v41 = vand.u32 2147483647, %v397_v6 }
 0x134   :  { %v121_v2 = vpop.f32.mrf.mxu0 }
 0x135   :  { %v129_v24 = vand.u32 2147483647, %v121_v2  ;;  %v411_v32 = vsel %vm131_vm3, %v407_v41, -inf }
 0x136   :  { %v414_v8 = vmax.f32 %v410_v33, %v411_v32 }
 0x137   :  { %v134_v17 = vsel %vm131_vm3, %v129_v24, -inf }
 0x13a   :  { %v400_v12 = vpop.f32.mrf.mxu2 }
 0x13b   :  { %v408_v49 = vand.u32 2147483647, %v400_v12 }
 0x13c   :  { %v124_v35 = vpop.f32.mrf.mxu0 }
 0x13d   :  { %v130_v56 = vand.u32 2147483647, %v124_v35  ;;  %v412_v53 = vsel %vm131_vm3, %v408_v49, -inf }
 0x13f   :  { %v135_v18 = vsel %vm131_vm3, %v130_v56, -inf }
 0x140   :  { %v137_v59 = vmax.f32 %v134_v17, %v135_v18 }
 0x142   :  { %v403_v14 = vpop.f32.mrf.mxu2  ;;  %v138_v11 = vmax.f32 %v136_v28, %v137_v59 }
 0x143   :  { %v409_v3 = vand.u32 2147483647, %v403_v14 }
 0x144   :  { %v139_v19 = vrot.slane %v138_v11, 4 }
 0x145   :  { %v413_v54 = vsel %vm131_vm3, %v409_v3, -inf  ;;  %v255_v21 = vpop.f32.mrf.mxu1 }
 0x146   :  { %v415_v15 = vmax.f32 %v412_v53, %v413_v54  ;;  %v140_v22 = vmax.f32 %v138_v11, %v139_v19  ;;  %v267_v1 = vand.u32 2147483647, %v255_v21 }
 0x148   :  { %v416_v20 = vmax.f32 %v414_v8, %v415_v15  ;;  %v141_v29 = vrot.slane %v140_v22, 2  ;;  %v271_v13 = vsel %vm131_vm3, %v267_v1, -inf }
 0x14a   :  { %v417_v23 = vrot.slane %v416_v20, 4  ;;  %v533_v25 = vpop.f32.mrf.mxu3  ;;  %v950_v26 = vpop.f32.mrf.mxu2  ;;  %v142_v34 = vmax.f32 %v140_v22, %v141_v29 }
 0x14b   :  { %v545_v52 = vand.u32 2147483647, %v533_v25  ;;  %v962_v57 = vand.u32 2147483647, %v950_v26 }
 0x14c   :  { %v418_v30 = vmax.f32 %v416_v20, %v417_v23  ;;  %v143_v38 = vrot.slane %v142_v34, 1 }
 0x14d   :  { %v258_v40 = vpop.f32.mrf.mxu1  ;;  %v549_v16 = vsel %vm131_vm3, %v545_v52, -inf  ;;  %v966_v41 = vsel %vm131_vm3, %v962_v57, -inf }
 0x14e   :  { %v419_v37 = vrot.slane %v418_v30, 2  ;;  %v144_v42 = vmax.f32 %v142_v34, %v143_v38  ;;  %v268_v50 = vand.u32 2147483647, %v258_v40 }
 0x150   :  { %v420_v39 = vmax.f32 %v418_v30, %v419_v37  ;;  %1283 = vrcp.f32 %v144_v42  ;;  %v156_v63 = vand.u32 2147483647, %v144_v42  ;;  %v272_v0 = vsel %vm131_vm3, %v268_v50, -inf }
 0x151   :  { %v158_v12 = vand.u32 2147483648, %v144_v42  ;;  %vm152_vm4 = vweird.f32 %v144_v42  ;;  %v275_v49 = vmax.f32 %v271_v13, %v272_v0 }
 0x152   :  { %v421_v43 = vrot.slane %v420_v39, 1  ;;  %v536_v44 = vpop.f32.mrf.mxu3  ;;  %v953_v46 = vpop.f32.mrf.mxu2  ;;  %vm1656_vm5 = vcmp.eq.f32.partialorder %v156_v63, 8.507059e+37 }
 0x153   :  { %v546_v58 = vand.u32 2147483647, %v536_v44  ;;  %v963_v61 = vand.u32 2147483647, %v953_v46  ;;  %v159_v3 = vor.u32 1.1754944e-38, %v158_v12 }
 0x154   :  { %v422_v48 = vmax.f32 %v420_v39, %v421_v43 }
 0x155   :  { %v261_v60 = vpop.f32.mrf.mxu1  ;;  %v550_v24 = vsel %vm131_vm3, %v546_v58, -inf  ;;  %v967_v56 = vsel %vm131_vm3, %v963_v61, -inf }
 0x156   :  { %1285 = vrcp.f32 %v422_v48  ;;  %v1284_v10 = vpop.eup %1283  ;;  %v434_v51 = vand.u32 2147483647, %v422_v48  ;;  %v436_v32 = vand.u32 2147483648, %v422_v48  ;;  %v269_v17 = vand.u32 2147483647, %v261_v60 }
 0x157   :  { %v148_v2 = vmul.f32 %v1284_v10, %v144_v42  ;;  %vm153_vm6 = vweird.f32 %v1284_v10  ;;  %v553_v28 = vmax.f32 %v549_v16, %v550_v24  ;;  %vm430_vm7 = vweird.f32 %v422_v48 }
 0x158   :  { %v970_v33 = vmax.f32 %v966_v41, %v967_v56  ;;  %vm1660_vm8 = vcmp.eq.f32.partialorder %v434_v51, 8.507059e+37  ;;  %vm154_vm9 = vmor %vm152_vm4, %vm153_vm6  ;;  %v437_v21 = vor.u32 1.1754944e-38, %v436_v32  ;;  %v273_v22 = vsel %vm131_vm3, %v269_v17, -inf }
 0x159   :  { %v149_v35 = vsub.f32 1.0, %v148_v2 }
 0x15a   :  { %v539_v4 = vpop.f32.mrf.mxu3  ;;  %v956_v6 = vpop.f32.mrf.mxu2 }
 0x15b   :  { %v150_v18 = vmul.f32 %v1284_v10, %v149_v35  ;;  %v547_v53 = vand.u32 2147483647, %v539_v4  ;;  %v964_v15 = vand.u32 2147483647, %v956_v6 }
 0x15c   :  { %v1286_v36 = vpop.eup %1285 }
 0x15d   :  { %v426_v14 = vmul.f32 %v1286_v36, %v422_v48  ;;  %v264_v54 = vpop.f32.mrf.mxu1  ;;  %v151_v8 = vadd.f32 %v1284_v10, %v150_v18  ;;  %vm431_vm10 = vweird.f32 %v1286_v36  ;;  %v551_v39 = vsel %vm131_vm3, %v547_v53, -inf }
 0x15e   :  { %v270_v19 = vand.u32 2147483647, %v264_v54  ;;  %vm432_vm11 = vmor %vm430_vm7, %vm431_vm10  ;;  %v968_v44 = vsel %vm131_vm3, %v964_v15, -inf }
 0x15f   :  { %v427_v59 = vsub.f32 1.0, %v426_v14  ;;  %v155_v26 = vsel %vm154_vm9, %v1284_v10, %v151_v8 }
 0x160   :  { %v274_v29 = vsel %vm131_vm3, %v270_v19, -inf  ;;  %v160_v37 = vsel %vm1656_vm5, %v159_v3, %v155_v26 }
 0x161   :  { %v428_v20 = vmul.f32 %v1286_v36, %v427_v59  ;;  %v276_v40 = vmax.f32 %v273_v22, %v274_v29  ;;  %v161_v43 = vmul.f32 %v160_v37, %v1450_v9 }
 0x162   :  { %v542_v23 = vpop.f32.mrf.mxu3  ;;  %v959_v25 = vpop.f32.mrf.mxu2 }
 0x163   :  { %v548_v30 = vand.u32 2147483647, %v542_v23  ;;  %v965_v34 = vand.u32 2147483647, %v959_v25  ;;  %v429_v38 = vadd.f32 %v1286_v36, %v428_v20  ;;  %v277_v52 = vmax.f32 %v275_v49, %v276_v40  ;;  %163 = vst.msk [vmem:[%s1785_s1] sm:$0x3] %vm16_vm0, %v161_v43 }
 0x164   :  { %v672_v42 = vpop.f32.mrf.mxu0 }
 0x165   :  { %v552_v46 = vsel %vm131_vm3, %v548_v30, -inf  ;;  %v969_v50 = vsel %vm131_vm3, %v965_v34, -inf  ;;  %v433_v1 = vsel %vm432_vm11, %v1286_v36, %v429_v38  ;;  %v278_v60 = vrot.slane %v277_v52, 4  ;;  %v811_v63 = vpop.f32.mrf.mxu1 }
 0x166   :  { %v554_v57 = vmax.f32 %v551_v39, %v552_v46  ;;  %v971_v58 = vmax.f32 %v968_v44, %v969_v50  ;;  %v438_v9 = vsel %vm1660_vm8, %v437_v21, %v433_v1  ;;  %v684_v3 = vand.u32 2147483647, %v672_v42 }
 0x167   :  { %v439_v48 = vmul.f32 %v438_v9, %v1496_v47  ;;  %v279_v0 = vmax.f32 %v277_v52, %v278_v60  ;;  %v823_v54 = vand.u32 2147483647, %v811_v63 }
 0x168   :  { %v555_v61 = vmax.f32 %v553_v28, %v554_v57  ;;  %v972_v10 = vmax.f32 %v970_v33, %v971_v58  ;;  %v688_v21 = vsel %vm131_vm3, %v684_v3, -inf }
 0x169   :  { %1189 = vst.msk [vmem:[%s1785_s1 + $0x4] sm:$0x3] %vm16_vm0, %v439_v48  ;;  %v280_v12 = vrot.slane %v279_v0, 2  ;;  %v1704_v25 = vsel %vm131_vm3, %v823_v54, -inf }
 0x16a   :  { %v556_v4 = vrot.slane %v555_v61, 4  ;;  %v973_v6 = vrot.slane %v972_v10, 4  ;;  %v1089_v2 = vpop.f32.mrf.mxu3 }
 0x16b   :  { %v281_v24 = vmax.f32 %v279_v0, %v280_v12  ;;  %v1101_v8 = vand.u32 2147483647, %v1089_v2 }
 0x16c   :  { %v557_v13 = vmax.f32 %v555_v61, %v556_v4  ;;  %v974_v16 = vmax.f32 %v972_v10, %v973_v6  ;;  %v675_v41 = vpop.f32.mrf.mxu0 }
 0x16d   :  { %v282_v35 = vrot.slane %v281_v24, 1  ;;  %v814_v56 = vpop.f32.mrf.mxu1  ;;  %v685_v17 = vand.u32 2147483647, %v675_v41  ;;  %v1707_v26 = vsel %vm131_vm3, %v1101_v8, -inf }
 0x16e   :  { %v558_v36 = vrot.slane %v557_v13, 2  ;;  %v975_v47 = vrot.slane %v974_v16, 2  ;;  %v824_v28 = vand.u32 2147483647, %v814_v56 }
 0x16f   :  { %v1687_v7 = vmax.f32 %v281_v24, %v282_v35  ;;  %v689_v11 = vsel %vm131_vm3, %v685_v17, -inf }
 0x170   :  { %v559_v51 = vmax.f32 %v557_v13, %v558_v36  ;;  %v976_v49 = vmax.f32 %v974_v16, %v975_v47  ;;  %v1701_v22 = vsel %vm131_vm3, %v824_v28, -inf  ;;  %v692_v29 = vmax.f32 %v688_v21, %v689_v11 }
 0x171   :  { %1287 = vrcp.f32 %v1687_v7  ;;  %v295_v15 = vand.u32 2147483647, %v1687_v7  ;;  %v297_v20 = vand.u32 2147483648, %v1687_v7  ;;  %vm291_vm12 = vweird.f32 %v1687_v7 }
 0x172   :  { %v560_v14 = vrot.slane %v559_v51, 1  ;;  %v977_v32 = vrot.slane %v976_v49, 1  ;;  %v1092_v18 = vpop.f32.mrf.mxu3  ;;  %v831_v43 = vmax.f32 %v1704_v25, %v1701_v22 }
 0x173   :  { %v1102_v19 = vand.u32 2147483647, %v1092_v18  ;;  %vm1713_vm13 = vcmp.eq.f32.partialorder %v295_v15, 8.507059e+37  ;;  %v298_v46 = vor.u32 1.1754944e-38, %v297_v20 }
 0x174   :  { %v678_v59 = vpop.f32.mrf.mxu0  ;;  %v1690_v33 = vmax.f32 %v559_v51, %v560_v14  ;;  %v1692_v53 = vmax.f32 %v976_v49, %v977_v32 }
 0x175   :  { %v817_v23 = vpop.f32.mrf.mxu1  ;;  %v686_v38 = vand.u32 2147483647, %v678_v59  ;;  %v1720_v44 = vsel %vm131_vm3, %v1102_v19, -inf }
 0x176   :  { %1289 = vrcp.f32 %v1690_v33  ;;  %v573_v34 = vand.u32 2147483647, %v1690_v33  ;;  %v575_v37 = vand.u32 2147483648, %v1690_v33  ;;  %vm569_vm14 = vweird.f32 %v1690_v33 }
 0x177   :  { %1291 = vrcp.f32 %v1692_v53  ;;  %v1288_v30 = vpop.eup %1287  ;;  %v992_v50 = vand.u32 2147483648, %v1692_v53  ;;  %v825_v1 = vand.u32 2147483647, %v817_v23  ;;  %vm986_vm15 = vweird.f32 %v1692_v53 }
 0x178   :  { %v287_v40 = vmul.f32 %v1288_v30, %v1687_v7  ;;  %v990_v9 = vand.u32 2147483647, %v1692_v53  ;;  %vm1727_vm1 = vcmp.eq.f32.partialorder %v573_v34, 8.507059e+37  ;;  %v576_v63 = vor.u32 1.1754944e-38, %v575_v37 }
 0x179   :  { %v690_v0 = vsel %vm131_vm3, %v686_v38, -inf  ;;  %vm292_vm2 = vweird.f32 %v1288_v30  ;;  %v993_v13 = vor.u32 1.1754944e-38, %v992_v50  ;;  %v829_v16 = vsel %vm131_vm3, %v825_v1, -inf }
 0x17a   :  { %v1095_v39 = vpop.f32.mrf.mxu3  ;;  %v288_v58 = vsub.f32 1.0, %v287_v40  ;;  %vm293_vm4 = vmor %vm291_vm12, %vm292_vm2  ;;  %vm991_vm9 = vcmp.eq.f32.partialorder %v990_v9, 8.507059e+37  ;;  %v1109_v25 = vmax.f32 %v1707_v26, %v1720_v44 }
 0x17b   :  { %v1103_v35 = vand.u32 2147483647, %v1095_v39 }
 0x17c   :  { %v681_v52 = vpop.f32.mrf.mxu0  ;;  %v1290_v57 = vpop.eup %1289  ;;  %v289_v4 = vmul.f32 %v1288_v30, %v288_v58 }
 0x17d   :  { %v687_v48 = vand.u32 2147483647, %v681_v52  ;;  %v1292_v60 = vpop.eup %1291  ;;  %v565_v61 = vmul.f32 %v1290_v57, %v1690_v33  ;;  %v820_v24 = vpop.f32.mrf.mxu1  ;;  %vm570_vm5 = vweird.f32 %v1290_v57  ;;  %v1107_v15 = vsel %vm131_vm3, %v1103_v35, -inf }
 0x17e   :  { %v982_v6 = vmul.f32 %v1292_v60, %v1692_v53  ;;  %v290_v36 = vadd.f32 %v1288_v30, %v289_v4  ;;  %v826_v51 = vand.u32 2147483647, %v820_v24  ;;  %vm987_vm6 = vweird.f32 %v1292_v60  ;;  %vm571_vm7 = vmor %vm569_vm14, %vm570_vm5 }
 0x17f   :  { %v691_v2 = vsel %vm131_vm3, %v687_v48, -inf  ;;  %v566_v12 = vsub.f32 1.0, %v565_v61  ;;  %vm988_vm8 = vmor %vm986_vm15, %vm987_vm6 }
 0x180   :  { %v693_v41 = vmax.f32 %v690_v0, %v691_v2  ;;  %v983_v47 = vsub.f32 1.0, %v982_v6  ;;  %v294_v32 = vsel %vm293_vm4, %v1288_v30, %v290_v36  ;;  %v830_v18 = vsel %vm131_vm3, %v826_v51, -inf }
 0x181   :  { %v567_v49 = vmul.f32 %v1290_v57, %v566_v12  ;;  %v299_v28 = vsel %vm1713_vm13, %v298_v46, %v294_v32  ;;  %v832_v8 = vmax.f32 %v829_v16, %v830_v18 }
 0x182   :  { %v694_v56 = vmax.f32 %v692_v29, %v693_v41  ;;  %v1098_v14 = vpop.f32.mrf.mxu3  ;;  %v984_v17 = vmul.f32 %v1292_v60, %v983_v47  ;;  %v300_v11 = vmul.f32 %v299_v28, %v1480_v31 }
 0x183   :  { %v1104_v3 = vand.u32 2147483647, %v1098_v14  ;;  %v568_v59 = vadd.f32 %v1290_v57, %v567_v49  ;;  %v833_v22 = vmax.f32 %v831_v43, %v832_v8 }
 0x184   :  { %v695_v54 = vrot.slane %v694_v56, 4  ;;  %v985_v7 = vadd.f32 %v1292_v60, %v984_v17  ;;  %1177 = vst.msk [vmem:[%s1785_s1 + $0x2] sm:$0x3] %vm16_vm0, %v300_v11 }
 0x185   :  { %v1108_v19 = vsel %vm131_vm3, %v1104_v3, -inf  ;;  %v572_v20 = vsel %vm571_vm7, %v1290_v57, %v568_v59  ;;  %v834_v34 = vrot.slane %v833_v22, 4 }
 0x186   :  { %v696_v21 = vmax.f32 %v694_v56, %v695_v54  ;;  %v1110_v23 = vmax.f32 %v1107_v15, %v1108_v19  ;;  %v577_v31 = vsel %vm1727_vm1, %v576_v63, %v572_v20  ;;  %v989_v33 = vsel %vm988_vm8, %v1292_v60, %v985_v7 }
 0x187   :  { %v578_v29 = vmul.f32 %v577_v31, %v1522_v5  ;;  %v994_v53 = vsel %vm991_vm9, %v993_v13, %v989_v33  ;;  %v835_v40 = vmax.f32 %v833_v22, %v834_v34 }
 0x188   :  { %v697_v30 = vrot.slane %v696_v21, 2  ;;  %v995_v37 = vmul.f32 %v994_v53, %v1566_v55  ;;  %v1111_v38 = vmax.f32 %v1109_v25, %v1110_v23 }
 0x189   :  { %1201 = vst.msk [vmem:[%s1785_s1 + $0x6] sm:$0x3] %vm16_vm0, %v578_v29  ;;  %v836_v42 = vrot.slane %v835_v40, 2 }
 0x18a   :  { %v698_v39 = vmax.f32 %v696_v21, %v697_v30  ;;  %1237 = vst.msk [vmem:[%s1785_s1 + $0xc] sm:$0x3] %vm16_vm0, %v995_v37  ;;  %v1112_v26 = vrot.slane %v1111_v38, 4 }
 0x18b   :  { %v837_v46 = vmax.f32 %v835_v40, %v836_v42 }
 0x18c   :  { %v699_v5 = vrot.slane %v698_v39, 1  ;;  %v1113_v43 = vmax.f32 %v1111_v38, %v1112_v26 }
 0x18d   :  { %v838_v50 = vrot.slane %v837_v46, 1 }
 0x18e   :  { %v700_v44 = vmax.f32 %v698_v39, %v699_v5  ;;  %v1114_v55 = vrot.slane %v1113_v43, 2 }
 0x18f   :  { %v839_v52 = vmax.f32 %v837_v46, %v838_v50 }
 0x190   :  { %1293 = vrcp.f32 %v700_v44  ;;  %v1115_v1 = vmax.f32 %v1113_v43, %v1114_v55  ;;  %v714_v61 = vand.u32 2147483648, %v700_v44  ;;  %v712_v0 = vand.u32 2147483647, %v700_v44 }
 0x191   :  { %1295 = vrcp.f32 %v839_v52  ;;  %vm708_vm10 = vweird.f32 %v700_v44  ;;  %v853_v41 = vand.u32 2147483648, %v839_v52  ;;  %v851_v35 = vand.u32 2147483647, %v839_v52 }
 0x192   :  { %v1116_v57 = vrot.slane %v1115_v1, 1  ;;  %v715_v12 = vor.u32 1.1754944e-38, %v714_v61  ;;  %vm713_vm12 = vcmp.eq.f32.partialorder %v712_v0, 8.507059e+37  ;;  %vm847_vm14 = vweird.f32 %v839_v52 }
 0x193   :  { %v854_v32 = vor.u32 1.1754944e-38, %v853_v41  ;;  %vm852_vm2 = vcmp.eq.f32.partialorder %v851_v35, 8.507059e+37 }
 0x194   :  { %v1117_v9 = vmax.f32 %v1115_v1, %v1116_v57 }
 0x196   :  { %v1294_v58 = vpop.eup %1293  ;;  %1297 = vrcp.f32 %v1117_v9  ;;  %v1131_v14 = vand.u32 2147483648, %v1117_v9  ;;  %v1129_v18 = vand.u32 2147483647, %v1117_v9  ;;  %vm1125_vm4 = vweird.f32 %v1117_v9 }
 0x197   :  { %v704_v48 = vmul.f32 %v1294_v58, %v700_v44  ;;  %v1296_v10 = vpop.eup %1295  ;;  %vm709_vm3 = vweird.f32 %v1294_v58 }
 0x198   :  { %v843_v4 = vmul.f32 %v1296_v10, %v839_v52  ;;  %vm710_vm11 = vmor %vm708_vm10, %vm709_vm3  ;;  %vm848_vm13 = vweird.f32 %v1296_v10  ;;  %v1132_v54 = vor.u32 1.1754944e-38, %v1131_v14  ;;  %vm1130_vm6 = vcmp.eq.f32.partialorder %v1129_v18, 8.507059e+37 }
 0x199   :  { %v705_v60 = vsub.f32 1.0, %v704_v48  ;;  %vm849_vm15 = vmor %vm847_vm14, %vm848_vm13 }
 0x19a   :  { %v844_v13 = vsub.f32 1.0, %v843_v4 }
 0x19b   :  { %v706_v63 = vmul.f32 %v1294_v58, %v705_v60 }
 0x19c   :  { %v1298_v2 = vpop.eup %1297  ;;  %v845_v47 = vmul.f32 %v1296_v10, %v844_v13 }
 0x19d   :  { %v707_v6 = vadd.f32 %v1294_v58, %v706_v63  ;;  %v1121_v24 = vmul.f32 %v1298_v2, %v1117_v9  ;;  %vm1126_vm1 = vweird.f32 %v1298_v2 }
 0x19e   :  { %v846_v56 = vadd.f32 %v1296_v10, %v845_v47  ;;  %vm1127_vm5 = vmor %vm1125_vm4, %vm1126_vm1 }
 0x19f   :  { %v711_v16 = vsel %vm710_vm11, %v1294_v58, %v707_v6  ;;  %v1122_v49 = vsub.f32 1.0, %v1121_v24 }
 0x1a0   :  { %v716_v36 = vsel %vm713_vm12, %v715_v12, %v711_v16  ;;  %v850_v3 = vsel %vm849_vm15, %v1296_v10, %v846_v56 }
 0x1a1   :  { %v717_v51 = vmul.f32 %v716_v36, %v1546_v27  ;;  %v1123_v17 = vmul.f32 %v1298_v2, %v1122_v49  ;;  %v855_v28 = vsel %vm852_vm2, %v854_v32, %v850_v3 }
 0x1a2   :  { %v856_v27 = vmul.f32 %v855_v28, %v1560_v45 }
 0x1a3   :  { %1213 = vst.msk [vmem:[%s1785_s1 + $0x8] sm:$0x3] %vm16_vm0, %v717_v51  ;;  %v1124_v59 = vadd.f32 %v1298_v2, %v1123_v17 }
 0x1a4   :  { %1225 = vst.msk [vmem:[%s1785_s1 + $0xa] sm:$0x3] %vm16_vm0, %v856_v27 }
 0x1a5   :  { %v1128_v8 = vsel %vm1127_vm5, %v1298_v2, %v1124_v59 }
 0x1a6   :  { %v1133_v11 = vsel %vm1130_vm6, %v1132_v54, %v1128_v8 }
 0x1a7   :  { %v1134_v7 = vmul.f32 %v1133_v11, %v1575_v62 }
 0x1a9   :  { %1249 = vst.msk [vmem:[%s1785_s1 + $0xe] sm:$0x3] %vm16_vm0, %v1134_v7 }

// kernel: xlstm_forward.11
= control target key start
LH: loop header
LB: loop body
LE: loop exit
PB: predicated region body
PF: predicated region fallthrough
CT: control target
= control target key end

     0   :  { %s662_s0 = inlined_call_operand.vmem [shape: f32[16,32], index: 0, kind: input, shape index: {}]   ;;  %s663_s1 = inlined_call_operand.vmem [shape: f32[16,32], index: 1, kind: input, shape index: {}]   ;;  %s664_s2 = inlined_call_operand.vmem [shape: f32[1,32], index: 2, kind: input, shape index: {}]   ;;  %s665_s3 = inlined_call_operand.vmem [shape: f32[1,32], index: 3, kind: input, shape index: {}]   ;;  %s666_s4 = inlined_call_operand.vmem [shape: f32[32,4], index: 4, kind: input, shape index: {}]   ;;  %s667_s5 = inlined_call_operand.vmem [shape: f32[4,32], index: 5, kind: input, shape index: {}]   ;;  %s668_s6 = inlined_call_operand.vmem [shape: f32[32,42], index: 6, kind: input, shape index: {}]   ;;  %s669_s7 = inlined_call_operand.vmem [shape: f32[1,42], index: 7, kind: input, shape index: {}]   ;;  %s670_s8 = inlined_call_operand.vmem [shape: f32[32,42], index: 8, kind: input, shape index: {}]   ;;  %s671_s9 = inlined_call_operand.vmem [shape: f32[1,42], index: 9, kind: input, shape index: {}]   ;;  %s672_s10 = inlined_call_operand.vmem [shape: f32[42,32], index: 10, kind: input, shape index: {}]   ;;  %s673_s11 = inlined_call_operand.vmem [shape: f32[1,32], index: 11, kind: input, shape index: {}]   ;;  %s674_s12 = inlined_call_operand.hbm [shape: f32[16,32], index: 12, kind: output, shape index: {}]  }
   0x1   :  { %v47_v0 = vld [vmem:[%s666_s4 + $0x18] sm:$0xff]  ;;  %v46_v1 = vld [vmem:[%s666_s4 + $0x10] sm:$0xff]  ;;  %v45_v2 = vld [vmem:[%s666_s4 + $0x8] sm:$0xff] }
   0x2   :  { %78 = vmatpush.msra.mxu0 %v47_v0 }
   0x4   :  { %79 = vmatpush.msra.mxu0 %v46_v1 }
   0x5   :  { %17 = vsyncpa [#allocation3], 0  ;;  %v44_v3 = vld [vmem:[%s666_s4] sm:$0xff]  ;;  %vm53_vm0 = vcmask 261120   ;;  %v555_v5 = vld [vmem:[%s662_s0 + $0x8] sm:$0xff]  ;;  %vm138_vm1 = vcmask 1043456  }
   0x6   :  { %80 = vmatpush.msra.mxu0 %v45_v2  ;;  %v548_v4 = vld [vmem:[%s662_s0] sm:$0xff]  ;;  %v52_v7 = vmul.f32 %v555_v5, %v555_v5  ;;  %vm125_vm2 = vcmask 31744   ;;  %v188_v37 = vld [vmem:[%s668_s6 + $0x18] sm:$0xff]  ;;  %v187_v39 = vld [vmem:[%s668_s6 + $0x10] sm:$0xff]  ;;  %vm352_vm9 = vcmask 1041408   ;;  %s465_s26 = smov [#allocation2]  }
   0x7   :  { %v51_v6 = vmul.f32 %v548_v4, %v548_v4  ;;  %v48_v8 = vld [vmem:[%s667_s5] sm:$0xf]  ;;  %v225_v38 = vld [vmem:[%s670_s8 + $0x18] sm:$0xff]  ;;  %211 = vmatpush.msra.mxu2 %v188_v37  ;;  %v224_v40 = vld [vmem:[%s670_s8 + $0x10] sm:$0xff]  ;;  %s389_s27 = sshll.u32 %s465_s26, 4  ;;  %s391_s30 = sshll.u32 %s674_s12, 4  ;;  %s390_s27 = int_to_ptr.vmem [resolvable:$true] %s389_s27  ;;  %s392_s30 = int_to_ptr.hbm [resolvable:$true] %s391_s30 }
   0x8   :  { %81 = vmatpush.msra.mxu0 %v44_v3  ;;  %407 = vmatpush.msk.msra.mxu1 %vm138_vm1, %v48_v8  ;;  %v186_v41 = vld [vmem:[%s668_s6 + $0x8] sm:$0xff]  ;;  %v185_v43 = vld [vmem:[%s668_s6] sm:$0xff]  ;;  %s467_s6 = smov 8  }
   0x9   :  { %403 = vmatmul.msk.f32.vlgmr.msra.gmra.mxu0 %vm53_vm0, %v548_v4  ;;  %242 = vmatpush.msra.mxu3 %v225_v38  ;;  %v223_v42 = vld [vmem:[%s670_s8 + $0x8] sm:$0xff]  ;;  %v222_v44 = vld [vmem:[%s670_s8] sm:$0xff] }
   0xa   :  { %212 = vmatpush.msra.mxu2 %v187_v39  ;;  %v422_v48 = vld [vmem:[%s664_s2] ss:$0 sm:$0xff]  ;;  %v340_v8 = vld [vmem:[%s672_s10 + $0x28] sm:$0x3] }
   0xb   :  { %243 = vmatpush.msra.mxu3 %v224_v40  ;;  %v423_v51 = vld [vmem:[%s665_s3] ss:$0 sm:$0xff] }
   0xc   :  { %213 = vmatpush.msra.mxu2 %v186_v41  ;;  %v425_v59 = vld [vmem:[%s671_s9] ss:$0 sm:$0xff] }
   0xd   :  { %244 = vmatpush.msra.mxu3 %v223_v42 }
   0xe   :  { %214 = vmatpush.msra.mxu2 %v185_v43 }
   0xf   :  { %245 = vmatpush.msra.mxu3 %v222_v44 }
  0x10   :  { %416 = vmatpush.msk.msrb.mxu2 %vm352_vm9, %v340_v8 }
  0x11   :  { %404 = vmatmul.msk.f32.gmra.mxu0 %vm53_vm0, %v555_v5 }
  0x19   :  { %405 = vmatmul.msk.f32.gmra.mxu0 %vm53_vm0, %v51_v6 }
  0x21   :  { %406 = vmatmul.msk.f32.gmra.mxu0 %vm53_vm0, %v52_v7 }
  0x86   :  { %v83_v9 = vpop.f32.mrf.mxu0 }
  0x87   :  { %v95_v10 = vmul.f32 0.125, %v83_v9 }
  0x89   :  { %408 = vmatmul.msk.f32.vlgmr.msra.gmra.mxu1 %vm125_vm2, %v95_v10  ;;  %v99_v14 = vmul.f32 %v95_v10, %v95_v10 }
  0x8e   :  { %v86_v11 = vpop.f32.mrf.mxu0 }
  0x8f   :  { %v96_v12 = vmul.f32 0.125, %v86_v11  ;;  %v339_v11 = vld [vmem:[%s672_s10 + $0x20] sm:$0xff] }
  0x90   :  { %367 = vmatpush.msrb.mxu2 %v339_v11 }
  0x91   :  { %409 = vmatmul.msk.f32.gmra.mxu1 %vm125_vm2, %v96_v12  ;;  %v100_v19 = vmul.f32 %v96_v12, %v96_v12 }
  0x96   :  { %v89_v13 = vpop.f32.mrf.mxu0 }
  0x97   :  { %v97_v15 = vmul.f32 0.125, %v89_v13 }
  0x99   :  { %v101_v16 = vsub.f32 %v97_v15, %v99_v14  ;;  %v338_v14 = vld [vmem:[%s672_s10 + $0x18] sm:$0xff] }
  0x9a   :  { %368 = vmatpush.msrb.mxu2 %v338_v14 }
  0x9b   :  { %v103_v17 = vadd.f32 1e-05, %v101_v16 }
  0x9d   :  { %427 = vrsqrt.f32 %v103_v17  ;;  %vm111_vm4 = vweird.f32 %v103_v17 }
  0x9e   :  { %v92_v18 = vpop.f32.mrf.mxu0 }
  0x9f   :  { %v98_v20 = vmul.f32 0.125, %v92_v18 }
  0xa1   :  { %v102_v21 = vsub.f32 %v98_v20, %v100_v19  ;;  %v336_v20 = vld [vmem:[%s672_s10 + $0x8] sm:$0xff] }
  0xa3   :  { %v428_v22 = vpop.eup %427  ;;  %v104_v23 = vadd.f32 1e-05, %v102_v21 }
  0xa4   :  { %v106_v24 = vmul.f32 %v428_v22, %v103_v17  ;;  %vm112_vm3 = vweird.f32 %v428_v22  ;;  %v337_v17 = vld [vmem:[%s672_s10 + $0x10] sm:$0xff] }
  0xa5   :  { %429 = vrsqrt.f32 %v104_v23  ;;  %vm113_vm5 = vmor %vm111_vm4, %vm112_vm3  ;;  %vm121_vm7 = vweird.f32 %v104_v23  ;;  %369 = vmatpush.msrb.mxu2 %v337_v17  ;;  %vm345_vm4 = vcmask 343040  }
  0xa6   :  { %v107_v25 = vmul.f32 %v428_v22, %v106_v24 }
  0xa7   :  { %370 = vmatpush.msrb.mxu2 %v336_v20 }
  0xa8   :  { %v108_v26 = vmul.f32 0.5, %v107_v25 }
  0xaa   :  { %v109_v27 = vsub.f32 1.5, %v108_v26  ;;  %v335_v26 = vld [vmem:[%s672_s10] sm:$0xff] }
  0xab   :  { %v430_v28 = vpop.eup %429  ;;  %371 = vmatpush.msrb.mxu2 %v335_v26 }
  0xac   :  { %v116_v29 = vmul.f32 %v430_v28, %v104_v23  ;;  %v110_v30 = vmul.f32 %v428_v22, %v109_v27  ;;  %vm122_vm6 = vweird.f32 %v430_v28 }
  0xad   :  { %vm123_vm8 = vmor %vm121_vm7, %vm122_vm6 }
  0xae   :  { %v117_v31 = vmul.f32 %v430_v28, %v116_v29  ;;  %v114_v32 = vsel %vm113_vm5, %v428_v22, %v110_v30 }
  0xaf   :  { %410 = vmatmul.msk.f32.gmra.mxu1 %vm125_vm2, %v114_v32 }
  0xb0   :  { %v118_v33 = vmul.f32 0.5, %v117_v31 }
  0xb2   :  { %v119_v34 = vsub.f32 1.5, %v118_v33 }
  0xb4   :  { %v120_v35 = vmul.f32 %v430_v28, %v119_v34 }
  0xb6   :  { %v124_v36 = vsel %vm123_vm8, %v430_v28, %v120_v35 }
  0xb7   :  { %411 = vmatmul.msk.f32.gmra.mxu1 %vm125_vm2, %v124_v36 }
 0x106   :  { %v159_v45 = vpop.f32.mrf.mxu1 }
 0x107   :  { %v171_v47 = vsub.f32 %v548_v4, %v159_v45 }
 0x10e   :  { %v162_v46 = vpop.f32.mrf.mxu1 }
 0x10f   :  { %v172_v54 = vsub.f32 %v555_v5, %v162_v46 }
 0x12c   :  { %v165_v49 = vpop.f32.mrf.mxu1 }
 0x12d   :  { %v173_v50 = vmul.f32 %v171_v47, %v165_v49 }
 0x12f   :  { %v178_v52 = vmul.f32 %v422_v48, %v173_v50 }
 0x131   :  { %v183_v53 = vadd.f32 %v423_v51, %v178_v52 }
 0x133   :  { %412 = vmatmul.msk.f32.vlgmr.msra.gmra.mxu2 %vm53_vm0, %v183_v53  ;;  %414 = vmatmul.msk.f32.vlgmr.msra.gmra.mxu3 %vm53_vm0, %v183_v53 }
 0x134   :  { %v168_v55 = vpop.f32.mrf.mxu1 }
 0x135   :  { %v174_v56 = vmul.f32 %v172_v54, %v168_v55 }
 0x137   :  { %v179_v57 = vmul.f32 %v422_v48, %v174_v56 }
 0x139   :  { %v184_v58 = vadd.f32 %v423_v51, %v179_v57 }
 0x13b   :  { %413 = vmatmul.msk.f32.gmra.mxu2 %vm53_vm0, %v184_v58  ;;  %415 = vmatmul.msk.f32.gmra.mxu3 %vm53_vm0, %v184_v58 }
 0x1b6   :  { %v247_v60 = vpop.f32.mrf.mxu3 }
 0x1b7   :  { %v611_v61 = vadd.f32 %v425_v59, %v247_v60  ;;  %v424_v60 = vld [vmem:[%s669_s7] ss:$0 sm:$0xff] }
 0x1b9   :  { %v614_v62 = vmul.f32 0.70710677, %v611_v61 }
 0x1bb   :  { %v257_v63 = vand.u32 2147483647, %v614_v62  ;;  %vm323_vm3 = vcmp.ge.f32.partialorder %v614_v62, 0.0 }
 0x1bd   :  { %v259_v0 = vmul.f32 0.3275911, %v257_v63  ;;  %v311_v24 = vsub.f32 0.0, %v257_v63 }
 0x1be   :  { %v250_v1 = vpop.f32.mrf.mxu3 }
 0x1bf   :  { %v261_v2 = vadd.f32 1.0, %v259_v0  ;;  %v617_v3 = vadd.f32 %v425_v59, %v250_v1  ;;  %v313_v31 = vmul.f32 %v311_v24, %v257_v63  ;;  %v216_v63 = vpop.f32.mrf.mxu2 }
 0x1c0   :  { %v217_v8 = vadd.f32 %v424_v60, %v216_v63 }
 0x1c1   :  { %431 = vrcp.f32 %v261_v2  ;;  %v620_v4 = vmul.f32 0.70710677, %v617_v3  ;;  %v274_v13 = vand.u32 2147483648, %v261_v2  ;;  %v272_v16 = vand.u32 2147483647, %v261_v2 }
 0x1c2   :  { %vm268_vm11 = vweird.f32 %v261_v2  ;;  %v315_v38 = vmul.f32 1.442695, %v313_v31  ;;  %v254_v62 = vmul.f32 0.5, %v617_v3 }
 0x1c3   :  { %v258_v5 = vand.u32 2147483647, %v620_v4  ;;  %v275_v19 = vor.u32 1.1754944e-38, %v274_v13  ;;  %vm273_vm13 = vcmp.eq.f32.partialorder %v272_v16, 8.507059e+37  ;;  %vm324_vm5 = vcmp.ge.f32.partialorder %v620_v4, 0.0 }
 0x1c5   :  { %v260_v6 = vmul.f32 0.3275911, %v258_v5  ;;  %v312_v42 = vsub.f32 0.0, %v258_v5 }
 0x1c7   :  { %v432_v7 = vpop.eup %431  ;;  %v262_v10 = vadd.f32 1.0, %v260_v6  ;;  %v314_v47 = vmul.f32 %v312_v42, %v258_v5  ;;  %v219_v14 = vpop.f32.mrf.mxu2 }
 0x1c8   :  { %v264_v9 = vmul.f32 %v432_v7, %v261_v2  ;;  %vm269_vm10 = vweird.f32 %v432_v7  ;;  %v253_v2 = vmul.f32 0.5, %v611_v61  ;;  %v220_v17 = vadd.f32 %v424_v60, %v219_v14 }
 0x1c9   :  { %433 = vrcp.f32 %v262_v10  ;;  %vm270_vm12 = vmor %vm268_vm11, %vm269_vm10  ;;  %v289_v30 = vand.u32 2147483648, %v262_v10  ;;  %v287_v33 = vand.u32 2147483647, %v262_v10  ;;  %vm283_vm15 = vweird.f32 %v262_v10 }
 0x1ca   :  { %v265_v12 = vsub.f32 1.0, %v264_v9  ;;  %435 = vpow2.f32 %v315_v38  ;;  %v317_v52 = vmul.f32 1.442695, %v314_v47 }
 0x1cb   :  { %v290_v37 = vor.u32 1.1754944e-38, %v289_v30  ;;  %vm288_vm2 = vcmp.eq.f32.partialorder %v287_v33, 8.507059e+37 }
 0x1cc   :  { %v266_v15 = vmul.f32 %v432_v7, %v265_v12  ;;  %437 = vpow2.f32 %v317_v52 }
 0x1ce   :  { %v267_v18 = vadd.f32 %v432_v7, %v266_v15 }
 0x1cf   :  { %v434_v21 = vpop.eup %433 }
 0x1d0   :  { %v271_v22 = vsel %vm270_vm12, %v432_v7, %v267_v18  ;;  %v279_v25 = vmul.f32 %v434_v21, %v262_v10  ;;  %vm284_vm14 = vweird.f32 %v434_v21  ;;  %v436_v53 = vpop.eup %435 }
 0x1d1   :  { %v276_v23 = vsel %vm273_vm13, %v275_v19, %v271_v22  ;;  %vm285_vm1 = vmor %vm283_vm15, %vm284_vm14  ;;  %v426_v19 = vld [vmem:[%s673_s11] ss:$0 sm:$0xff]  ;;  %s466_s11 = smov 128  }
 0x1d2   :  { %v293_v27 = vmul.f32 1.0614054, %v276_v23  ;;  %v280_v28 = vsub.f32 1.0, %v279_v25  ;;  %v438_v7 = vpop.eup %437 }
 0x1d4   :  { %v295_v29 = vadd.f32 -1.4531521, %v293_v27  ;;  %v281_v32 = vmul.f32 %v434_v21, %v280_v28 }
 0x1d6   :  { %v297_v34 = vmul.f32 %v295_v29, %v276_v23  ;;  %v282_v35 = vadd.f32 %v434_v21, %v281_v32 }
 0x1d8   :  { %v299_v36 = vadd.f32 1.4214138, %v297_v34  ;;  %v286_v39 = vsel %vm285_vm1, %v434_v21, %v282_v35  ;;  %v379_v21 = vld [vmem:[%s663_s1] sm:$0xff] }
 0x1d9   :  { %v291_v41 = vsel %vm288_vm2, %v290_v37, %v286_v39 }
 0x1da   :  { %v301_v40 = vmul.f32 %v299_v36, %v276_v23  ;;  %v294_v43 = vmul.f32 1.0614054, %v291_v41 }
 0x1dc   :  { %v303_v44 = vadd.f32 -0.28449672, %v301_v40  ;;  %v296_v45 = vadd.f32 -1.4531521, %v294_v43 }
 0x1de   :  { %v305_v46 = vmul.f32 %v303_v44, %v276_v23  ;;  %v298_v48 = vmul.f32 %v296_v45, %v291_v41 }
 0x1e0   :  { %v307_v49 = vadd.f32 0.2548296, %v305_v46  ;;  %v300_v50 = vadd.f32 1.4214138, %v298_v48 }
 0x1e2   :  { %v309_v51 = vmul.f32 %v307_v49, %v276_v23  ;;  %v302_v54 = vmul.f32 %v300_v50, %v291_v41  ;;  %v380_v23 = vld [vmem:[%s663_s1 + $0x8] sm:$0xff] }
 0x1e4   :  { %v319_v55 = vmul.f32 %v436_v53, %v309_v51  ;;  %v304_v56 = vadd.f32 -0.28449672, %v302_v54 }
 0x1e6   :  { %v321_v57 = vsub.f32 1.0, %v319_v55  ;;  %v306_v58 = vmul.f32 %v304_v56, %v291_v41 }
 0x1e8   :  { %v325_v59 = vsub.f32 0.0, %v321_v57  ;;  %v308_v0 = vadd.f32 0.2548296, %v306_v58 }
 0x1ea   :  { %v327_v1 = vsel %vm323_vm3, %v321_v57, %v325_v59  ;;  %v310_v6 = vmul.f32 %v308_v0, %v291_v41 }
 0x1eb   :  { %v329_v5 = vadd.f32 1.0, %v327_v1 }
 0x1ec   :  { %v320_v10 = vmul.f32 %v438_v7, %v310_v6 }
 0x1ed   :  { %v331_v9 = vmul.f32 %v329_v5, %v253_v2 }
 0x1ee   :  { %v322_v12 = vsub.f32 1.0, %v320_v10 }
 0x1ef   :  { %v333_v11 = vmul.f32 %v331_v9, %v217_v8 }
 0x1f0   :  { %v326_v13 = vsub.f32 0.0, %v322_v12 }
 0x1f1   :  { %417 = vmatmul.msk.f32.vlgmr.msrb.gmra.mxu2 %vm345_vm4, %v333_v11 }
 0x1f2   :  { %v328_v15 = vsel %vm324_vm5, %v322_v12, %v326_v13 }
 0x1f3   :  { %v330_v16 = vadd.f32 1.0, %v328_v15 }
 0x1f5   :  { %v332_v61 = vmul.f32 %v330_v16, %v254_v62 }
 0x1f7   :  { %v334_v18 = vmul.f32 %v332_v61, %v220_v17 }
 0x1f9   :  { %418 = vmatmul.msk.f32.gmra.mxu2 %vm345_vm4, %v334_v18 }
 0x274   :  { %v373_v20 = vpop.f32.mrf.mxu2 }
 0x275   :  { %v374_v22 = vadd.f32 %v426_v19, %v373_v20 }
 0x277   :  { %v381_v4 = vadd.f32 %v379_v21, %v374_v22 }
 0x279   :  { %383 = vst.msk [vmem:[#allocation2] sm:$0xff] %vm53_vm0, %v381_v4 }
 0x27c   :  { %v376_v3 = vpop.f32.mrf.mxu2 }
 0x27d   :  { %v377_v24 = vadd.f32 %v426_v19, %v376_v3 }
 0x27f   :  { %v382_v25 = vadd.f32 %v380_v23, %v377_v24 }
 0x281   :  { %384 = vst.msk [vmem:[#allocation2 + $0x8] sm:$0xff] %vm53_vm0, %v382_v25 }
 0x282   :  { %397 = dma.vmem_to_hbm [thread:$0]  %s390_s27, 256, %s392_s30, [#allocation3], %s466_s11, %s466_s11, %s467_s6  }
 0x283   :  { %463 = dma.done.wait [#allocation3], 256  }
 0x284   :  { %464 = vsyncadd [#allocation3], 4294967040 }
 0x285   :  { %402 = vsyncpa [#allocation3], 1 }

// kernel: xlstm_forward.10
= control target key start
LH: loop header
LB: loop body
LE: loop exit
PB: predicated region body
PF: predicated region fallthrough
CT: control target
= control target key end

     0   :  { %13 = vsyncpa [#allocation3], 0  ;;  %s1136_s27 = smov [#allocation2]   ;;  %s1137_s29 = smov 128   ;;  %s1475_s0 = inlined_call_operand.vmem [shape: f32[8,2,128], index: 0, kind: input, shape index: {}]   ;;  %s1476_s1 = inlined_call_operand.hbm [shape: f32[32,128], index: 1, kind: input, shape index: {}]   ;;  %s1477_s2 = inlined_call_operand.vmem [shape: f32[1,128], index: 2, kind: input, shape index: {}]   ;;  %s1478_s3 = inlined_call_operand.vmem [shape: f32[8,2,32], index: 3, kind: output, shape index: {0}]   ;;  %s1479_s4 = inlined_call_operand.vmem [shape: f32[2,32], index: 4, kind: output, shape index: {1}]   ;;  %s1480_s5 = inlined_call_operand.vmem [shape: f32[2,32], index: 5, kind: output, shape index: {2}]   ;;  %s1481_s6 = inlined_call_operand.vmem [shape: f32[2,32], index: 6, kind: output, shape index: {3}]   ;;  %s1482_s7 = inlined_call_operand.vmem [shape: f32[2,32], index: 7, kind: output, shape index: {4}]  }
   0x1   :  { %s20_s26 = sshll.u32 %s1476_s1, 4  ;;  %s22_s28 = sshll.u32 %s1136_s27, 4  ;;  %s21_s26 = int_to_ptr.hbm [resolvable:$true] %s20_s26  ;;  %s23_s28 = int_to_ptr.vmem [resolvable:$true] %s22_s28 }
   0x2   :  { %s1138_s30 = smov 8  }
   0x3   :  { %28 = dma.hbm_to_vmem [thread:$0]  %s21_s26, 512, %s23_s28, [#allocation3], %s1137_s29, %s1137_s29, %s1138_s30  }
   0x4   :  { %1134 = dma.done.wait [#allocation3], 512  }
   0x5   :  { %1135 = vsyncadd [#allocation3], 4294966784  ;;  %vm39_vm0 = vcmask 254976   ;;  %v1139_v0 = vmov 0.0   ;;  %v47_v1 = vld [vmem:[#allocation2 + $0x18] sm:$0xff]  ;;  %v46_v2 = vld [vmem:[#allocation2 + $0x10] sm:$0xff] }
   0x6   :  { %40 = vst.msk [vmem:[%s1479_s4] sm:$0x3] %vm39_vm0, %v1139_v0  ;;  %70 = vmatpush.msra.mxu0 %v47_v1  ;;  %194 = vmatpush.msra.mxu1 %v47_v1  ;;  %v45_v3 = vld [vmem:[#allocation2 + $0x8] sm:$0xff]  ;;  %v44_v4 = vld [vmem:[#allocation2] sm:$0xff]  ;;  %vm54_vm1 = vcmask 261120   ;;  %s1140_s19 = smov 96  }
   0x7   :  { %41 = vst.msk [vmem:[%s1480_s5] sm:$0x3] %vm39_vm0, %v1139_v0  ;;  %303 = vmatpush.msra.mxu2 %v47_v1  ;;  %412 = vmatpush.msra.mxu3 %v47_v1  ;;  %v53_v8 = vld [vmem:[%s1475_s0] sm:$0x3]  ;;  %s1141_s26 = smov 32   ;;  %s1142_s29 = smov 64  }
   0x8   :  { %42 = vst.msk [vmem:[%s1481_s6] sm:$0x3] %vm39_vm0, %v1139_v0  ;;  %71 = vmatpush.msra.mxu0 %v46_v2  ;;  %195 = vmatpush.msra.mxu1 %v46_v2  ;;  %v1220_v9 = vld [vmem:[%s1477_s2] ss:$0 sm:$0xff] }
   0x9   :  { %43 = vst.msk [vmem:[%s1482_s7] sm:$0x3] %vm39_vm0, %v1139_v0  ;;  %304 = vmatpush.msra.mxu2 %v46_v2  ;;  %413 = vmatpush.msra.mxu3 %v46_v2  ;;  %v977_v0 = vld [vmem:[%s1475_s0 + $0x2] sm:$0x3] }
   0xa   :  { %72 = vmatpush.msra.mxu0 %v45_v3  ;;  %196 = vmatpush.msra.mxu1 %v45_v3 }
   0xb   :  { %305 = vmatpush.msra.mxu2 %v45_v3  ;;  %414 = vmatpush.msra.mxu3 %v45_v3 }
   0xc   :  { %73 = vmatpush.msra.mxu0 %v44_v4  ;;  %197 = vmatpush.msra.mxu1 %v44_v4 }
   0xd   :  { %v49_v6 = vld [vmem:[%s1479_s4] sm:$0x3]  ;;  %306 = vmatpush.msra.mxu2 %v44_v4  ;;  %415 = vmatpush.msra.mxu3 %v44_v4 }
   0xe   :  { %975 = vmatmul.msk.f32.vlgmr.msra.gmra.mxu0 %vm54_vm1, %v49_v6  ;;  %630 = vmatpush.msrb.mxu1 %v47_v1  ;;  %v50_v13 = vld [vmem:[%s1480_s5] sm:$0x3] }
   0xf   :  { %521 = vmatpush.msrb.mxu0 %v47_v1  ;;  %739 = vmatpush.msrb.mxu2 %v47_v1  ;;  %v51_v7 = vld [vmem:[%s1481_s6] sm:$0x3] }
  0x10   :  { %v52_v5 = vld [vmem:[%s1482_s7] sm:$0x3]  ;;  %848 = vmatpush.msrb.mxu3 %v47_v1  ;;  %631 = vmatpush.msrb.mxu1 %v46_v2 }
  0x11   :  { %104 = vrot.lane.b32.xlu0 %v52_v5, %s1140_s19  ;;  %522 = vmatpush.msrb.mxu0 %v46_v2 }
  0x12   :  { %740 = vmatpush.msrb.mxu2 %v46_v2  ;;  %849 = vmatpush.msrb.mxu3 %v46_v2 }
  0x13   :  { %523 = vmatpush.msrb.mxu0 %v45_v3  ;;  %632 = vmatpush.msrb.mxu1 %v45_v3 }
  0x14   :  { %741 = vmatpush.msrb.mxu2 %v45_v3  ;;  %850 = vmatpush.msrb.mxu3 %v45_v3 }
  0x15   :  { %524 = vmatpush.msrb.mxu0 %v44_v4  ;;  %633 = vmatpush.msrb.mxu1 %v44_v4 }
  0x16   :  { %742 = vmatpush.msrb.mxu2 %v44_v4  ;;  %851 = vmatpush.msrb.mxu3 %v44_v4 }
  0x17   :  { %139 = vrot.lane.b32.xlu2 %v51_v7, %s1140_s19 }
  0x71   :  { %v140_v27 = vpop.permute.xlu2 %139 }
  0x83   :  { %v105_v14 = vpop.permute.xlu0 %104 }
  0x8b   :  { %v75_v10 = vpop.f32.mrf.mxu0 }
  0x8c   :  { %v78_v11 = vadd.f32 %v75_v10, %v53_v8 }
  0x8e   :  { %v82_v12 = vadd.f32 %v1220_v9, %v78_v11 }
  0x90   :  { %109 = vrot.lane.b32.xlu0 %v82_v12, %s1141_s26  ;;  %v107_v15 = vadd.f32 %v105_v14, %v82_v12  ;;  %1013 = vtanh.f32 %v82_v12  ;;  %v976_v36 = vmul.f32 -1.442695, %v82_v12 }
  0x96   :  { %v1014_v18 = vpop.eup %1013 }
  0x98   :  { %124 = vrot.lane.b32.xlu0 %v50_v13, %s1140_s19 }
 0x102   :  { %v110_v16 = vpop.permute.xlu0 %109 }
 0x103   :  { %v1228_v17 = vmax.f32 %v107_v15, %v110_v16 }
 0x105   :  { %114 = vrot.lane.b32.xlu1 %v1228_v17, %s1140_s19  ;;  %v120_v25 = vsub.f32 %v107_v15, %v1228_v17 }
 0x107   :  { %v121_v26 = vmul.f32 1.442695, %v120_v25 }
 0x10a   :  { %v125_v32 = vpop.permute.xlu0 %124 }
 0x10d   :  { %129 = vrot.lane.b32.xlu1 %v1014_v18, %s1142_s29 }
 0x177   :  { %v115_v19 = vpop.permute.xlu1 %114 }
 0x178   :  { %v117_v20 = vsub.f32 %v82_v12, %v115_v19 }
 0x17a   :  { %v118_v21 = vmul.f32 1.442695, %v117_v20 }
 0x17c   :  { %1015 = vpow2.f32 %v118_v21 }
 0x17d   :  { %1017 = vpow2.f32 %v121_v26 }
 0x17e   :  { %1019 = vpow2.f32 %v976_v36 }
 0x17f   :  { %v130_v23 = vpop.permute.xlu1 %129 }
 0x182   :  { %v1016_v22 = vpop.eup %1015 }
 0x183   :  { %v132_v24 = vmul.f32 %v1016_v22, %v130_v23  ;;  %144 = vrot.lane.b32.xlu2 %v1016_v22, %s1141_s26  ;;  %v1018_v28 = vpop.eup %1017 }
 0x184   :  { %v142_v29 = vmul.f32 %v1018_v28, %v140_v27  ;;  %v127_v33 = vmul.f32 %v1018_v28, %v125_v32  ;;  %v1020_v37 = vpop.eup %1019 }
 0x185   :  { %134 = vrot.lane.b32.xlu1 %v132_v24, %s1141_s26  ;;  %v87_v38 = vadd.f32 1.0, %v1020_v37 }
 0x187   :  { %1021 = vrcp.f32 %v87_v38  ;;  %v99_v49 = vand.u32 2147483648, %v87_v38  ;;  %vm93_vm3 = vweird.f32 %v87_v38  ;;  %v97_v50 = vand.u32 2147483647, %v87_v38 }
 0x189   :  { %v100_v55 = vor.u32 1.1754944e-38, %v99_v49  ;;  %vm98_vm8 = vcmp.eq.f32.partialorder %v97_v50, 8.507059e+37 }
 0x18d   :  { %v1022_v40 = vpop.eup %1021 }
 0x18e   :  { %v89_v42 = vmul.f32 %v1022_v40, %v87_v38  ;;  %vm94_vm2 = vweird.f32 %v1022_v40 }
 0x18f   :  { %vm95_vm5 = vmor %vm93_vm3, %vm94_vm2 }
 0x190   :  { %v90_v44 = vsub.f32 1.0, %v89_v42 }
 0x192   :  { %v91_v46 = vmul.f32 %v1022_v40, %v90_v44 }
 0x194   :  { %v92_v48 = vadd.f32 %v1022_v40, %v91_v46 }
 0x196   :  { %v96_v53 = vsel %vm95_vm5, %v1022_v40, %v92_v48 }
 0x197   :  { %v101_v57 = vsel %vm98_vm8, %v100_v55, %v96_v53 }
 0x1dd   :  { %v145_v30 = vpop.permute.xlu2 %144 }
 0x1de   :  { %v1236_v31 = vadd.f32 %v145_v30, %v142_v29 }
 0x1e0   :  { %154 = vrot.lane.b32.xlu2 %v1236_v31, %s1142_s29 }
 0x1f7   :  { %v135_v34 = vpop.permute.xlu1 %134 }
 0x1f8   :  { %v1240_v35 = vadd.f32 %v135_v34, %v127_v33 }
 0x1fa   :  { %149 = vrot.lane.b32.xlu0 %v1240_v35, %s1142_s29 }
 0x23a   :  { %v155_v39 = vpop.permute.xlu2 %154 }
 0x23b   :  { %1023 = vrcp.f32 %v155_v39  ;;  %v168_v52 = vand.u32 2147483648, %v155_v39  ;;  %vm162_vm6 = vweird.f32 %v155_v39  ;;  %v166_v54 = vand.u32 2147483647, %v155_v39 }
 0x23d   :  { %v169_v58 = vor.u32 1.1754944e-38, %v168_v52  ;;  %vm167_vm9 = vcmp.eq.f32.partialorder %v166_v54, 8.507059e+37  ;;  %v981_v52 = vld [vmem:[%s1475_s0 + $0x4] sm:$0x3] }
 0x241   :  { %v1024_v41 = vpop.eup %1023 }
 0x242   :  { %v158_v43 = vmul.f32 %v1024_v41, %v155_v39  ;;  %vm163_vm4 = vweird.f32 %v1024_v41 }
 0x243   :  { %vm164_vm7 = vmor %vm162_vm6, %vm163_vm4 }
 0x244   :  { %v159_v45 = vsub.f32 1.0, %v158_v43 }
 0x246   :  { %v160_v47 = vmul.f32 %v1024_v41, %v159_v45 }
 0x248   :  { %v161_v51 = vadd.f32 %v1024_v41, %v160_v47 }
 0x24a   :  { %v165_v56 = vsel %vm164_vm7, %v1024_v41, %v161_v51 }
 0x24b   :  { %v170_v61 = vsel %vm167_vm9, %v169_v58, %v165_v56 }
 0x26c   :  { %v150_v59 = vpop.permute.xlu0 %149 }
 0x26d   :  { %v152_v60 = vmul.f32 %v150_v59, %v101_v57 }
 0x26f   :  { %v171_v62 = vmul.f32 %v170_v61, %v152_v60 }
 0x271   :  { %173 = vrot.lane.b32.xlu1 %v171_v62, %s1140_s19 }
 0x2e3   :  { %v174_v63 = vpop.permute.xlu1 %173 }
 0x2e4   :  { %177 = vst.msk [vmem:[%s1478_s3] sm:$0x3] %vm39_vm0, %v174_v63  ;;  %978 = vmatmul.msk.f32.vlgmr.msra.gmra.mxu1 %vm54_vm1, %v174_v63 }
 0x361   :  { %v199_v1 = vpop.f32.mrf.mxu1 }
 0x362   :  { %v202_v2 = vadd.f32 %v977_v0, %v199_v1 }
 0x364   :  { %v203_v3 = vadd.f32 %v1220_v9, %v202_v2 }
 0x366   :  { %1025 = vtanh.f32 %v203_v3  ;;  %226 = vrot.lane.b32.xlu2 %v203_v3, %s1141_s26  ;;  %v224_v5 = vadd.f32 %v203_v3, %v1228_v17  ;;  %v979_v24 = vmul.f32 -1.442695, %v203_v3 }
 0x36c   :  { %v1026_v4 = vpop.eup %1025 }
 0x36d   :  { %242 = vrot.lane.b32.xlu1 %v1026_v4, %s1142_s29 }
 0x3c0   :  { %v227_v6 = vpop.permute.xlu2 %226 }
 0x3c1   :  { %v1257_v7 = vmax.f32 %v224_v5, %v227_v6 }
 0x3c3   :  { %231 = vrot.lane.b32.xlu0 %v1257_v7, %s1140_s19  ;;  %v237_v15 = vsub.f32 %v224_v5, %v1257_v7 }
 0x3c5   :  { %v238_v16 = vmul.f32 1.442695, %v237_v15 }
 0x3df   :  { %v243_v13 = vpop.permute.xlu1 %242 }
 0x435   :  { %v232_v8 = vpop.permute.xlu0 %231 }
 0x436   :  { %v234_v10 = vsub.f32 %v203_v3, %v232_v8 }
 0x438   :  { %v235_v11 = vmul.f32 1.442695, %v234_v10 }
 0x43a   :  { %1027 = vpow2.f32 %v235_v11 }
 0x43b   :  { %1029 = vpow2.f32 %v238_v16 }
 0x43c   :  { %1031 = vpow2.f32 %v979_v24 }
 0x440   :  { %v1028_v12 = vpop.eup %1027 }
 0x441   :  { %253 = vrot.lane.b32.xlu2 %v1028_v12, %s1141_s26  ;;  %v245_v14 = vmul.f32 %v1028_v12, %v243_v13  ;;  %v1030_v17 = vpop.eup %1029 }
 0x442   :  { %v251_v18 = vmul.f32 %v1030_v17, %v1236_v31  ;;  %v240_v21 = vmul.f32 %v1030_v17, %v1240_v35  ;;  %v1032_v25 = vpop.eup %1031 }
 0x443   :  { %247 = vrot.lane.b32.xlu0 %v245_v14, %s1141_s26  ;;  %v208_v26 = vadd.f32 1.0, %v1032_v25 }
 0x445   :  { %1033 = vrcp.f32 %v208_v26  ;;  %v220_v35 = vand.u32 2147483648, %v208_v26  ;;  %vm214_vm11 = vweird.f32 %v208_v26  ;;  %v218_v37 = vand.u32 2147483647, %v208_v26 }
 0x447   :  { %v221_v42 = vor.u32 1.1754944e-38, %v220_v35  ;;  %vm219_vm15 = vcmp.eq.f32.partialorder %v218_v37, 8.507059e+37 }
 0x44b   :  { %v1034_v27 = vpop.eup %1033 }
 0x44c   :  { %v210_v28 = vmul.f32 %v1034_v27, %v208_v26  ;;  %vm215_vm10 = vweird.f32 %v1034_v27 }
 0x44d   :  { %vm216_vm12 = vmor %vm214_vm11, %vm215_vm10 }
 0x44e   :  { %v211_v30 = vsub.f32 1.0, %v210_v28 }
 0x450   :  { %v212_v31 = vmul.f32 %v1034_v27, %v211_v30 }
 0x452   :  { %v213_v34 = vadd.f32 %v1034_v27, %v212_v31 }
 0x454   :  { %v217_v40 = vsel %vm216_vm12, %v1034_v27, %v213_v34 }
 0x455   :  { %v222_v45 = vsel %vm219_vm15, %v221_v42, %v217_v40  ;;  %v985_v40 = vld [vmem:[%s1475_s0 + $0x6] sm:$0x3] }
 0x49b   :  { %v254_v19 = vpop.permute.xlu2 %253 }
 0x49c   :  { %v1265_v20 = vadd.f32 %v254_v19, %v251_v18 }
 0x49e   :  { %263 = vrot.lane.b32.xlu1 %v1265_v20, %s1142_s29 }
 0x4b5   :  { %v248_v22 = vpop.permute.xlu0 %247 }
 0x4b6   :  { %v1270_v23 = vadd.f32 %v248_v22, %v240_v21 }
 0x4b8   :  { %258 = vrot.lane.b32.xlu2 %v1270_v23, %s1142_s29 }
 0x510   :  { %v264_v29 = vpop.permute.xlu1 %263 }
 0x511   :  { %1035 = vrcp.f32 %v264_v29  ;;  %v277_v38 = vand.u32 2147483648, %v264_v29  ;;  %v275_v41 = vand.u32 2147483647, %v264_v29  ;;  %vm271_vm14 = vweird.f32 %v264_v29 }
 0x512   :  { %v259_v43 = vpop.permute.xlu2 %258 }
 0x513   :  { %v278_v46 = vor.u32 1.1754944e-38, %v277_v38  ;;  %v261_v47 = vmul.f32 %v259_v43, %v222_v45  ;;  %vm276_vm3 = vcmp.eq.f32.partialorder %v275_v41, 8.507059e+37 }
 0x517   :  { %v1036_v32 = vpop.eup %1035 }
 0x518   :  { %v267_v33 = vmul.f32 %v1036_v32, %v264_v29  ;;  %vm272_vm13 = vweird.f32 %v1036_v32 }
 0x519   :  { %vm273_vm2 = vmor %vm271_vm14, %vm272_vm13 }
 0x51a   :  { %v268_v36 = vsub.f32 1.0, %v267_v33 }
 0x51c   :  { %v269_v39 = vmul.f32 %v1036_v32, %v268_v36 }
 0x51e   :  { %v270_v44 = vadd.f32 %v1036_v32, %v269_v39 }
 0x520   :  { %v274_v48 = vsel %vm273_vm2, %v1036_v32, %v270_v44 }
 0x521   :  { %v279_v49 = vsel %vm276_vm3, %v278_v46, %v274_v48 }
 0x522   :  { %v280_v50 = vmul.f32 %v279_v49, %v261_v47 }
 0x524   :  { %282 = vrot.lane.b32.xlu0 %v280_v50, %s1140_s19 }
 0x596   :  { %v283_v51 = vpop.permute.xlu0 %282 }
 0x597   :  { %980 = vst.msk [vmem:[%s1478_s3 + $0x2] sm:$0x3] %vm39_vm0, %v283_v51  ;;  %982 = vmatmul.msk.f32.vlgmr.msra.gmra.mxu2 %vm54_vm1, %v283_v51 }
 0x61a   :  { %v308_v53 = vpop.f32.mrf.mxu2 }
 0x61b   :  { %v311_v54 = vadd.f32 %v981_v52, %v308_v53 }
 0x61d   :  { %v312_v55 = vadd.f32 %v1220_v9, %v311_v54 }
 0x61f   :  { %1037 = vtanh.f32 %v312_v55  ;;  %335 = vrot.lane.b32.xlu1 %v312_v55, %s1141_s26  ;;  %v333_v57 = vadd.f32 %v312_v55, %v1257_v7  ;;  %v983_v12 = vmul.f32 -1.442695, %v312_v55 }
 0x625   :  { %v1038_v56 = vpop.eup %1037 }
 0x626   :  { %351 = vrot.lane.b32.xlu0 %v1038_v56, %s1142_s29 }
 0x691   :  { %v336_v58 = vpop.permute.xlu1 %335 }
 0x692   :  { %v1287_v59 = vmax.f32 %v333_v57, %v336_v58 }
 0x694   :  { %340 = vrot.lane.b32.xlu2 %v1287_v59, %s1140_s19  ;;  %v346_v2 = vsub.f32 %v333_v57, %v1287_v59 }
 0x696   :  { %v347_v3 = vmul.f32 1.442695, %v346_v2 }
 0x698   :  { %v352_v0 = vpop.permute.xlu0 %351 }
 0x6ee   :  { %v341_v60 = vpop.permute.xlu2 %340 }
 0x6ef   :  { %v343_v61 = vsub.f32 %v312_v55, %v341_v60 }
 0x6f1   :  { %v344_v62 = vmul.f32 1.442695, %v343_v61 }
 0x6f3   :  { %1039 = vpow2.f32 %v344_v62 }
 0x6f4   :  { %1041 = vpow2.f32 %v347_v3 }
 0x6f5   :  { %1043 = vpow2.f32 %v983_v12 }
 0x6f9   :  { %v1040_v63 = vpop.eup %1039 }
 0x6fa   :  { %362 = vrot.lane.b32.xlu1 %v1040_v63, %s1141_s26  ;;  %v354_v1 = vmul.f32 %v1040_v63, %v352_v0  ;;  %v1042_v4 = vpop.eup %1041 }
 0x6fb   :  { %v349_v5 = vmul.f32 %v1042_v4, %v1270_v23  ;;  %v360_v8 = vmul.f32 %v1042_v4, %v1265_v20  ;;  %v1044_v13 = vpop.eup %1043 }
 0x6fc   :  { %356 = vrot.lane.b32.xlu2 %v354_v1, %s1141_s26  ;;  %v317_v14 = vadd.f32 1.0, %v1044_v13 }
 0x6fe   :  { %1045 = vrcp.f32 %v317_v14  ;;  %v329_v23 = vand.u32 2147483648, %v317_v14  ;;  %vm323_vm5 = vweird.f32 %v317_v14  ;;  %v327_v24 = vand.u32 2147483647, %v317_v14 }
 0x700   :  { %v330_v30 = vor.u32 1.1754944e-38, %v329_v23  ;;  %vm328_vm8 = vcmp.eq.f32.partialorder %v327_v24, 8.507059e+37 }
 0x704   :  { %v1046_v15 = vpop.eup %1045 }
 0x705   :  { %v319_v16 = vmul.f32 %v1046_v15, %v317_v14  ;;  %vm324_vm4 = vweird.f32 %v1046_v15 }
 0x706   :  { %vm325_vm6 = vmor %vm323_vm5, %vm324_vm4 }
 0x707   :  { %v320_v17 = vsub.f32 1.0, %v319_v16 }
 0x709   :  { %v321_v19 = vmul.f32 %v1046_v15, %v320_v17 }
 0x70b   :  { %v322_v22 = vadd.f32 %v1046_v15, %v321_v19 }
 0x70d   :  { %v326_v27 = vsel %vm325_vm6, %v1046_v15, %v322_v22 }
 0x70e   :  { %v331_v33 = vsel %vm328_vm8, %v330_v30, %v326_v27 }
 0x756   :  { %v357_v6 = vpop.permute.xlu2 %356 }
 0x757   :  { %v1295_v7 = vadd.f32 %v357_v6, %v349_v5 }
 0x759   :  { %367 = vrot.lane.b32.xlu1 %v1295_v7, %s1142_s29 }
 0x76c   :  { %v363_v10 = vpop.permute.xlu1 %362 }
 0x76d   :  { %v1300_v11 = vadd.f32 %v363_v10, %v360_v8 }
 0x76f   :  { %372 = vrot.lane.b32.xlu0 %v1300_v11, %s1142_s29 }
 0x7cb   :  { %v368_v31 = vpop.permute.xlu1 %367 }
 0x7cc   :  { %v370_v35 = vmul.f32 %v368_v31, %v331_v33 }
 0x7e1   :  { %v373_v18 = vpop.permute.xlu0 %372 }
 0x7e2   :  { %1047 = vrcp.f32 %v373_v18  ;;  %v386_v26 = vand.u32 2147483648, %v373_v18  ;;  %v384_v29 = vand.u32 2147483647, %v373_v18  ;;  %vm380_vm9 = vweird.f32 %v373_v18 }
 0x7e4   :  { %v387_v34 = vor.u32 1.1754944e-38, %v386_v26  ;;  %vm385_vm11 = vcmp.eq.f32.partialorder %v384_v29, 8.507059e+37 }
 0x7e8   :  { %v1048_v21 = vpop.eup %1047 }
 0x7e9   :  { %v376_v20 = vmul.f32 %v1048_v21, %v373_v18  ;;  %vm381_vm7 = vweird.f32 %v1048_v21 }
 0x7ea   :  { %vm382_vm10 = vmor %vm380_vm9, %vm381_vm7 }
 0x7eb   :  { %v377_v25 = vsub.f32 1.0, %v376_v20 }
 0x7ed   :  { %v378_v28 = vmul.f32 %v1048_v21, %v377_v25 }
 0x7ef   :  { %v379_v32 = vadd.f32 %v1048_v21, %v378_v28  ;;  %v989_v28 = vld [vmem:[%s1475_s0 + $0x8] sm:$0x3] }
 0x7f1   :  { %v383_v36 = vsel %vm382_vm10, %v1048_v21, %v379_v32 }
 0x7f2   :  { %v388_v37 = vsel %vm385_vm11, %v387_v34, %v383_v36 }
 0x7f3   :  { %v389_v38 = vmul.f32 %v388_v37, %v370_v35 }
 0x7f5   :  { %391 = vrot.lane.b32.xlu2 %v389_v38, %s1140_s19 }
 0x84f   :  { %v392_v39 = vpop.permute.xlu2 %391 }
 0x850   :  { %984 = vst.msk [vmem:[%s1478_s3 + $0x4] sm:$0x3] %vm39_vm0, %v392_v39  ;;  %986 = vmatmul.msk.f32.vlgmr.msra.gmra.mxu3 %vm54_vm1, %v392_v39 }
 0x8d3   :  { %v417_v41 = vpop.f32.mrf.mxu3 }
 0x8d4   :  { %v420_v42 = vadd.f32 %v985_v40, %v417_v41 }
 0x8d6   :  { %v421_v43 = vadd.f32 %v1220_v9, %v420_v42 }
 0x8d8   :  { %1049 = vtanh.f32 %v421_v43  ;;  %444 = vrot.lane.b32.xlu0 %v421_v43, %s1141_s26  ;;  %v442_v45 = vadd.f32 %v421_v43, %v1287_v59  ;;  %v987_v63 = vmul.f32 -1.442695, %v421_v43 }
 0x8de   :  { %v1050_v44 = vpop.eup %1049 }
 0x8df   :  { %460 = vrot.lane.b32.xlu2 %v1050_v44, %s1142_s29 }
 0x939   :  { %v461_v52 = vpop.permute.xlu2 %460 }
 0x94a   :  { %v445_v46 = vpop.permute.xlu0 %444 }
 0x94b   :  { %v1317_v47 = vmax.f32 %v442_v45, %v445_v46 }
 0x94d   :  { %449 = vrot.lane.b32.xlu1 %v1317_v47, %s1140_s19  ;;  %v455_v54 = vsub.f32 %v442_v45, %v1317_v47 }
 0x94f   :  { %v456_v55 = vmul.f32 1.442695, %v455_v54 }
 0x9bf   :  { %v450_v48 = vpop.permute.xlu1 %449 }
 0x9c0   :  { %v452_v49 = vsub.f32 %v421_v43, %v450_v48 }
 0x9c2   :  { %v453_v50 = vmul.f32 1.442695, %v452_v49 }
 0x9c4   :  { %1051 = vpow2.f32 %v453_v50 }
 0x9c5   :  { %1053 = vpow2.f32 %v456_v55 }
 0x9c6   :  { %1055 = vpow2.f32 %v987_v63 }
 0x9ca   :  { %v1052_v51 = vpop.eup %1051 }
 0x9cb   :  { %471 = vrot.lane.b32.xlu0 %v1052_v51, %s1141_s26  ;;  %v463_v53 = vmul.f32 %v1052_v51, %v461_v52  ;;  %v1054_v56 = vpop.eup %1053 }
 0x9cc   :  { %v469_v57 = vmul.f32 %v1054_v56, %v1300_v11  ;;  %v458_v60 = vmul.f32 %v1054_v56, %v1295_v7  ;;  %v1056_v0 = vpop.eup %1055 }
 0x9cd   :  { %465 = vrot.lane.b32.xlu1 %v463_v53, %s1141_s26  ;;  %v426_v1 = vadd.f32 1.0, %v1056_v0 }
 0x9cf   :  { %1057 = vrcp.f32 %v426_v1  ;;  %v438_v13 = vand.u32 2147483648, %v426_v1  ;;  %vm432_vm13 = vweird.f32 %v426_v1  ;;  %v436_v14 = vand.u32 2147483647, %v426_v1 }
 0x9d1   :  { %v439_v19 = vor.u32 1.1754944e-38, %v438_v13  ;;  %vm437_vm4 = vcmp.eq.f32.partialorder %v436_v14, 8.507059e+37 }
 0x9d5   :  { %v1058_v3 = vpop.eup %1057 }
 0x9d6   :  { %v428_v5 = vmul.f32 %v1058_v3, %v426_v1  ;;  %vm433_vm12 = vweird.f32 %v1058_v3 }
 0x9d7   :  { %vm434_vm15 = vmor %vm432_vm13, %vm433_vm12 }
 0x9d8   :  { %v429_v7 = vsub.f32 1.0, %v428_v5 }
 0x9da   :  { %v430_v10 = vmul.f32 %v1058_v3, %v429_v7 }
 0x9dc   :  { %v431_v12 = vadd.f32 %v1058_v3, %v430_v10 }
 0x9de   :  { %v435_v17 = vsel %vm434_vm15, %v1058_v3, %v431_v12 }
 0x9df   :  { %v440_v22 = vsel %vm437_vm4, %v439_v19, %v435_v17 }
 0xa3d   :  { %v472_v58 = vpop.permute.xlu0 %471 }
 0xa3e   :  { %v1325_v59 = vadd.f32 %v472_v58, %v469_v57 }
 0xa3f   :  { %v466_v61 = vpop.permute.xlu1 %465 }
 0xa40   :  { %v1328_v62 = vadd.f32 %v466_v61, %v458_v60  ;;  %481 = vrot.lane.b32.xlu2 %v1325_v59, %s1142_s29 }
 0xa42   :  { %476 = vrot.lane.b32.xlu0 %v1328_v62, %s1142_s29 }
 0xa9a   :  { %v482_v2 = vpop.permute.xlu2 %481 }
 0xa9b   :  { %1059 = vrcp.f32 %v482_v2  ;;  %v495_v16 = vand.u32 2147483648, %v482_v2  ;;  %vm489_vm2 = vweird.f32 %v482_v2  ;;  %v493_v18 = vand.u32 2147483647, %v482_v2 }
 0xa9d   :  { %v496_v23 = vor.u32 1.1754944e-38, %v495_v16  ;;  %vm494_vm5 = vcmp.eq.f32.partialorder %v493_v18, 8.507059e+37  ;;  %v993_v16 = vld [vmem:[%s1475_s0 + $0xa] sm:$0x3] }
 0xaa1   :  { %v1060_v4 = vpop.eup %1059 }
 0xaa2   :  { %v485_v6 = vmul.f32 %v1060_v4, %v482_v2  ;;  %vm490_vm14 = vweird.f32 %v1060_v4 }
 0xaa3   :  { %vm491_vm3 = vmor %vm489_vm2, %vm490_vm14 }
 0xaa4   :  { %v486_v8 = vsub.f32 1.0, %v485_v6 }
 0xaa6   :  { %v487_v11 = vmul.f32 %v1060_v4, %v486_v8 }
 0xaa8   :  { %v488_v15 = vadd.f32 %v1060_v4, %v487_v11 }
 0xaaa   :  { %v492_v21 = vsel %vm491_vm3, %v1060_v4, %v488_v15 }
 0xaab   :  { %v497_v25 = vsel %vm494_vm5, %v496_v23, %v492_v21 }
 0xab4   :  { %v477_v20 = vpop.permute.xlu0 %476 }
 0xab5   :  { %v479_v24 = vmul.f32 %v477_v20, %v440_v22 }
 0xab7   :  { %v498_v26 = vmul.f32 %v497_v25, %v479_v24 }
 0xab9   :  { %500 = vrot.lane.b32.xlu1 %v498_v26, %s1140_s19 }
 0xb2b   :  { %v501_v27 = vpop.permute.xlu1 %500 }
 0xb2c   :  { %988 = vst.msk [vmem:[%s1478_s3 + $0x6] sm:$0x3] %vm39_vm0, %v501_v27  ;;  %990 = vmatmul.msk.f32.vlgmr.msrb.gmra.mxu0 %vm54_vm1, %v501_v27 }
 0xba9   :  { %v526_v29 = vpop.f32.mrf.mxu0 }
 0xbaa   :  { %v529_v30 = vadd.f32 %v989_v28, %v526_v29 }
 0xbac   :  { %v530_v31 = vadd.f32 %v1220_v9, %v529_v30 }
 0xbae   :  { %1061 = vtanh.f32 %v530_v31  ;;  %553 = vrot.lane.b32.xlu2 %v530_v31, %s1141_s26  ;;  %v551_v33 = vadd.f32 %v530_v31, %v1317_v47  ;;  %v991_v51 = vmul.f32 -1.442695, %v530_v31 }
 0xbb4   :  { %v1062_v32 = vpop.eup %1061 }
 0xbb5   :  { %569 = vrot.lane.b32.xlu1 %v1062_v32, %s1142_s29 }
 0xc08   :  { %v554_v34 = vpop.permute.xlu2 %553 }
 0xc09   :  { %v1347_v35 = vmax.f32 %v551_v33, %v554_v34 }
 0xc0b   :  { %558 = vrot.lane.b32.xlu0 %v1347_v35, %s1140_s19  ;;  %v564_v42 = vsub.f32 %v551_v33, %v1347_v35 }
 0xc0d   :  { %v565_v43 = vmul.f32 1.442695, %v564_v42 }
 0xc27   :  { %v570_v40 = vpop.permute.xlu1 %569 }
 0xc7d   :  { %v559_v36 = vpop.permute.xlu0 %558 }
 0xc7e   :  { %v561_v37 = vsub.f32 %v530_v31, %v559_v36 }
 0xc80   :  { %v562_v38 = vmul.f32 1.442695, %v561_v37 }
 0xc82   :  { %1063 = vpow2.f32 %v562_v38 }
 0xc83   :  { %1065 = vpow2.f32 %v565_v43 }
 0xc84   :  { %1067 = vpow2.f32 %v991_v51 }
 0xc88   :  { %v1064_v39 = vpop.eup %1063 }
 0xc89   :  { %580 = vrot.lane.b32.xlu2 %v1064_v39, %s1141_s26  ;;  %v572_v41 = vmul.f32 %v1064_v39, %v570_v40  ;;  %v1066_v44 = vpop.eup %1065 }
 0xc8a   :  { %v578_v45 = vmul.f32 %v1066_v44, %v1325_v59  ;;  %v567_v48 = vmul.f32 %v1066_v44, %v1328_v62  ;;  %v1068_v52 = vpop.eup %1067 }
 0xc8b   :  { %574 = vrot.lane.b32.xlu0 %v572_v41, %s1141_s26  ;;  %v535_v53 = vadd.f32 1.0, %v1068_v52 }
 0xc8d   :  { %1069 = vrcp.f32 %v535_v53  ;;  %v547_v62 = vand.u32 2147483648, %v535_v53  ;;  %vm541_vm7 = vweird.f32 %v535_v53  ;;  %v545_v0 = vand.u32 2147483647, %v535_v53 }
 0xc8f   :  { %v548_v5 = vor.u32 1.1754944e-38, %v547_v62  ;;  %vm546_vm11 = vcmp.eq.f32.partialorder %v545_v0, 8.507059e+37 }
 0xc93   :  { %v1070_v54 = vpop.eup %1069 }
 0xc94   :  { %v537_v55 = vmul.f32 %v1070_v54, %v535_v53  ;;  %vm542_vm6 = vweird.f32 %v1070_v54 }
 0xc95   :  { %vm543_vm8 = vmor %vm541_vm7, %vm542_vm6 }
 0xc96   :  { %v538_v57 = vsub.f32 1.0, %v537_v55 }
 0xc98   :  { %v539_v58 = vmul.f32 %v1070_v54, %v538_v57 }
 0xc9a   :  { %v540_v61 = vadd.f32 %v1070_v54, %v539_v58 }
 0xc9c   :  { %v544_v3 = vsel %vm543_vm8, %v1070_v54, %v540_v61 }
 0xc9d   :  { %v549_v8 = vsel %vm546_vm11, %v548_v5, %v544_v3  ;;  %v997_v3 = vld [vmem:[%s1475_s0 + $0xc] sm:$0x3] }
 0xce3   :  { %v581_v46 = vpop.permute.xlu2 %580 }
 0xce4   :  { %v1355_v47 = vadd.f32 %v581_v46, %v578_v45 }
 0xce6   :  { %590 = vrot.lane.b32.xlu1 %v1355_v47, %s1142_s29 }
 0xcfd   :  { %v575_v49 = vpop.permute.xlu0 %574 }
 0xcfe   :  { %v1360_v50 = vadd.f32 %v575_v49, %v567_v48 }
 0xd00   :  { %585 = vrot.lane.b32.xlu2 %v1360_v50, %s1142_s29 }
 0xd58   :  { %v591_v56 = vpop.permute.xlu1 %590 }
 0xd59   :  { %1071 = vrcp.f32 %v591_v56  ;;  %v604_v1 = vand.u32 2147483648, %v591_v56  ;;  %v602_v4 = vand.u32 2147483647, %v591_v56  ;;  %vm598_vm10 = vweird.f32 %v591_v56 }
 0xd5a   :  { %v586_v6 = vpop.permute.xlu2 %585 }
 0xd5b   :  { %v605_v10 = vor.u32 1.1754944e-38, %v604_v1  ;;  %v588_v11 = vmul.f32 %v586_v6, %v549_v8  ;;  %vm603_vm13 = vcmp.eq.f32.partialorder %v602_v4, 8.507059e+37 }
 0xd5f   :  { %v1072_v59 = vpop.eup %1071 }
 0xd60   :  { %v594_v60 = vmul.f32 %v1072_v59, %v591_v56  ;;  %vm599_vm9 = vweird.f32 %v1072_v59 }
 0xd61   :  { %vm600_vm12 = vmor %vm598_vm10, %vm599_vm9 }
 0xd62   :  { %v595_v63 = vsub.f32 1.0, %v594_v60 }
 0xd64   :  { %v596_v2 = vmul.f32 %v1072_v59, %v595_v63 }
 0xd66   :  { %v597_v7 = vadd.f32 %v1072_v59, %v596_v2 }
 0xd68   :  { %v601_v12 = vsel %vm600_vm12, %v1072_v59, %v597_v7 }
 0xd69   :  { %v606_v13 = vsel %vm603_vm13, %v605_v10, %v601_v12 }
 0xd6a   :  { %v607_v14 = vmul.f32 %v606_v13, %v588_v11 }
 0xd6c   :  { %609 = vrot.lane.b32.xlu0 %v607_v14, %s1140_s19 }
 0xdde   :  { %v610_v15 = vpop.permute.xlu0 %609 }
 0xddf   :  { %992 = vst.msk [vmem:[%s1478_s3 + $0x8] sm:$0x3] %vm39_vm0, %v610_v15  ;;  %994 = vmatmul.msk.f32.vlgmr.msrb.gmra.mxu1 %vm54_vm1, %v610_v15 }
 0xe5c   :  { %v635_v17 = vpop.f32.mrf.mxu1 }
 0xe5d   :  { %v638_v18 = vadd.f32 %v993_v16, %v635_v17 }
 0xe5f   :  { %v639_v19 = vadd.f32 %v1220_v9, %v638_v18 }
 0xe61   :  { %1073 = vtanh.f32 %v639_v19  ;;  %662 = vrot.lane.b32.xlu1 %v639_v19, %s1141_s26  ;;  %v660_v22 = vadd.f32 %v639_v19, %v1347_v35  ;;  %v995_v39 = vmul.f32 -1.442695, %v639_v19 }
 0xe67   :  { %v1074_v21 = vpop.eup %1073 }
 0xe68   :  { %678 = vrot.lane.b32.xlu0 %v1074_v21, %s1142_s29 }
 0xed3   :  { %v663_v20 = vpop.permute.xlu1 %662 }
 0xed4   :  { %v1377_v23 = vmax.f32 %v660_v22, %v663_v20 }
 0xed6   :  { %667 = vrot.lane.b32.xlu2 %v1377_v23, %s1140_s19  ;;  %v673_v30 = vsub.f32 %v660_v22, %v1377_v23 }
 0xed8   :  { %v674_v31 = vmul.f32 1.442695, %v673_v30 }
 0xeda   :  { %v679_v28 = vpop.permute.xlu0 %678 }
 0xf30   :  { %v668_v24 = vpop.permute.xlu2 %667 }
 0xf31   :  { %v670_v25 = vsub.f32 %v639_v19, %v668_v24 }
 0xf33   :  { %v671_v26 = vmul.f32 1.442695, %v670_v25 }
 0xf35   :  { %1075 = vpow2.f32 %v671_v26 }
 0xf36   :  { %1077 = vpow2.f32 %v674_v31 }
 0xf37   :  { %1079 = vpow2.f32 %v995_v39 }
 0xf3b   :  { %v1076_v27 = vpop.eup %1075 }
 0xf3c   :  { %689 = vrot.lane.b32.xlu1 %v1076_v27, %s1141_s26  ;;  %v681_v29 = vmul.f32 %v1076_v27, %v679_v28  ;;  %v1078_v32 = vpop.eup %1077 }
 0xf3d   :  { %v676_v33 = vmul.f32 %v1078_v32, %v1360_v50  ;;  %v687_v36 = vmul.f32 %v1078_v32, %v1355_v47  ;;  %v1080_v40 = vpop.eup %1079 }
 0xf3e   :  { %683 = vrot.lane.b32.xlu2 %v681_v29, %s1141_s26  ;;  %v644_v41 = vadd.f32 1.0, %v1080_v40 }
 0xf40   :  { %1081 = vrcp.f32 %v644_v41  ;;  %v656_v50 = vand.u32 2147483648, %v644_v41  ;;  %vm650_vm15 = vweird.f32 %v644_v41  ;;  %v654_v51 = vand.u32 2147483647, %v644_v41 }
 0xf42   :  { %v657_v57 = vor.u32 1.1754944e-38, %v656_v50  ;;  %vm655_vm4 = vcmp.eq.f32.partialorder %v654_v51, 8.507059e+37 }
 0xf46   :  { %v1082_v42 = vpop.eup %1081 }
 0xf47   :  { %v646_v43 = vmul.f32 %v1082_v42, %v644_v41  ;;  %vm651_vm14 = vweird.f32 %v1082_v42 }
 0xf48   :  { %vm652_vm2 = vmor %vm650_vm15, %vm651_vm14 }
 0xf49   :  { %v647_v44 = vsub.f32 1.0, %v646_v43 }
 0xf4b   :  { %v648_v46 = vmul.f32 %v1082_v42, %v647_v44 }
 0xf4d   :  { %v649_v49 = vadd.f32 %v1082_v42, %v648_v46 }
 0xf4f   :  { %v653_v54 = vsel %vm652_vm2, %v1082_v42, %v649_v49 }
 0xf50   :  { %v658_v60 = vsel %vm655_vm4, %v657_v57, %v653_v54  ;;  %v1001_v54 = vld [vmem:[%s1475_s0 + $0xe] sm:$0x3]  ;;  %v1109_v57 = vld [vmem:[%s1477_s2] ss:$0 sm:$0xff] }
 0xf98   :  { %v684_v34 = vpop.permute.xlu2 %683 }
 0xf99   :  { %v1385_v35 = vadd.f32 %v684_v34, %v676_v33 }
 0xf9b   :  { %694 = vrot.lane.b32.xlu1 %v1385_v35, %s1142_s29 }
 0xfae   :  { %v690_v37 = vpop.permute.xlu1 %689 }
 0xfaf   :  { %v1390_v38 = vadd.f32 %v690_v37, %v687_v36 }
 0xfb1   :  { %699 = vrot.lane.b32.xlu0 %v1390_v38, %s1142_s29 }
0x100d   :  { %v695_v58 = vpop.permute.xlu1 %694 }
0x100e   :  { %v697_v62 = vmul.f32 %v695_v58, %v658_v60 }
0x1023   :  { %v700_v45 = vpop.permute.xlu0 %699 }
0x1024   :  { %1083 = vrcp.f32 %v700_v45  ;;  %v713_v53 = vand.u32 2147483648, %v700_v45  ;;  %v711_v56 = vand.u32 2147483647, %v700_v45  ;;  %vm707_vm5 = vweird.f32 %v700_v45 }
0x1026   :  { %v714_v61 = vor.u32 1.1754944e-38, %v713_v53  ;;  %vm712_vm7 = vcmp.eq.f32.partialorder %v711_v56, 8.507059e+37 }
0x102a   :  { %v1084_v48 = vpop.eup %1083 }
0x102b   :  { %v703_v47 = vmul.f32 %v1084_v48, %v700_v45  ;;  %vm708_vm3 = vweird.f32 %v1084_v48 }
0x102c   :  { %vm709_vm6 = vmor %vm707_vm5, %vm708_vm3 }
0x102d   :  { %v704_v52 = vsub.f32 1.0, %v703_v47 }
0x102f   :  { %v705_v55 = vmul.f32 %v1084_v48, %v704_v52 }
0x1031   :  { %v706_v59 = vadd.f32 %v1084_v48, %v705_v55 }
0x1033   :  { %v710_v63 = vsel %vm709_vm6, %v1084_v48, %v706_v59 }
0x1034   :  { %v715_v0 = vsel %vm712_vm7, %v714_v61, %v710_v63 }
0x1035   :  { %v716_v1 = vmul.f32 %v715_v0, %v697_v62 }
0x1037   :  { %718 = vrot.lane.b32.xlu2 %v716_v1, %s1140_s19 }
0x1091   :  { %v719_v2 = vpop.permute.xlu2 %718 }
0x1092   :  { %996 = vst.msk [vmem:[%s1478_s3 + $0xa] sm:$0x3] %vm39_vm0, %v719_v2  ;;  %998 = vmatmul.msk.f32.vlgmr.msrb.gmra.mxu2 %vm54_vm1, %v719_v2 }
0x1115   :  { %v744_v4 = vpop.f32.mrf.mxu2 }
0x1116   :  { %v747_v5 = vadd.f32 %v997_v3, %v744_v4 }
0x1118   :  { %v748_v6 = vadd.f32 %v1220_v9, %v747_v5 }
0x111a   :  { %1085 = vtanh.f32 %v748_v6  ;;  %771 = vrot.lane.b32.xlu0 %v748_v6, %s1141_s26  ;;  %v769_v8 = vadd.f32 %v748_v6, %v1377_v23  ;;  %v999_v26 = vmul.f32 -1.442695, %v748_v6 }
0x1120   :  { %v1086_v7 = vpop.eup %1085 }
0x1121   :  { %787 = vrot.lane.b32.xlu2 %v1086_v7, %s1142_s29 }
0x117b   :  { %v788_v9 = vpop.permute.xlu2 %787 }
0x118c   :  { %v772_v10 = vpop.permute.xlu0 %771 }
0x118d   :  { %v1407_v11 = vmax.f32 %v769_v8, %v772_v10 }
0x118f   :  { %776 = vrot.lane.b32.xlu1 %v1407_v11, %s1140_s19  ;;  %v782_v17 = vsub.f32 %v769_v8, %v1407_v11 }
0x1191   :  { %v783_v18 = vmul.f32 1.442695, %v782_v17 }
0x1201   :  { %v777_v12 = vpop.permute.xlu1 %776 }
0x1202   :  { %v779_v13 = vsub.f32 %v748_v6, %v777_v12 }
0x1204   :  { %v780_v14 = vmul.f32 1.442695, %v779_v13 }
0x1206   :  { %1087 = vpow2.f32 %v780_v14 }
0x1207   :  { %1089 = vpow2.f32 %v783_v18 }
0x1208   :  { %1091 = vpow2.f32 %v999_v26 }
0x120c   :  { %v1088_v15 = vpop.eup %1087 }
0x120d   :  { %798 = vrot.lane.b32.xlu0 %v1088_v15, %s1141_s26  ;;  %v790_v16 = vmul.f32 %v1088_v15, %v788_v9  ;;  %v1090_v19 = vpop.eup %1089 }
0x120e   :  { %v796_v21 = vmul.f32 %v1090_v19, %v1390_v38  ;;  %v785_v23 = vmul.f32 %v1090_v19, %v1385_v35  ;;  %v1092_v27 = vpop.eup %1091 }
0x120f   :  { %792 = vrot.lane.b32.xlu1 %v790_v16, %s1141_s26  ;;  %v753_v28 = vadd.f32 1.0, %v1092_v27 }
0x1211   :  { %1093 = vrcp.f32 %v753_v28  ;;  %v765_v39 = vand.u32 2147483648, %v753_v28  ;;  %vm759_vm9 = vweird.f32 %v753_v28  ;;  %v763_v40 = vand.u32 2147483647, %v753_v28 }
0x1213   :  { %v766_v45 = vor.u32 1.1754944e-38, %v765_v39  ;;  %vm764_vm14 = vcmp.eq.f32.partialorder %v763_v40, 8.507059e+37 }
0x1217   :  { %v1094_v30 = vpop.eup %1093 }
0x1218   :  { %v755_v32 = vmul.f32 %v1094_v30, %v753_v28  ;;  %vm760_vm8 = vweird.f32 %v1094_v30 }
0x1219   :  { %vm761_vm11 = vmor %vm759_vm9, %vm760_vm8 }
0x121a   :  { %v756_v34 = vsub.f32 1.0, %v755_v32 }
0x121c   :  { %v757_v36 = vmul.f32 %v1094_v30, %v756_v34 }
0x121e   :  { %v758_v38 = vadd.f32 %v1094_v30, %v757_v36 }
0x1220   :  { %v762_v43 = vsel %vm761_vm11, %v1094_v30, %v758_v38 }
0x1221   :  { %v767_v48 = vsel %vm764_vm14, %v766_v45, %v762_v43 }
0x127f   :  { %v799_v22 = vpop.permute.xlu0 %798 }
0x1280   :  { %v1415_v20 = vadd.f32 %v799_v22, %v796_v21 }
0x1281   :  { %v793_v24 = vpop.permute.xlu1 %792 }
0x1282   :  { %v1418_v25 = vadd.f32 %v793_v24, %v785_v23  ;;  %808 = vrot.lane.b32.xlu2 %v1415_v20, %s1142_s29 }
0x1284   :  { %803 = vrot.lane.b32.xlu0 %v1418_v25, %s1142_s29 }
0x12dc   :  { %v809_v29 = vpop.permute.xlu2 %808 }
0x12dd   :  { %1095 = vrcp.f32 %v809_v29  ;;  %v822_v42 = vand.u32 2147483648, %v809_v29  ;;  %vm816_vm12 = vweird.f32 %v809_v29  ;;  %v820_v44 = vand.u32 2147483647, %v809_v29 }
0x12df   :  { %v823_v47 = vor.u32 1.1754944e-38, %v822_v42  ;;  %vm821_vm15 = vcmp.eq.f32.partialorder %v820_v44, 8.507059e+37 }
0x12e3   :  { %v1096_v31 = vpop.eup %1095 }
0x12e4   :  { %v812_v33 = vmul.f32 %v1096_v31, %v809_v29  ;;  %vm817_vm10 = vweird.f32 %v1096_v31 }
0x12e5   :  { %vm818_vm13 = vmor %vm816_vm12, %vm817_vm10 }
0x12e6   :  { %v813_v35 = vsub.f32 1.0, %v812_v33 }
0x12e8   :  { %v814_v37 = vmul.f32 %v1096_v31, %v813_v35 }
0x12ea   :  { %v815_v41 = vadd.f32 %v1096_v31, %v814_v37 }
0x12ec   :  { %v819_v46 = vsel %vm818_vm13, %v1096_v31, %v815_v41 }
0x12ed   :  { %v824_v51 = vsel %vm821_vm15, %v823_v47, %v819_v46 }
0x12f6   :  { %v804_v49 = vpop.permute.xlu0 %803 }
0x12f7   :  { %v806_v50 = vmul.f32 %v804_v49, %v767_v48 }
0x12f9   :  { %v825_v52 = vmul.f32 %v824_v51, %v806_v50 }
0x12fb   :  { %827 = vrot.lane.b32.xlu1 %v825_v52, %s1140_s19 }
0x136d   :  { %v828_v53 = vpop.permute.xlu1 %827 }
0x136e   :  { %1000 = vst.msk [vmem:[%s1478_s3 + $0xc] sm:$0x3] %vm39_vm0, %v828_v53  ;;  %1002 = vmatmul.msk.f32.vlgmr.msrb.gmra.mxu3 %vm54_vm1, %v828_v53 }
0x13f1   :  { %v853_v55 = vpop.f32.mrf.mxu3 }
0x13f2   :  { %v856_v56 = vadd.f32 %v1001_v54, %v853_v55 }
0x13f4   :  { %v857_v58 = vadd.f32 %v1109_v57, %v856_v56 }
0x13f6   :  { %1097 = vtanh.f32 %v857_v58  ;;  %880 = vrot.lane.b32.xlu2 %v857_v58, %s1141_s26  ;;  %v878_v60 = vadd.f32 %v857_v58, %v1407_v11  ;;  %v1003_v15 = vmul.f32 -1.442695, %v857_v58 }
0x13fc   :  { %v1098_v59 = vpop.eup %1097 }
0x13fd   :  { %896 = vrot.lane.b32.xlu1 %v1098_v59, %s1142_s29 }
0x1450   :  { %v881_v61 = vpop.permute.xlu2 %880 }
0x1451   :  { %v1439_v62 = vmax.f32 %v878_v60, %v881_v61 }
0x1453   :  { %885 = vrot.lane.b32.xlu0 %v1439_v62, %s1140_s19  ;;  %v891_v5 = vsub.f32 %v878_v60, %v1439_v62 }
0x1455   :  { %v892_v6 = vmul.f32 1.442695, %v891_v5 }
0x146f   :  { %v897_v3 = vpop.permute.xlu1 %896 }
0x14c5   :  { %v886_v63 = vpop.permute.xlu0 %885 }
0x14c6   :  { %v888_v0 = vsub.f32 %v857_v58, %v886_v63 }
0x14c8   :  { %v889_v1 = vmul.f32 1.442695, %v888_v0 }
0x14ca   :  { %1099 = vpow2.f32 %v889_v1 }
0x14cb   :  { %1101 = vpow2.f32 %v892_v6 }
0x14cc   :  { %1103 = vpow2.f32 %v1003_v15 }
0x14d0   :  { %v1100_v2 = vpop.eup %1099 }
0x14d1   :  { %907 = vrot.lane.b32.xlu2 %v1100_v2, %s1141_s26  ;;  %v899_v4 = vmul.f32 %v1100_v2, %v897_v3  ;;  %v1102_v7 = vpop.eup %1101 }
0x14d2   :  { %v905_v8 = vmul.f32 %v1102_v7, %v1415_v20  ;;  %v894_v12 = vmul.f32 %v1102_v7, %v1418_v25  ;;  %v1104_v9 = vpop.eup %1103 }
0x14d3   :  { %901 = vrot.lane.b32.xlu0 %v899_v4, %s1141_s26  ;;  %v862_v16 = vadd.f32 1.0, %v1104_v9 }
0x14d5   :  { %1105 = vrcp.f32 %v862_v16  ;;  %v874_v26 = vand.u32 2147483648, %v862_v16  ;;  %vm868_vm2 = vweird.f32 %v862_v16  ;;  %v872_v28 = vand.u32 2147483647, %v862_v16 }
0x14d7   :  { %v875_v34 = vor.u32 1.1754944e-38, %v874_v26  ;;  %vm873_vm6 = vcmp.eq.f32.partialorder %v872_v28, 8.507059e+37 }
0x14db   :  { %v1106_v17 = vpop.eup %1105 }
0x14dc   :  { %v864_v18 = vmul.f32 %v1106_v17, %v862_v16  ;;  %vm869_vm1 = vweird.f32 %v1106_v17 }
0x14dd   :  { %vm870_vm3 = vmor %vm868_vm2, %vm869_vm1 }
0x14de   :  { %v865_v21 = vsub.f32 1.0, %v864_v18 }
0x14e0   :  { %v866_v20 = vmul.f32 %v1106_v17, %v865_v21 }
0x14e2   :  { %v867_v25 = vadd.f32 %v1106_v17, %v866_v20 }
0x14e4   :  { %v871_v32 = vsel %vm870_vm3, %v1106_v17, %v867_v25 }
0x14e5   :  { %v876_v36 = vsel %vm873_vm6, %v875_v34, %v871_v32 }
0x152b   :  { %v908_v10 = vpop.permute.xlu2 %907 }
0x152c   :  { %v910_v11 = vadd.f32 %v908_v10, %v905_v8 }
0x152e   :  { %917 = vrot.lane.b32.xlu1 %v910_v11, %s1142_s29 }
0x1545   :  { %v902_v13 = vpop.permute.xlu0 %901 }
0x1546   :  { %v904_v14 = vadd.f32 %v902_v13, %v894_v12 }
0x1548   :  { %942 = vrot.lane.b32.xlu1 %v904_v14, %s1141_s26  ;;  %912 = vrot.lane.b32.xlu2 %v904_v14, %s1142_s29 }
0x1550   :  { %946 = vrot.lane.b32.xlu2 %v910_v11, %s1141_s26 }
0x15a0   :  { %v918_v19 = vpop.permute.xlu1 %917 }
0x15a1   :  { %1107 = vrcp.f32 %v918_v19  ;;  %v931_v30 = vand.u32 2147483648, %v918_v19  ;;  %v929_v33 = vand.u32 2147483647, %v918_v19  ;;  %vm925_vm5 = vweird.f32 %v918_v19 }
0x15a2   :  { %v913_v22 = vpop.permute.xlu2 %912 }
0x15a3   :  { %v932_v37 = vor.u32 1.1754944e-38, %v931_v30  ;;  %v915_v38 = vmul.f32 %v913_v22, %v876_v36  ;;  %vm930_vm8 = vcmp.eq.f32.partialorder %v929_v33, 8.507059e+37 }
0x15a7   :  { %v1108_v23 = vpop.eup %1107 }
0x15a8   :  { %v921_v24 = vmul.f32 %v1108_v23, %v918_v19  ;;  %vm926_vm4 = vweird.f32 %v1108_v23 }
0x15a9   :  { %vm927_vm7 = vmor %vm925_vm5, %vm926_vm4 }
0x15aa   :  { %v922_v27 = vsub.f32 1.0, %v921_v24  ;;  %v947_v29 = vpop.permute.xlu2 %946 }
0x15ab   :  { %949 = vst.msk [vmem:[%s1481_s6] sm:$0x3] %vm39_vm0, %v947_v29 }
0x15ac   :  { %v923_v31 = vmul.f32 %v1108_v23, %v922_v27 }
0x15ae   :  { %v924_v35 = vadd.f32 %v1108_v23, %v923_v31 }
0x15b0   :  { %v928_v39 = vsel %vm927_vm7, %v1108_v23, %v924_v35 }
0x15b1   :  { %v933_v40 = vsel %vm930_vm8, %v932_v37, %v928_v39 }
0x15b2   :  { %v934_v41 = vmul.f32 %v933_v40, %v915_v38 }
0x15b4   :  { %936 = vrot.lane.b32.xlu0 %v934_v41, %s1140_s19 }
0x15ba   :  { %v943_v42 = vpop.permute.xlu1 %942 }
0x15bb   :  { %945 = vst.msk [vmem:[%s1480_s5] sm:$0x3] %vm39_vm0, %v943_v42 }
0x15bc   :  { %950 = vrot.lane.b32.xlu0 %v1439_v62, %s1141_s26 }
0x1626   :  { %v937_v43 = vpop.permute.xlu0 %936 }
0x1627   :  { %1004 = vst.msk [vmem:[%s1478_s3 + $0xe] sm:$0x3] %vm39_vm0, %v937_v43 }
0x1628   :  { %941 = vst.msk [vmem:[%s1479_s4] sm:$0x3] %vm39_vm0, %v937_v43 }
0x162e   :  { %v951_v44 = vpop.permute.xlu0 %950 }
0x162f   :  { %953 = vst.msk [vmem:[%s1482_s7] sm:$0x3] %vm39_vm0, %v951_v44 }
0x1630   :  { %974 = vsyncpa [#allocation3], 1 }

</bundles_post_ra>
